<compile_context>
chip_gen: v5e
topology: v5e:2x2
jax: 0.10.0
libtpu: 0.0.40
codegen_flags: <defaults>
</compile_context>

<pallas_src>
import functools

import jax
import jax.numpy as jnp
from jax import lax
from jax.experimental import pallas as pl
from jax.experimental.pallas import tpu as pltpu


def _round_up(x, m):
    return (x + m - 1) // m * m


def _asm2vec_loss_kernel(inp_ref, pn_ref, emb_ref, embf_ref, embrt_ref,
                         out_ref, *, num_pos, batch_size):
    """One grid step == one tile of TB batch elements on one core.

    Grid = (NC, G2): axis 0 "parallel" (core split on v7x), axis 1 "arbitrary"
    (per-core accumulation over batch tiles).

    inp_ref   : VMEM (TB, 7)    int32  -- col 0 function id, cols 1..6 tokens
    pn_ref    : VMEM (TB, P)    int32  -- cat([pos, neg], dim=1)
    emb_ref   : VMEM (V, E)     f32    -- embeddings      (resident)
    embf_ref  : VMEM (F, 2E)    f32    -- embeddings_f    (resident)
    embrt_ref : VMEM (2E, V)    f32    -- embeddings_r.T  (resident)
    out_ref   : VMEM (1, 128)   f32    -- per-core running (unscaled) BCE sum
                                          (every lane holds the same value)
    """
    c = pl.program_id(0)
    i = pl.program_id(1)
    TB = inp_ref.shape[0]
    P = pn_ref.shape[1]
    V, E = emb_ref.shape
    F = embf_ref.shape[0]
    f32 = jnp.float32

    @pl.when(i == 0)
    def _init():
        out_ref[...] = jnp.zeros_like(out_ref)

    inp = inp_ref[...]                                        # (TB, 7) int32

    # ---- context vector v via weighted one-hot gathers on the MXU -----------
    # low  half (before +v_f):  e0 + e3                     (inp cols 1, 4)
    # high half (before +v_f): (e1 + e2 + e4 + e5) / 2      (inp cols 2,3,5,6)
    vocab_iota = lax.broadcasted_iota(jnp.int32, (TB, V), 1)

    def onehot(col):
        return (vocab_iota == inp[:, col:col + 1]).astype(f32)

    w_lo = onehot(1) + onehot(4)
    w_hi = (onehot(2) + onehot(3) + onehot(5) + onehot(6)) * 0.5
    e_lo = jnp.dot(w_lo, emb_ref[...], preferred_element_type=f32)   # (TB, E)
    e_hi = jnp.dot(w_hi, emb_ref[...], preferred_element_type=f32)   # (TB, E)

    f_iota = lax.broadcasted_iota(jnp.int32, (TB, F), 1)
    oh_f = (f_iota == inp[:, 0:1]).astype(f32)
    v_f = jnp.dot(oh_f, embf_ref[...], preferred_element_type=f32)   # (TB, 2E)

    v = (v_f + jnp.concatenate([e_lo, e_hi], axis=1)) * (1.0 / 3.0)  # (TB, 2E)

    # ---- scores = v @ emb_r.T : one lane-dense (TB, V) matmul ---------------
    scores = jnp.dot(v, embrt_ref[...], preferred_element_type=f32)  # (TB, V)

    # ---- pred[b, p] = scores[b, pn[b, p]] via P small one-hot selects -------
    pn = pn_ref[...]                                          # (TB, P) int32
    p_iota = lax.broadcasted_iota(jnp.int32, (TB, P), 1)
    pred = jnp.zeros((TB, P), f32)
    for p in range(P):                                        # static unroll
        sel = vocab_iota == pn[:, p:p + 1]                    # (TB, V) bool
        col = jnp.sum(jnp.where(sel, scores, 0.0), axis=1, keepdims=True)
        pred = jnp.where(p_iota == p, col, pred)              # write column p

    # ---- BCE, lane-dense on (TB, P) ------------------------------------------
    # log(sigmoid(x)) = -softplus(-x); log(1 - sigmoid(x)) = -softplus(x)
    def softplus(x):
        return jnp.maximum(x, 0.0) + jnp.log1p(jnp.exp(-jnp.abs(x)))

    log_s = jnp.maximum(-softplus(-pred), -100.0)   # clamp matches torch BCELoss
    log_1ms = jnp.maximum(-softplus(pred), -100.0)

    label = p_iota < num_pos                                  # (TB, P) bool
    bce = -jnp.where(label, log_s, log_1ms)

    # mask out batch-padding rows (generated in-kernel, no extra input)
    row0 = (c * pl.num_programs(1) + i) * TB
    valid = (lax.broadcasted_iota(jnp.int32, (TB, P), 0) + row0) < batch_size
    step_sum = jnp.sum(jnp.where(valid, bce, 0.0))

    out_ref[...] += step_sum     # broadcast: all 128 lanes hold the partial sum


def asm2vec_forward_loss(inp, pos, neg, emb, emb_f, emb_r, *, tile_b=256,
                         num_cores=2):
    """Pallas implementation of ASM2VEC.forward(inp, pos, neg) -> scalar loss."""
    B = inp.shape[0]
    num_pos = pos.shape[1]          # forward() hard-codes 3; pos has 3 cols
    P = pos.shape[1] + neg.shape[1]
    V, E = emb.shape
    F = emb_f.shape[0]
    E2 = 2 * E

    # ---- batch tile: count the real per-step working set --------------------
    # ~8 live f32 (TB, max(V,F,P,128)) arrays (one-hots, scores, per-p select
    # temporaries) plus small index tiles.  Budgeted so the same pick fits
    # v7x (64 MiB VMEM/TC), not just v5e/v6e (128 MiB).
    lanes = max(V, F, P, 128)
    per_row_bytes = 8 * 4 * lanes
    work_budget = 8 << 20
    max_tb = max(8, (work_budget // per_row_bytes) // 8 * 8)
    TB = _round_up(min(tile_b, max(B, 1)), 8)
    TB = max(8, min(TB, max_tb))

    NC = max(1, int(num_cores))     # leading "parallel" axis (v7x has 2 TCs)
    Bp = _round_up(B, NC * TB)
    G2 = Bp // (NC * TB)
    pad = Bp - B

    inp_p = jnp.pad(inp.astype(jnp.int32), ((0, pad), (0, 0)))          # (Bp, 7)
    pn_p = jnp.pad(jnp.concatenate([pos, neg], axis=1).astype(jnp.int32),
                   ((0, pad), (0, 0)))                                   # (Bp, P)

    emb32 = emb.astype(jnp.float32)                                      # (V, E)
    embf32 = emb_f.astype(jnp.float32)                                   # (F, 2E)
    embrt32 = emb_r.astype(jnp.float32).T                                # (2E, V)

    tables_bytes = 4 * (V * E + F * E2 + E2 * V)
    blocks_bytes = 2 * 4 * TB * (P + inp_p.shape[1])   # double-buffered tiles

    def vmem_limit(table_buffers):
        want = table_buffers * tables_bytes + blocks_bytes + work_budget + (4 << 20)
        return int(min(48 << 20, max(24 << 20, want)))   # 48 MiB cap: v7x headroom

    kernel = functools.partial(_asm2vec_loss_kernel,
                               num_pos=num_pos, batch_size=B)

    def build_and_run(single_buffer_tables):
        # Resident tables: constant index_map; request single-buffering to
        # halve their VMEM footprint (important on v7x's 64 MiB VMEM/TC).
        table_mode = (dict(pipeline_mode=pl.Buffered(1))
                      if single_buffer_tables else {})
        return pl.pallas_call(
            kernel,
            out_shape=jax.ShapeDtypeStruct((1, NC * 128), jnp.float32),
            grid_spec=pltpu.PrefetchScalarGridSpec(
                num_scalar_prefetch=0,
                grid=(NC, G2),
                in_specs=[
                    pl.BlockSpec((TB, inp_p.shape[1]),
                                 lambda c, i: (c * G2 + i, 0)),
                    pl.BlockSpec((TB, P), lambda c, i: (c * G2 + i, 0)),
                    pl.BlockSpec((V, E), lambda c, i: (0, 0), **table_mode),
                    pl.BlockSpec((F, E2), lambda c, i: (0, 0), **table_mode),
                    pl.BlockSpec((E2, V), lambda c, i: (0, 0), **table_mode),
                ],
                out_specs=pl.BlockSpec((1, 128), lambda c, i: (0, c)),
            ),
            compiler_params=pltpu.CompilerParams(
                dimension_semantics=("parallel", "arbitrary"),
                vmem_limit_bytes=vmem_limit(1 if single_buffer_tables else 2)),
        )(inp_p, pn_p, emb32, embf32, embrt32)

    try:
        out = build_and_run(single_buffer_tables=True)
    except Exception:
        # Installed Pallas rejects pl.Buffered(1): fall back to default
        # double-buffered resident tables (correctness identical).
        out = build_and_run(single_buffer_tables=False)

    partials = out[0, ::128]                     # first lane of each core block
    return jnp.sum(partials) * (1.0 / float(B * P))


def _ref_loss(inp, pos, neg, emb, emb_f, emb_r):
    """Pure-JAX reference mirroring the PyTorch forward."""
    e = emb[inp[:, 1:]]                                   # (B, 6, E)
    v_f = emb_f[inp[:, 0]]                                # (B, 2E)
    v_prev = jnp.concatenate([e[:, 0], (e[:, 1] + e[:, 2]) / 2], axis=1)
    v_next = jnp.concatenate([e[:, 3], (e[:, 4] + e[:, 5]) / 2], axis=1)
    v = (v_f + v_prev + v_next) / 3                       # (B, 2E)
    r = emb_r[jnp.concatenate([pos, neg], axis=1)]        # (B, P, 2E)
    pred = jnp.einsum("bpe,be->bp", r, v)
    s = jax.nn.sigmoid(pred)
    B = inp.shape[0]
    label = jnp.concatenate(
        [jnp.ones((B, pos.shape[1])), jnp.zeros((B, neg.shape[1]))], axis=1)
    return jnp.mean(-(label * jnp.log(s) + (1 - label) * jnp.log(1 - s)))


if __name__ == "__main__":
    vocab_size, function_size, embedding_size = 50, 10, 32
    batch, n_neg = 2, 25

    key = jax.random.PRNGKey(0)
    k1, k2, k3, k4, k5, k6, k7 = jax.random.split(key, 7)

    # Parameter init (shapes per ASM2VEC.__init__). `embeddings` is zeros in the
    # original; small-uniform here so the whole data path is exercised.
    emb = ((jax.random.uniform(k1, (vocab_size, embedding_size)) - 0.5)
           / embedding_size / 2).astype(jnp.float32)
    emb_f = ((jax.random.uniform(k2, (function_size, 2 * embedding_size)) - 0.5)
             / embedding_size / 2).astype(jnp.float32)
    emb_r = ((jax.random.uniform(k3, (vocab_size, 2 * embedding_size)) - 0.5)
             / embedding_size / 2).astype(jnp.float32)

    # inputs: inp = [function_id, 6 token ids], pos (3 targets), neg samples
    inp = jnp.concatenate(
        [jax.random.randint(k4, (batch, 1), 0, function_size),
         jax.random.randint(k5, (batch, 6), 0, vocab_size)],
        axis=1).astype(jnp.int32)
    pos = jax.random.randint(k6, (batch, 3), 0, vocab_size).astype(jnp.int32)
    neg = jax.random.randint(k7, (batch, n_neg), 0, vocab_size).astype(jnp.int32)

    loss = asm2vec_forward_loss(inp, pos, neg, emb, emb_f, emb_r)
    loss = jax.block_until_ready(loss)

    ref = _ref_loss(inp, pos, neg, emb, emb_f, emb_r)
    assert jnp.isfinite(loss), "loss is not finite"
    assert jnp.allclose(loss, ref, atol=1e-5, rtol=1e-5), (loss, ref)

    print("KERNEL_OK")
</pallas_src>

<mosaic_0001>
module attributes {stable_mosaic.version = 11 : i64} {
  func.func @_asm2vec_loss_kernel(%arg0: i32, %arg1: i32, %arg2: memref<8x7xi32, #tpu.memory_space<vmem>>, %arg3: memref<8x28xi32, #tpu.memory_space<vmem>>, %arg4: memref<50x32xf32, #tpu.memory_space<vmem>>, %arg5: memref<10x64xf32, #tpu.memory_space<vmem>>, %arg6: memref<64x50xf32, #tpu.memory_space<vmem>>, %arg7: memref<1x128xf32, #tpu.memory_space<vmem>>) attributes {dimension_semantics = [#tpu.dimension_semantics<parallel>, #tpu.dimension_semantics<arbitrary>], iteration_bounds = array<i64: 2, 1>, scalar_prefetch = 0 : i64, scratch_operands = 0 : i64, tpu.core_type = #tpu.core_type<tc>, window_params = [{transform_indices = @transform_0, window_bounds = array<i64: 8, 7>}, {transform_indices = @transform_1, window_bounds = array<i64: 8, 28>}, {pipeline_mode = #tpu.pipeline_mode<synchronous>, transform_indices = @transform_2, window_bounds = array<i64: 50, 32>}, {pipeline_mode = #tpu.pipeline_mode<synchronous>, transform_indices = @transform_3, window_bounds = array<i64: 10, 64>}, {pipeline_mode = #tpu.pipeline_mode<synchronous>, transform_indices = @transform_4, window_bounds = array<i64: 64, 50>}, {transform_indices = @transform_5, window_bounds = array<i64: 1, 128>}]} {
    %c0_i32 = arith.constant 0 : i32
    %0 = arith.cmpi eq, %arg1, %c0_i32 : i32
    %1 = arith.extui %0 : i1 to i32
    %c0_i32_0 = arith.constant 0 : i32
    %2 = arith.cmpi ne, %1, %c0_i32_0 : i32
    scf.if %2 {
      %cst_95 = arith.constant 0.000000e+00 : f32
      %447 = vector.broadcast %cst_95 : f32 to vector<1x128xf32>
      %c0_96 = arith.constant 0 : index
      %c0_97 = arith.constant 0 : index
      %448 = vector.load %arg7[%c0_96, %c0_97] : memref<1x128xf32, #tpu.memory_space<vmem>>, vector<1x128xf32>
      tpu.vector_store %arg7[%c0_96, %c0_97], %447 {strides = array<i32>} : memref<1x128xf32, #tpu.memory_space<vmem>>, vector<1x128xf32>,
    } else {
    }
    %c0 = arith.constant 0 : index
    %c0_1 = arith.constant 0 : index
    %3 = vector.load %arg2[%c0, %c0_1] : memref<8x7xi32, #tpu.memory_space<vmem>>, vector<8x7xi32>
    %4 = tpu.iota {dimensions = array<i32: 1>} : vector<8x50xi32>
    %5 = vector.extract_strided_slice %3 {offsets = [0, 1], sizes = [8, 1], strides = [1, 1]} : vector<8x7xi32> to vector<8x1xi32>
    %6 = vector.broadcast %5 : vector<8x1xi32> to vector<8x50xi32>
    %7 = arith.cmpi eq, %4, %6 : vector<8x50xi32>
    %8 = arith.extui %7 : vector<8x50xi1> to vector<8x50xi32>
    %9 = arith.sitofp %8 : vector<8x50xi32> to vector<8x50xf32>
    %10 = vector.extract_strided_slice %3 {offsets = [0, 4], sizes = [8, 1], strides = [1, 1]} : vector<8x7xi32> to vector<8x1xi32>
    %11 = vector.broadcast %10 : vector<8x1xi32> to vector<8x50xi32>
    %12 = arith.cmpi eq, %4, %11 : vector<8x50xi32>
    %13 = arith.extui %12 : vector<8x50xi1> to vector<8x50xi32>
    %14 = arith.sitofp %13 : vector<8x50xi32> to vector<8x50xf32>
    %15 = arith.addf %9, %14 : vector<8x50xf32>
    %16 = vector.extract_strided_slice %3 {offsets = [0, 2], sizes = [8, 1], strides = [1, 1]} : vector<8x7xi32> to vector<8x1xi32>
    %17 = vector.broadcast %16 : vector<8x1xi32> to vector<8x50xi32>
    %18 = arith.cmpi eq, %4, %17 : vector<8x50xi32>
    %19 = arith.extui %18 : vector<8x50xi1> to vector<8x50xi32>
    %20 = arith.sitofp %19 : vector<8x50xi32> to vector<8x50xf32>
    %21 = vector.extract_strided_slice %3 {offsets = [0, 3], sizes = [8, 1], strides = [1, 1]} : vector<8x7xi32> to vector<8x1xi32>
    %22 = vector.broadcast %21 : vector<8x1xi32> to vector<8x50xi32>
    %23 = arith.cmpi eq, %4, %22 : vector<8x50xi32>
    %24 = arith.extui %23 : vector<8x50xi1> to vector<8x50xi32>
    %25 = arith.sitofp %24 : vector<8x50xi32> to vector<8x50xf32>
    %26 = arith.addf %20, %25 : vector<8x50xf32>
    %27 = vector.extract_strided_slice %3 {offsets = [0, 5], sizes = [8, 1], strides = [1, 1]} : vector<8x7xi32> to vector<8x1xi32>
    %28 = vector.broadcast %27 : vector<8x1xi32> to vector<8x50xi32>
    %29 = arith.cmpi eq, %4, %28 : vector<8x50xi32>
    %30 = arith.extui %29 : vector<8x50xi1> to vector<8x50xi32>
    %31 = arith.sitofp %30 : vector<8x50xi32> to vector<8x50xf32>
    %32 = arith.addf %26, %31 : vector<8x50xf32>
    %33 = vector.extract_strided_slice %3 {offsets = [0, 6], sizes = [8, 1], strides = [1, 1]} : vector<8x7xi32> to vector<8x1xi32>
    %34 = vector.broadcast %33 : vector<8x1xi32> to vector<8x50xi32>
    %35 = arith.cmpi eq, %4, %34 : vector<8x50xi32>
    %36 = arith.extui %35 : vector<8x50xi1> to vector<8x50xi32>
    %37 = arith.sitofp %36 : vector<8x50xi32> to vector<8x50xf32>
    %38 = arith.addf %32, %37 : vector<8x50xf32>
    %cst = arith.constant 5.000000e-01 : f32
    %39 = vector.broadcast %cst : f32 to vector<8x50xf32>
    %40 = arith.mulf %38, %39 : vector<8x50xf32>
    %c0_2 = arith.constant 0 : index
    %c0_3 = arith.constant 0 : index
    %41 = vector.load %arg4[%c0_2, %c0_3] : memref<50x32xf32, #tpu.memory_space<vmem>>, vector<50x32xf32>
    %cst_4 = arith.constant dense<0.000000e+00> : vector<8x32xf32>
    %42 = tpu.matmul %15, %41, %cst_4 {dimension_numbers = #tpu.dot_dimension_numbers<[1], [0], [0], [1], [0, 0, 1, 1], [], []>} : vector<8x50xf32>, vector<50x32xf32>, vector<8x32xf32> -> vector<8x32xf32>
    %c0_5 = arith.constant 0 : index
    %c0_6 = arith.constant 0 : index
    %43 = vector.load %arg4[%c0_5, %c0_6] : memref<50x32xf32, #tpu.memory_space<vmem>>, vector<50x32xf32>
    %cst_7 = arith.constant dense<0.000000e+00> : vector<8x32xf32>
    %44 = tpu.matmul %40, %43, %cst_7 {dimension_numbers = #tpu.dot_dimension_numbers<[1], [0], [0], [1], [0, 0, 1, 1], [], []>} : vector<8x50xf32>, vector<50x32xf32>, vector<8x32xf32> -> vector<8x32xf32>
    %45 = tpu.iota {dimensions = array<i32: 1>} : vector<8x10xi32>
    %46 = vector.extract_strided_slice %3 {offsets = [0, 0], sizes = [8, 1], strides = [1, 1]} : vector<8x7xi32> to vector<8x1xi32>
    %47 = vector.broadcast %46 : vector<8x1xi32> to vector<8x10xi32>
    %48 = arith.cmpi eq, %45, %47 : vector<8x10xi32>
    %49 = arith.extui %48 : vector<8x10xi1> to vector<8x10xi32>
    %50 = arith.sitofp %49 : vector<8x10xi32> to vector<8x10xf32>
    %c0_8 = arith.constant 0 : index
    %c0_9 = arith.constant 0 : index
    %51 = vector.load %arg5[%c0_8, %c0_9] : memref<10x64xf32, #tpu.memory_space<vmem>>, vector<10x64xf32>
    %cst_10 = arith.constant dense<0.000000e+00> : vector<8x64xf32>
    %52 = tpu.matmul %50, %51, %cst_10 {dimension_numbers = #tpu.dot_dimension_numbers<[1], [0], [0], [1], [0, 0, 1, 1], [], []>} : vector<8x10xf32>, vector<10x64xf32>, vector<8x64xf32> -> vector<8x64xf32>
    %53 = tpu.concatenate %42, %44 in 1 : vector<8x32xf32>, vector<8x32xf32> -> vector<8x64xf32>
    %54 = arith.addf %52, %53 : vector<8x64xf32>
    %cst_11 = arith.constant 0.333333343 : f32
    %55 = vector.broadcast %cst_11 : f32 to vector<8x64xf32>
    %56 = arith.mulf %54, %55 : vector<8x64xf32>
    %c0_12 = arith.constant 0 : index
    %c0_13 = arith.constant 0 : index
    %57 = vector.load %arg6[%c0_12, %c0_13] : memref<64x50xf32, #tpu.memory_space<vmem>>, vector<64x50xf32>
    %cst_14 = arith.constant dense<0.000000e+00> : vector<8x50xf32>
    %58 = tpu.matmul %56, %57, %cst_14 {dimension_numbers = #tpu.dot_dimension_numbers<[1], [0], [0], [1], [0, 0, 1, 1], [], []>} : vector<8x64xf32>, vector<64x50xf32>, vector<8x50xf32> -> vector<8x50xf32>
    %c0_15 = arith.constant 0 : index
    %c0_16 = arith.constant 0 : index
    %59 = vector.load %arg3[%c0_15, %c0_16] : memref<8x28xi32, #tpu.memory_space<vmem>>, vector<8x28xi32>
    %60 = tpu.iota {dimensions = array<i32: 1>} : vector<8x28xi32>
    %cst_17 = arith.constant 0.000000e+00 : f32
    %61 = vector.broadcast %cst_17 : f32 to vector<8x28xf32>
    %62 = vector.extract_strided_slice %59 {offsets = [0, 0], sizes = [8, 1], strides = [1, 1]} : vector<8x28xi32> to vector<8x1xi32>
    %63 = vector.broadcast %62 : vector<8x1xi32> to vector<8x50xi32>
    %64 = arith.cmpi eq, %4, %63 : vector<8x50xi32>
    %cst_18 = arith.constant 0.000000e+00 : f32
    %65 = vector.broadcast %cst_18 : f32 to vector<8x50xf32>
    %66 = arith.select %64, %58, %65 : vector<8x50xi1>, vector<8x50xf32>
    %cst_19 = arith.constant dense<0.000000e+00> : vector<8xf32>
    %67 = vector.multi_reduction <add>, %66, %cst_19 [1] : vector<8x50xf32> to vector<8xf32>
    %68 = vector.shape_cast %67 : vector<8xf32> to vector<8x1xf32>
    %c0_i32_20 = arith.constant 0 : i32
    %69 = vector.broadcast %c0_i32_20 : i32 to vector<8x28xi32>
    %70 = arith.cmpi eq, %60, %69 : vector<8x28xi32>
    %71 = vector.shape_cast %68 : vector<8x1xf32> to vector<8x1xf32>
    %72 = vector.broadcast %71 : vector<8x1xf32> to vector<8x28xf32>
    %73 = arith.select %70, %72, %61 : vector<8x28xi1>, vector<8x28xf32>
    %74 = vector.extract_strided_slice %59 {offsets = [0, 1], sizes = [8, 1], strides = [1, 1]} : vector<8x28xi32> to vector<8x1xi32>
    %75 = vector.broadcast %74 : vector<8x1xi32> to vector<8x50xi32>
    %76 = arith.cmpi eq, %4, %75 : vector<8x50xi32>
    %cst_21 = arith.constant 0.000000e+00 : f32
    %77 = vector.broadcast %cst_21 : f32 to vector<8x50xf32>
    %78 = arith.select %76, %58, %77 : vector<8x50xi1>, vector<8x50xf32>
    %cst_22 = arith.constant dense<0.000000e+00> : vector<8xf32>
    %79 = vector.multi_reduction <add>, %78, %cst_22 [1] : vector<8x50xf32> to vector<8xf32>
    %80 = vector.shape_cast %79 : vector<8xf32> to vector<8x1xf32>
    %c1_i32 = arith.constant 1 : i32
    %81 = vector.broadcast %c1_i32 : i32 to vector<8x28xi32>
    %82 = arith.cmpi eq, %60, %81 : vector<8x28xi32>
    %83 = vector.shape_cast %80 : vector<8x1xf32> to vector<8x1xf32>
    %84 = vector.broadcast %83 : vector<8x1xf32> to vector<8x28xf32>
    %85 = arith.select %82, %84, %73 : vector<8x28xi1>, vector<8x28xf32>
    %86 = vector.extract_strided_slice %59 {offsets = [0, 2], sizes = [8, 1], strides = [1, 1]} : vector<8x28xi32> to vector<8x1xi32>
    %87 = vector.broadcast %86 : vector<8x1xi32> to vector<8x50xi32>
    %88 = arith.cmpi eq, %4, %87 : vector<8x50xi32>
    %cst_23 = arith.constant 0.000000e+00 : f32
    %89 = vector.broadcast %cst_23 : f32 to vector<8x50xf32>
    %90 = arith.select %88, %58, %89 : vector<8x50xi1>, vector<8x50xf32>
    %cst_24 = arith.constant dense<0.000000e+00> : vector<8xf32>
    %91 = vector.multi_reduction <add>, %90, %cst_24 [1] : vector<8x50xf32> to vector<8xf32>
    %92 = vector.shape_cast %91 : vector<8xf32> to vector<8x1xf32>
    %c2_i32 = arith.constant 2 : i32
    %93 = vector.broadcast %c2_i32 : i32 to vector<8x28xi32>
    %94 = arith.cmpi eq, %60, %93 : vector<8x28xi32>
    %95 = vector.shape_cast %92 : vector<8x1xf32> to vector<8x1xf32>
    %96 = vector.broadcast %95 : vector<8x1xf32> to vector<8x28xf32>
    %97 = arith.select %94, %96, %85 : vector<8x28xi1>, vector<8x28xf32>
    %98 = vector.extract_strided_slice %59 {offsets = [0, 3], sizes = [8, 1], strides = [1, 1]} : vector<8x28xi32> to vector<8x1xi32>
    %99 = vector.broadcast %98 : vector<8x1xi32> to vector<8x50xi32>
    %100 = arith.cmpi eq, %4, %99 : vector<8x50xi32>
    %cst_25 = arith.constant 0.000000e+00 : f32
    %101 = vector.broadcast %cst_25 : f32 to vector<8x50xf32>
    %102 = arith.select %100, %58, %101 : vector<8x50xi1>, vector<8x50xf32>
    %cst_26 = arith.constant dense<0.000000e+00> : vector<8xf32>
    %103 = vector.multi_reduction <add>, %102, %cst_26 [1] : vector<8x50xf32> to vector<8xf32>
    %104 = vector.shape_cast %103 : vector<8xf32> to vector<8x1xf32>
    %c3_i32 = arith.constant 3 : i32
    %105 = vector.broadcast %c3_i32 : i32 to vector<8x28xi32>
    %106 = arith.cmpi eq, %60, %105 : vector<8x28xi32>
    %107 = vector.shape_cast %104 : vector<8x1xf32> to vector<8x1xf32>
    %108 = vector.broadcast %107 : vector<8x1xf32> to vector<8x28xf32>
    %109 = arith.select %106, %108, %97 : vector<8x28xi1>, vector<8x28xf32>
    %110 = vector.extract_strided_slice %59 {offsets = [0, 4], sizes = [8, 1], strides = [1, 1]} : vector<8x28xi32> to vector<8x1xi32>
    %111 = vector.broadcast %110 : vector<8x1xi32> to vector<8x50xi32>
    %112 = arith.cmpi eq, %4, %111 : vector<8x50xi32>
    %cst_27 = arith.constant 0.000000e+00 : f32
    %113 = vector.broadcast %cst_27 : f32 to vector<8x50xf32>
    %114 = arith.select %112, %58, %113 : vector<8x50xi1>, vector<8x50xf32>
    %cst_28 = arith.constant dense<0.000000e+00> : vector<8xf32>
    %115 = vector.multi_reduction <add>, %114, %cst_28 [1] : vector<8x50xf32> to vector<8xf32>
    %116 = vector.shape_cast %115 : vector<8xf32> to vector<8x1xf32>
    %c4_i32 = arith.constant 4 : i32
    %117 = vector.broadcast %c4_i32 : i32 to vector<8x28xi32>
    %118 = arith.cmpi eq, %60, %117 : vector<8x28xi32>
    %119 = vector.shape_cast %116 : vector<8x1xf32> to vector<8x1xf32>
    %120 = vector.broadcast %119 : vector<8x1xf32> to vector<8x28xf32>
    %121 = arith.select %118, %120, %109 : vector<8x28xi1>, vector<8x28xf32>
    %122 = vector.extract_strided_slice %59 {offsets = [0, 5], sizes = [8, 1], strides = [1, 1]} : vector<8x28xi32> to vector<8x1xi32>
    %123 = vector.broadcast %122 : vector<8x1xi32> to vector<8x50xi32>
    %124 = arith.cmpi eq, %4, %123 : vector<8x50xi32>
    %cst_29 = arith.constant 0.000000e+00 : f32
    %125 = vector.broadcast %cst_29 : f32 to vector<8x50xf32>
    %126 = arith.select %124, %58, %125 : vector<8x50xi1>, vector<8x50xf32>
    %cst_30 = arith.constant dense<0.000000e+00> : vector<8xf32>
    %127 = vector.multi_reduction <add>, %126, %cst_30 [1] : vector<8x50xf32> to vector<8xf32>
    %128 = vector.shape_cast %127 : vector<8xf32> to vector<8x1xf32>
    %c5_i32 = arith.constant 5 : i32
    %129 = vector.broadcast %c5_i32 : i32 to vector<8x28xi32>
    %130 = arith.cmpi eq, %60, %129 : vector<8x28xi32>
    %131 = vector.shape_cast %128 : vector<8x1xf32> to vector<8x1xf32>
    %132 = vector.broadcast %131 : vector<8x1xf32> to vector<8x28xf32>
    %133 = arith.select %130, %132, %121 : vector<8x28xi1>, vector<8x28xf32>
    %134 = vector.extract_strided_slice %59 {offsets = [0, 6], sizes = [8, 1], strides = [1, 1]} : vector<8x28xi32> to vector<8x1xi32>
    %135 = vector.broadcast %134 : vector<8x1xi32> to vector<8x50xi32>
    %136 = arith.cmpi eq, %4, %135 : vector<8x50xi32>
    %cst_31 = arith.constant 0.000000e+00 : f32
    %137 = vector.broadcast %cst_31 : f32 to vector<8x50xf32>
    %138 = arith.select %136, %58, %137 : vector<8x50xi1>, vector<8x50xf32>
    %cst_32 = arith.constant dense<0.000000e+00> : vector<8xf32>
    %139 = vector.multi_reduction <add>, %138, %cst_32 [1] : vector<8x50xf32> to vector<8xf32>
    %140 = vector.shape_cast %139 : vector<8xf32> to vector<8x1xf32>
    %c6_i32 = arith.constant 6 : i32
    %141 = vector.broadcast %c6_i32 : i32 to vector<8x28xi32>
    %142 = arith.cmpi eq, %60, %141 : vector<8x28xi32>
    %143 = vector.shape_cast %140 : vector<8x1xf32> to vector<8x1xf32>
    %144 = vector.broadcast %143 : vector<8x1xf32> to vector<8x28xf32>
    %145 = arith.select %142, %144, %133 : vector<8x28xi1>, vector<8x28xf32>
    %146 = vector.extract_strided_slice %59 {offsets = [0, 7], sizes = [8, 1], strides = [1, 1]} : vector<8x28xi32> to vector<8x1xi32>
    %147 = vector.broadcast %146 : vector<8x1xi32> to vector<8x50xi32>
    %148 = arith.cmpi eq, %4, %147 : vector<8x50xi32>
    %cst_33 = arith.constant 0.000000e+00 : f32
    %149 = vector.broadcast %cst_33 : f32 to vector<8x50xf32>
    %150 = arith.select %148, %58, %149 : vector<8x50xi1>, vector<8x50xf32>
    %cst_34 = arith.constant dense<0.000000e+00> : vector<8xf32>
    %151 = vector.multi_reduction <add>, %150, %cst_34 [1] : vector<8x50xf32> to vector<8xf32>
    %152 = vector.shape_cast %151 : vector<8xf32> to vector<8x1xf32>
    %c7_i32 = arith.constant 7 : i32
    %153 = vector.broadcast %c7_i32 : i32 to vector<8x28xi32>
    %154 = arith.cmpi eq, %60, %153 : vector<8x28xi32>
    %155 = vector.shape_cast %152 : vector<8x1xf32> to vector<8x1xf32>
    %156 = vector.broadcast %155 : vector<8x1xf32> to vector<8x28xf32>
    %157 = arith.select %154, %156, %145 : vector<8x28xi1>, vector<8x28xf32>
    %158 = vector.extract_strided_slice %59 {offsets = [0, 8], sizes = [8, 1], strides = [1, 1]} : vector<8x28xi32> to vector<8x1xi32>
    %159 = vector.broadcast %158 : vector<8x1xi32> to vector<8x50xi32>
    %160 = arith.cmpi eq, %4, %159 : vector<8x50xi32>
    %cst_35 = arith.constant 0.000000e+00 : f32
    %161 = vector.broadcast %cst_35 : f32 to vector<8x50xf32>
    %162 = arith.select %160, %58, %161 : vector<8x50xi1>, vector<8x50xf32>
    %cst_36 = arith.constant dense<0.000000e+00> : vector<8xf32>
    %163 = vector.multi_reduction <add>, %162, %cst_36 [1] : vector<8x50xf32> to vector<8xf32>
    %164 = vector.shape_cast %163 : vector<8xf32> to vector<8x1xf32>
    %c8_i32 = arith.constant 8 : i32
    %165 = vector.broadcast %c8_i32 : i32 to vector<8x28xi32>
    %166 = arith.cmpi eq, %60, %165 : vector<8x28xi32>
    %167 = vector.shape_cast %164 : vector<8x1xf32> to vector<8x1xf32>
    %168 = vector.broadcast %167 : vector<8x1xf32> to vector<8x28xf32>
    %169 = arith.select %166, %168, %157 : vector<8x28xi1>, vector<8x28xf32>
    %170 = vector.extract_strided_slice %59 {offsets = [0, 9], sizes = [8, 1], strides = [1, 1]} : vector<8x28xi32> to vector<8x1xi32>
    %171 = vector.broadcast %170 : vector<8x1xi32> to vector<8x50xi32>
    %172 = arith.cmpi eq, %4, %171 : vector<8x50xi32>
    %cst_37 = arith.constant 0.000000e+00 : f32
    %173 = vector.broadcast %cst_37 : f32 to vector<8x50xf32>
    %174 = arith.select %172, %58, %173 : vector<8x50xi1>, vector<8x50xf32>
    %cst_38 = arith.constant dense<0.000000e+00> : vector<8xf32>
    %175 = vector.multi_reduction <add>, %174, %cst_38 [1] : vector<8x50xf32> to vector<8xf32>
    %176 = vector.shape_cast %175 : vector<8xf32> to vector<8x1xf32>
    %c9_i32 = arith.constant 9 : i32
    %177 = vector.broadcast %c9_i32 : i32 to vector<8x28xi32>
    %178 = arith.cmpi eq, %60, %177 : vector<8x28xi32>
    %179 = vector.shape_cast %176 : vector<8x1xf32> to vector<8x1xf32>
    %180 = vector.broadcast %179 : vector<8x1xf32> to vector<8x28xf32>
    %181 = arith.select %178, %180, %169 : vector<8x28xi1>, vector<8x28xf32>
    %182 = vector.extract_strided_slice %59 {offsets = [0, 10], sizes = [8, 1], strides = [1, 1]} : vector<8x28xi32> to vector<8x1xi32>
    %183 = vector.broadcast %182 : vector<8x1xi32> to vector<8x50xi32>
    %184 = arith.cmpi eq, %4, %183 : vector<8x50xi32>
    %cst_39 = arith.constant 0.000000e+00 : f32
    %185 = vector.broadcast %cst_39 : f32 to vector<8x50xf32>
    %186 = arith.select %184, %58, %185 : vector<8x50xi1>, vector<8x50xf32>
    %cst_40 = arith.constant dense<0.000000e+00> : vector<8xf32>
    %187 = vector.multi_reduction <add>, %186, %cst_40 [1] : vector<8x50xf32> to vector<8xf32>
    %188 = vector.shape_cast %187 : vector<8xf32> to vector<8x1xf32>
    %c10_i32 = arith.constant 10 : i32
    %189 = vector.broadcast %c10_i32 : i32 to vector<8x28xi32>
    %190 = arith.cmpi eq, %60, %189 : vector<8x28xi32>
    %191 = vector.shape_cast %188 : vector<8x1xf32> to vector<8x1xf32>
    %192 = vector.broadcast %191 : vector<8x1xf32> to vector<8x28xf32>
    %193 = arith.select %190, %192, %181 : vector<8x28xi1>, vector<8x28xf32>
    %194 = vector.extract_strided_slice %59 {offsets = [0, 11], sizes = [8, 1], strides = [1, 1]} : vector<8x28xi32> to vector<8x1xi32>
    %195 = vector.broadcast %194 : vector<8x1xi32> to vector<8x50xi32>
    %196 = arith.cmpi eq, %4, %195 : vector<8x50xi32>
    %cst_41 = arith.constant 0.000000e+00 : f32
    %197 = vector.broadcast %cst_41 : f32 to vector<8x50xf32>
    %198 = arith.select %196, %58, %197 : vector<8x50xi1>, vector<8x50xf32>
    %cst_42 = arith.constant dense<0.000000e+00> : vector<8xf32>
    %199 = vector.multi_reduction <add>, %198, %cst_42 [1] : vector<8x50xf32> to vector<8xf32>
    %200 = vector.shape_cast %199 : vector<8xf32> to vector<8x1xf32>
    %c11_i32 = arith.constant 11 : i32
    %201 = vector.broadcast %c11_i32 : i32 to vector<8x28xi32>
    %202 = arith.cmpi eq, %60, %201 : vector<8x28xi32>
    %203 = vector.shape_cast %200 : vector<8x1xf32> to vector<8x1xf32>
    %204 = vector.broadcast %203 : vector<8x1xf32> to vector<8x28xf32>
    %205 = arith.select %202, %204, %193 : vector<8x28xi1>, vector<8x28xf32>
    %206 = vector.extract_strided_slice %59 {offsets = [0, 12], sizes = [8, 1], strides = [1, 1]} : vector<8x28xi32> to vector<8x1xi32>
    %207 = vector.broadcast %206 : vector<8x1xi32> to vector<8x50xi32>
    %208 = arith.cmpi eq, %4, %207 : vector<8x50xi32>
    %cst_43 = arith.constant 0.000000e+00 : f32
    %209 = vector.broadcast %cst_43 : f32 to vector<8x50xf32>
    %210 = arith.select %208, %58, %209 : vector<8x50xi1>, vector<8x50xf32>
    %cst_44 = arith.constant dense<0.000000e+00> : vector<8xf32>
    %211 = vector.multi_reduction <add>, %210, %cst_44 [1] : vector<8x50xf32> to vector<8xf32>
    %212 = vector.shape_cast %211 : vector<8xf32> to vector<8x1xf32>
    %c12_i32 = arith.constant 12 : i32
    %213 = vector.broadcast %c12_i32 : i32 to vector<8x28xi32>
    %214 = arith.cmpi eq, %60, %213 : vector<8x28xi32>
    %215 = vector.shape_cast %212 : vector<8x1xf32> to vector<8x1xf32>
    %216 = vector.broadcast %215 : vector<8x1xf32> to vector<8x28xf32>
    %217 = arith.select %214, %216, %205 : vector<8x28xi1>, vector<8x28xf32>
    %218 = vector.extract_strided_slice %59 {offsets = [0, 13], sizes = [8, 1], strides = [1, 1]} : vector<8x28xi32> to vector<8x1xi32>
    %219 = vector.broadcast %218 : vector<8x1xi32> to vector<8x50xi32>
    %220 = arith.cmpi eq, %4, %219 : vector<8x50xi32>
    %cst_45 = arith.constant 0.000000e+00 : f32
    %221 = vector.broadcast %cst_45 : f32 to vector<8x50xf32>
    %222 = arith.select %220, %58, %221 : vector<8x50xi1>, vector<8x50xf32>
    %cst_46 = arith.constant dense<0.000000e+00> : vector<8xf32>
    %223 = vector.multi_reduction <add>, %222, %cst_46 [1] : vector<8x50xf32> to vector<8xf32>
    %224 = vector.shape_cast %223 : vector<8xf32> to vector<8x1xf32>
    %c13_i32 = arith.constant 13 : i32
    %225 = vector.broadcast %c13_i32 : i32 to vector<8x28xi32>
    %226 = arith.cmpi eq, %60, %225 : vector<8x28xi32>
    %227 = vector.shape_cast %224 : vector<8x1xf32> to vector<8x1xf32>
    %228 = vector.broadcast %227 : vector<8x1xf32> to vector<8x28xf32>
    %229 = arith.select %226, %228, %217 : vector<8x28xi1>, vector<8x28xf32>
    %230 = vector.extract_strided_slice %59 {offsets = [0, 14], sizes = [8, 1], strides = [1, 1]} : vector<8x28xi32> to vector<8x1xi32>
    %231 = vector.broadcast %230 : vector<8x1xi32> to vector<8x50xi32>
    %232 = arith.cmpi eq, %4, %231 : vector<8x50xi32>
    %cst_47 = arith.constant 0.000000e+00 : f32
    %233 = vector.broadcast %cst_47 : f32 to vector<8x50xf32>
    %234 = arith.select %232, %58, %233 : vector<8x50xi1>, vector<8x50xf32>
    %cst_48 = arith.constant dense<0.000000e+00> : vector<8xf32>
    %235 = vector.multi_reduction <add>, %234, %cst_48 [1] : vector<8x50xf32> to vector<8xf32>
    %236 = vector.shape_cast %235 : vector<8xf32> to vector<8x1xf32>
    %c14_i32 = arith.constant 14 : i32
    %237 = vector.broadcast %c14_i32 : i32 to vector<8x28xi32>
    %238 = arith.cmpi eq, %60, %237 : vector<8x28xi32>
    %239 = vector.shape_cast %236 : vector<8x1xf32> to vector<8x1xf32>
    %240 = vector.broadcast %239 : vector<8x1xf32> to vector<8x28xf32>
    %241 = arith.select %238, %240, %229 : vector<8x28xi1>, vector<8x28xf32>
    %242 = vector.extract_strided_slice %59 {offsets = [0, 15], sizes = [8, 1], strides = [1, 1]} : vector<8x28xi32> to vector<8x1xi32>
    %243 = vector.broadcast %242 : vector<8x1xi32> to vector<8x50xi32>
    %244 = arith.cmpi eq, %4, %243 : vector<8x50xi32>
    %cst_49 = arith.constant 0.000000e+00 : f32
    %245 = vector.broadcast %cst_49 : f32 to vector<8x50xf32>
    %246 = arith.select %244, %58, %245 : vector<8x50xi1>, vector<8x50xf32>
    %cst_50 = arith.constant dense<0.000000e+00> : vector<8xf32>
    %247 = vector.multi_reduction <add>, %246, %cst_50 [1] : vector<8x50xf32> to vector<8xf32>
    %248 = vector.shape_cast %247 : vector<8xf32> to vector<8x1xf32>
    %c15_i32 = arith.constant 15 : i32
    %249 = vector.broadcast %c15_i32 : i32 to vector<8x28xi32>
    %250 = arith.cmpi eq, %60, %249 : vector<8x28xi32>
    %251 = vector.shape_cast %248 : vector<8x1xf32> to vector<8x1xf32>
    %252 = vector.broadcast %251 : vector<8x1xf32> to vector<8x28xf32>
    %253 = arith.select %250, %252, %241 : vector<8x28xi1>, vector<8x28xf32>
    %254 = vector.extract_strided_slice %59 {offsets = [0, 16], sizes = [8, 1], strides = [1, 1]} : vector<8x28xi32> to vector<8x1xi32>
    %255 = vector.broadcast %254 : vector<8x1xi32> to vector<8x50xi32>
    %256 = arith.cmpi eq, %4, %255 : vector<8x50xi32>
    %cst_51 = arith.constant 0.000000e+00 : f32
    %257 = vector.broadcast %cst_51 : f32 to vector<8x50xf32>
    %258 = arith.select %256, %58, %257 : vector<8x50xi1>, vector<8x50xf32>
    %cst_52 = arith.constant dense<0.000000e+00> : vector<8xf32>
    %259 = vector.multi_reduction <add>, %258, %cst_52 [1] : vector<8x50xf32> to vector<8xf32>
    %260 = vector.shape_cast %259 : vector<8xf32> to vector<8x1xf32>
    %c16_i32 = arith.constant 16 : i32
    %261 = vector.broadcast %c16_i32 : i32 to vector<8x28xi32>
    %262 = arith.cmpi eq, %60, %261 : vector<8x28xi32>
    %263 = vector.shape_cast %260 : vector<8x1xf32> to vector<8x1xf32>
    %264 = vector.broadcast %263 : vector<8x1xf32> to vector<8x28xf32>
    %265 = arith.select %262, %264, %253 : vector<8x28xi1>, vector<8x28xf32>
    %266 = vector.extract_strided_slice %59 {offsets = [0, 17], sizes = [8, 1], strides = [1, 1]} : vector<8x28xi32> to vector<8x1xi32>
    %267 = vector.broadcast %266 : vector<8x1xi32> to vector<8x50xi32>
    %268 = arith.cmpi eq, %4, %267 : vector<8x50xi32>
    %cst_53 = arith.constant 0.000000e+00 : f32
    %269 = vector.broadcast %cst_53 : f32 to vector<8x50xf32>
    %270 = arith.select %268, %58, %269 : vector<8x50xi1>, vector<8x50xf32>
    %cst_54 = arith.constant dense<0.000000e+00> : vector<8xf32>
    %271 = vector.multi_reduction <add>, %270, %cst_54 [1] : vector<8x50xf32> to vector<8xf32>
    %272 = vector.shape_cast %271 : vector<8xf32> to vector<8x1xf32>
    %c17_i32 = arith.constant 17 : i32
    %273 = vector.broadcast %c17_i32 : i32 to vector<8x28xi32>
    %274 = arith.cmpi eq, %60, %273 : vector<8x28xi32>
    %275 = vector.shape_cast %272 : vector<8x1xf32> to vector<8x1xf32>
    %276 = vector.broadcast %275 : vector<8x1xf32> to vector<8x28xf32>
    %277 = arith.select %274, %276, %265 : vector<8x28xi1>, vector<8x28xf32>
    %278 = vector.extract_strided_slice %59 {offsets = [0, 18], sizes = [8, 1], strides = [1, 1]} : vector<8x28xi32> to vector<8x1xi32>
    %279 = vector.broadcast %278 : vector<8x1xi32> to vector<8x50xi32>
    %280 = arith.cmpi eq, %4, %279 : vector<8x50xi32>
    %cst_55 = arith.constant 0.000000e+00 : f32
    %281 = vector.broadcast %cst_55 : f32 to vector<8x50xf32>
    %282 = arith.select %280, %58, %281 : vector<8x50xi1>, vector<8x50xf32>
    %cst_56 = arith.constant dense<0.000000e+00> : vector<8xf32>
    %283 = vector.multi_reduction <add>, %282, %cst_56 [1] : vector<8x50xf32> to vector<8xf32>
    %284 = vector.shape_cast %283 : vector<8xf32> to vector<8x1xf32>
    %c18_i32 = arith.constant 18 : i32
    %285 = vector.broadcast %c18_i32 : i32 to vector<8x28xi32>
    %286 = arith.cmpi eq, %60, %285 : vector<8x28xi32>
    %287 = vector.shape_cast %284 : vector<8x1xf32> to vector<8x1xf32>
    %288 = vector.broadcast %287 : vector<8x1xf32> to vector<8x28xf32>
    %289 = arith.select %286, %288, %277 : vector<8x28xi1>, vector<8x28xf32>
    %290 = vector.extract_strided_slice %59 {offsets = [0, 19], sizes = [8, 1], strides = [1, 1]} : vector<8x28xi32> to vector<8x1xi32>
    %291 = vector.broadcast %290 : vector<8x1xi32> to vector<8x50xi32>
    %292 = arith.cmpi eq, %4, %291 : vector<8x50xi32>
    %cst_57 = arith.constant 0.000000e+00 : f32
    %293 = vector.broadcast %cst_57 : f32 to vector<8x50xf32>
    %294 = arith.select %292, %58, %293 : vector<8x50xi1>, vector<8x50xf32>
    %cst_58 = arith.constant dense<0.000000e+00> : vector<8xf32>
    %295 = vector.multi_reduction <add>, %294, %cst_58 [1] : vector<8x50xf32> to vector<8xf32>
    %296 = vector.shape_cast %295 : vector<8xf32> to vector<8x1xf32>
    %c19_i32 = arith.constant 19 : i32
    %297 = vector.broadcast %c19_i32 : i32 to vector<8x28xi32>
    %298 = arith.cmpi eq, %60, %297 : vector<8x28xi32>
    %299 = vector.shape_cast %296 : vector<8x1xf32> to vector<8x1xf32>
    %300 = vector.broadcast %299 : vector<8x1xf32> to vector<8x28xf32>
    %301 = arith.select %298, %300, %289 : vector<8x28xi1>, vector<8x28xf32>
    %302 = vector.extract_strided_slice %59 {offsets = [0, 20], sizes = [8, 1], strides = [1, 1]} : vector<8x28xi32> to vector<8x1xi32>
    %303 = vector.broadcast %302 : vector<8x1xi32> to vector<8x50xi32>
    %304 = arith.cmpi eq, %4, %303 : vector<8x50xi32>
    %cst_59 = arith.constant 0.000000e+00 : f32
    %305 = vector.broadcast %cst_59 : f32 to vector<8x50xf32>
    %306 = arith.select %304, %58, %305 : vector<8x50xi1>, vector<8x50xf32>
    %cst_60 = arith.constant dense<0.000000e+00> : vector<8xf32>
    %307 = vector.multi_reduction <add>, %306, %cst_60 [1] : vector<8x50xf32> to vector<8xf32>
    %308 = vector.shape_cast %307 : vector<8xf32> to vector<8x1xf32>
    %c20_i32 = arith.constant 20 : i32
    %309 = vector.broadcast %c20_i32 : i32 to vector<8x28xi32>
    %310 = arith.cmpi eq, %60, %309 : vector<8x28xi32>
    %311 = vector.shape_cast %308 : vector<8x1xf32> to vector<8x1xf32>
    %312 = vector.broadcast %311 : vector<8x1xf32> to vector<8x28xf32>
    %313 = arith.select %310, %312, %301 : vector<8x28xi1>, vector<8x28xf32>
    %314 = vector.extract_strided_slice %59 {offsets = [0, 21], sizes = [8, 1], strides = [1, 1]} : vector<8x28xi32> to vector<8x1xi32>
    %315 = vector.broadcast %314 : vector<8x1xi32> to vector<8x50xi32>
    %316 = arith.cmpi eq, %4, %315 : vector<8x50xi32>
    %cst_61 = arith.constant 0.000000e+00 : f32
    %317 = vector.broadcast %cst_61 : f32 to vector<8x50xf32>
    %318 = arith.select %316, %58, %317 : vector<8x50xi1>, vector<8x50xf32>
    %cst_62 = arith.constant dense<0.000000e+00> : vector<8xf32>
    %319 = vector.multi_reduction <add>, %318, %cst_62 [1] : vector<8x50xf32> to vector<8xf32>
    %320 = vector.shape_cast %319 : vector<8xf32> to vector<8x1xf32>
    %c21_i32 = arith.constant 21 : i32
    %321 = vector.broadcast %c21_i32 : i32 to vector<8x28xi32>
    %322 = arith.cmpi eq, %60, %321 : vector<8x28xi32>
    %323 = vector.shape_cast %320 : vector<8x1xf32> to vector<8x1xf32>
    %324 = vector.broadcast %323 : vector<8x1xf32> to vector<8x28xf32>
    %325 = arith.select %322, %324, %313 : vector<8x28xi1>, vector<8x28xf32>
    %326 = vector.extract_strided_slice %59 {offsets = [0, 22], sizes = [8, 1], strides = [1, 1]} : vector<8x28xi32> to vector<8x1xi32>
    %327 = vector.broadcast %326 : vector<8x1xi32> to vector<8x50xi32>
    %328 = arith.cmpi eq, %4, %327 : vector<8x50xi32>
    %cst_63 = arith.constant 0.000000e+00 : f32
    %329 = vector.broadcast %cst_63 : f32 to vector<8x50xf32>
    %330 = arith.select %328, %58, %329 : vector<8x50xi1>, vector<8x50xf32>
    %cst_64 = arith.constant dense<0.000000e+00> : vector<8xf32>
    %331 = vector.multi_reduction <add>, %330, %cst_64 [1] : vector<8x50xf32> to vector<8xf32>
    %332 = vector.shape_cast %331 : vector<8xf32> to vector<8x1xf32>
    %c22_i32 = arith.constant 22 : i32
    %333 = vector.broadcast %c22_i32 : i32 to vector<8x28xi32>
    %334 = arith.cmpi eq, %60, %333 : vector<8x28xi32>
    %335 = vector.shape_cast %332 : vector<8x1xf32> to vector<8x1xf32>
    %336 = vector.broadcast %335 : vector<8x1xf32> to vector<8x28xf32>
    %337 = arith.select %334, %336, %325 : vector<8x28xi1>, vector<8x28xf32>
    %338 = vector.extract_strided_slice %59 {offsets = [0, 23], sizes = [8, 1], strides = [1, 1]} : vector<8x28xi32> to vector<8x1xi32>
    %339 = vector.broadcast %338 : vector<8x1xi32> to vector<8x50xi32>
    %340 = arith.cmpi eq, %4, %339 : vector<8x50xi32>
    %cst_65 = arith.constant 0.000000e+00 : f32
    %341 = vector.broadcast %cst_65 : f32 to vector<8x50xf32>
    %342 = arith.select %340, %58, %341 : vector<8x50xi1>, vector<8x50xf32>
    %cst_66 = arith.constant dense<0.000000e+00> : vector<8xf32>
    %343 = vector.multi_reduction <add>, %342, %cst_66 [1] : vector<8x50xf32> to vector<8xf32>
    %344 = vector.shape_cast %343 : vector<8xf32> to vector<8x1xf32>
    %c23_i32 = arith.constant 23 : i32
    %345 = vector.broadcast %c23_i32 : i32 to vector<8x28xi32>
    %346 = arith.cmpi eq, %60, %345 : vector<8x28xi32>
    %347 = vector.shape_cast %344 : vector<8x1xf32> to vector<8x1xf32>
    %348 = vector.broadcast %347 : vector<8x1xf32> to vector<8x28xf32>
    %349 = arith.select %346, %348, %337 : vector<8x28xi1>, vector<8x28xf32>
    %350 = vector.extract_strided_slice %59 {offsets = [0, 24], sizes = [8, 1], strides = [1, 1]} : vector<8x28xi32> to vector<8x1xi32>
    %351 = vector.broadcast %350 : vector<8x1xi32> to vector<8x50xi32>
    %352 = arith.cmpi eq, %4, %351 : vector<8x50xi32>
    %cst_67 = arith.constant 0.000000e+00 : f32
    %353 = vector.broadcast %cst_67 : f32 to vector<8x50xf32>
    %354 = arith.select %352, %58, %353 : vector<8x50xi1>, vector<8x50xf32>
    %cst_68 = arith.constant dense<0.000000e+00> : vector<8xf32>
    %355 = vector.multi_reduction <add>, %354, %cst_68 [1] : vector<8x50xf32> to vector<8xf32>
    %356 = vector.shape_cast %355 : vector<8xf32> to vector<8x1xf32>
    %c24_i32 = arith.constant 24 : i32
    %357 = vector.broadcast %c24_i32 : i32 to vector<8x28xi32>
    %358 = arith.cmpi eq, %60, %357 : vector<8x28xi32>
    %359 = vector.shape_cast %356 : vector<8x1xf32> to vector<8x1xf32>
    %360 = vector.broadcast %359 : vector<8x1xf32> to vector<8x28xf32>
    %361 = arith.select %358, %360, %349 : vector<8x28xi1>, vector<8x28xf32>
    %362 = vector.extract_strided_slice %59 {offsets = [0, 25], sizes = [8, 1], strides = [1, 1]} : vector<8x28xi32> to vector<8x1xi32>
    %363 = vector.broadcast %362 : vector<8x1xi32> to vector<8x50xi32>
    %364 = arith.cmpi eq, %4, %363 : vector<8x50xi32>
    %cst_69 = arith.constant 0.000000e+00 : f32
    %365 = vector.broadcast %cst_69 : f32 to vector<8x50xf32>
    %366 = arith.select %364, %58, %365 : vector<8x50xi1>, vector<8x50xf32>
    %cst_70 = arith.constant dense<0.000000e+00> : vector<8xf32>
    %367 = vector.multi_reduction <add>, %366, %cst_70 [1] : vector<8x50xf32> to vector<8xf32>
    %368 = vector.shape_cast %367 : vector<8xf32> to vector<8x1xf32>
    %c25_i32 = arith.constant 25 : i32
    %369 = vector.broadcast %c25_i32 : i32 to vector<8x28xi32>
    %370 = arith.cmpi eq, %60, %369 : vector<8x28xi32>
    %371 = vector.shape_cast %368 : vector<8x1xf32> to vector<8x1xf32>
    %372 = vector.broadcast %371 : vector<8x1xf32> to vector<8x28xf32>
    %373 = arith.select %370, %372, %361 : vector<8x28xi1>, vector<8x28xf32>
    %374 = vector.extract_strided_slice %59 {offsets = [0, 26], sizes = [8, 1], strides = [1, 1]} : vector<8x28xi32> to vector<8x1xi32>
    %375 = vector.broadcast %374 : vector<8x1xi32> to vector<8x50xi32>
    %376 = arith.cmpi eq, %4, %375 : vector<8x50xi32>
    %cst_71 = arith.constant 0.000000e+00 : f32
    %377 = vector.broadcast %cst_71 : f32 to vector<8x50xf32>
    %378 = arith.select %376, %58, %377 : vector<8x50xi1>, vector<8x50xf32>
    %cst_72 = arith.constant dense<0.000000e+00> : vector<8xf32>
    %379 = vector.multi_reduction <add>, %378, %cst_72 [1] : vector<8x50xf32> to vector<8xf32>
    %380 = vector.shape_cast %379 : vector<8xf32> to vector<8x1xf32>
    %c26_i32 = arith.constant 26 : i32
    %381 = vector.broadcast %c26_i32 : i32 to vector<8x28xi32>
    %382 = arith.cmpi eq, %60, %381 : vector<8x28xi32>
    %383 = vector.shape_cast %380 : vector<8x1xf32> to vector<8x1xf32>
    %384 = vector.broadcast %383 : vector<8x1xf32> to vector<8x28xf32>
    %385 = arith.select %382, %384, %373 : vector<8x28xi1>, vector<8x28xf32>
    %386 = vector.extract_strided_slice %59 {offsets = [0, 27], sizes = [8, 1], strides = [1, 1]} : vector<8x28xi32> to vector<8x1xi32>
    %387 = vector.broadcast %386 : vector<8x1xi32> to vector<8x50xi32>
    %388 = arith.cmpi eq, %4, %387 : vector<8x50xi32>
    %cst_73 = arith.constant 0.000000e+00 : f32
    %389 = vector.broadcast %cst_73 : f32 to vector<8x50xf32>
    %390 = arith.select %388, %58, %389 : vector<8x50xi1>, vector<8x50xf32>
    %cst_74 = arith.constant dense<0.000000e+00> : vector<8xf32>
    %391 = vector.multi_reduction <add>, %390, %cst_74 [1] : vector<8x50xf32> to vector<8xf32>
    %392 = vector.shape_cast %391 : vector<8xf32> to vector<8x1xf32>
    %c27_i32 = arith.constant 27 : i32
    %393 = vector.broadcast %c27_i32 : i32 to vector<8x28xi32>
    %394 = arith.cmpi eq, %60, %393 : vector<8x28xi32>
    %395 = vector.shape_cast %392 : vector<8x1xf32> to vector<8x1xf32>
    %396 = vector.broadcast %395 : vector<8x1xf32> to vector<8x28xf32>
    %397 = arith.select %394, %396, %385 : vector<8x28xi1>, vector<8x28xf32>
    %cst_75 = arith.constant 0.000000e+00 : f32
    %398 = vector.broadcast %cst_75 : f32 to vector<8x28xf32>
    %399 = arith.subf %398, %397 : vector<8x28xf32>
    %cst_76 = arith.constant 0.000000e+00 : f32
    %400 = vector.broadcast %cst_76 : f32 to vector<8x28xf32>
    %401 = arith.maximumf %399, %400 : vector<8x28xf32>
    %402 = math.absf %399 : vector<8x28xf32>
    %cst_77 = arith.constant 0.000000e+00 : f32
    %403 = vector.broadcast %cst_77 : f32 to vector<8x28xf32>
    %404 = arith.subf %403, %402 : vector<8x28xf32>
    %405 = math.exp %404 : vector<8x28xf32>
    %406 = math.log1p %405 : vector<8x28xf32>
    %407 = arith.addf %401, %406 : vector<8x28xf32>
    %cst_78 = arith.constant 0.000000e+00 : f32
    %408 = vector.broadcast %cst_78 : f32 to vector<8x28xf32>
    %409 = arith.subf %408, %407 : vector<8x28xf32>
    %cst_79 = arith.constant -1.000000e+02 : f32
    %410 = vector.broadcast %cst_79 : f32 to vector<8x28xf32>
    %411 = arith.maximumf %409, %410 : vector<8x28xf32>
    %cst_80 = arith.constant 0.000000e+00 : f32
    %412 = vector.broadcast %cst_80 : f32 to vector<8x28xf32>
    %413 = arith.maximumf %397, %412 : vector<8x28xf32>
    %414 = math.absf %397 : vector<8x28xf32>
    %cst_81 = arith.constant 0.000000e+00 : f32
    %415 = vector.broadcast %cst_81 : f32 to vector<8x28xf32>
    %416 = arith.subf %415, %414 : vector<8x28xf32>
    %417 = math.exp %416 : vector<8x28xf32>
    %418 = math.log1p %417 : vector<8x28xf32>
    %419 = arith.addf %413, %418 : vector<8x28xf32>
    %cst_82 = arith.constant 0.000000e+00 : f32
    %420 = vector.broadcast %cst_82 : f32 to vector<8x28xf32>
    %421 = arith.subf %420, %419 : vector<8x28xf32>
    %cst_83 = arith.constant -1.000000e+02 : f32
    %422 = vector.broadcast %cst_83 : f32 to vector<8x28xf32>
    %423 = arith.maximumf %421, %422 : vector<8x28xf32>
    %c3_i32_84 = arith.constant 3 : i32
    %424 = vector.broadcast %c3_i32_84 : i32 to vector<8x28xi32>
    %425 = arith.cmpi slt, %60, %424 : vector<8x28xi32>
    %426 = arith.select %425, %411, %423 : vector<8x28xi1>, vector<8x28xf32>
    %cst_85 = arith.constant 0.000000e+00 : f32
    %427 = vector.broadcast %cst_85 : f32 to vector<8x28xf32>
    %428 = arith.subf %427, %426 : vector<8x28xf32>
    %c1_i32_86 = arith.constant 1 : i32
    %429 = arith.muli %arg0, %c1_i32_86 : i32
    %430 = arith.addi %429, %arg1 : i32
    %c8_i32_87 = arith.constant 8 : i32
    %431 = arith.muli %430, %c8_i32_87 : i32
    %432 = tpu.iota {dimensions = array<i32: 0>} : vector<8x28xi32>
    %433 = vector.broadcast %431 : i32 to vector<8x28xi32>
    %434 = arith.addi %432, %433 : vector<8x28xi32>
    %c2_i32_88 = arith.constant 2 : i32
    %435 = vector.broadcast %c2_i32_88 : i32 to vector<8x28xi32>
    %436 = arith.cmpi slt, %434, %435 : vector<8x28xi32>
    %cst_89 = arith.constant 0.000000e+00 : f32
    %437 = vector.broadcast %cst_89 : f32 to vector<8x28xf32>
    %438 = arith.select %436, %428, %437 : vector<8x28xi1>, vector<8x28xf32>
    %439 = vector.shape_cast %438 : vector<8x28xf32> to vector<1x8x28xf32>
    %cst_90 = arith.constant dense<0.000000e+00> : vector<1xf32>
    %440 = vector.multi_reduction <add>, %439, %cst_90 [1, 2] : vector<1x8x28xf32> to vector<1xf32>
    %441 = vector.shape_cast %440 : vector<1xf32> to vector<1x1x1xf32>
    %442 = vector.extract %441[0, 0, 0] : f32 from vector<1x1x1xf32>
    %c0_91 = arith.constant 0 : index
    %c0_92 = arith.constant 0 : index
    %443 = vector.load %arg7[%c0_91, %c0_92] : memref<1x128xf32, #tpu.memory_space<vmem>>, vector<1x128xf32>
    %444 = vector.broadcast %442 : f32 to vector<1x128xf32>
    %445 = arith.addf %443, %444 : vector<1x128xf32>
    %c0_93 = arith.constant 0 : index
    %c0_94 = arith.constant 0 : index
    %446 = vector.load %arg7[%c0_93, %c0_94] : memref<1x128xf32, #tpu.memory_space<vmem>>, vector<1x128xf32>
    tpu.vector_store %arg7[%c0_93, %c0_94], %445 {strides = array<i32>} : memref<1x128xf32, #tpu.memory_space<vmem>>, vector<1x128xf32>,
    return
  }
  func.func @transform_0(%arg0: i32, %arg1: i32) -> (i32, i32) {
    %c1_i32 = arith.constant 1 : i32
    %0 = arith.muli %arg0, %c1_i32 : i32
    %1 = arith.addi %0, %arg1 : i32
    %c0_i32 = arith.constant 0 : i32
    %c0_i32_0 = arith.constant 0 : i32
    return %1, %c0_i32 : i32, i32
  }
  func.func @transform_1(%arg0: i32, %arg1: i32) -> (i32, i32) {
    %c1_i32 = arith.constant 1 : i32
    %0 = arith.muli %arg0, %c1_i32 : i32
    %1 = arith.addi %0, %arg1 : i32
    %c0_i32 = arith.constant 0 : i32
    %c0_i32_0 = arith.constant 0 : i32
    return %1, %c0_i32 : i32, i32
  }
  func.func @transform_2(%arg0: i32, %arg1: i32) -> (i32, i32) {
    %c0_i32 = arith.constant 0 : i32
    %c0_i32_0 = arith.constant 0 : i32
    %c0_i32_1 = arith.constant 0 : i32
    return %c0_i32, %c0_i32_0 : i32, i32
  }
  func.func @transform_3(%arg0: i32, %arg1: i32) -> (i32, i32) {
    %c0_i32 = arith.constant 0 : i32
    %c0_i32_0 = arith.constant 0 : i32
    %c0_i32_1 = arith.constant 0 : i32
    return %c0_i32, %c0_i32_0 : i32, i32
  }
  func.func @transform_4(%arg0: i32, %arg1: i32) -> (i32, i32) {
    %c0_i32 = arith.constant 0 : i32
    %c0_i32_0 = arith.constant 0 : i32
    %c0_i32_1 = arith.constant 0 : i32
    return %c0_i32, %c0_i32_0 : i32, i32
  }
  func.func @transform_5(%arg0: i32, %arg1: i32) -> (i32, i32) {
    %c0_i32 = arith.constant 0 : i32
    %c0_i32_0 = arith.constant 0 : i32
    return %c0_i32, %arg0 : i32, i32
  }
}

module attributes {stable_mosaic.version = 11 : i64} {
  func.func @_asm2vec_loss_kernel(%arg0: i32, %arg1: i32, %arg2: memref<8x7xi32, #tpu.memory_space<vmem>>, %arg3: memref<8x28xi32, #tpu.memory_space<vmem>>, %arg4: memref<50x32xf32, #tpu.memory_space<vmem>>, %arg5: memref<10x64xf32, #tpu.memory_space<vmem>>, %arg6: memref<64x50xf32, #tpu.memory_space<vmem>>, %arg7: memref<1x128xf32, #tpu.memory_space<vmem>>) attributes {dimension_semantics = [#tpu.dimension_semantics<parallel>, #tpu.dimension_semantics<arbitrary>], iteration_bounds = array<i64: 2, 1>, scalar_prefetch = 0 : i64, scratch_operands = 0 : i64, tpu.core_type = #tpu.core_type<tc>, window_params = [{transform_indices = @transform_0, window_bounds = array<i64: 8, 7>}, {transform_indices = @transform_1, window_bounds = array<i64: 8, 28>}, {pipeline_mode = #tpu.pipeline_mode<synchronous>, transform_indices = @transform_2, window_bounds = array<i64: 50, 32>}, {pipeline_mode = #tpu.pipeline_mode<synchronous>, transform_indices = @transform_3, window_bounds = array<i64: 10, 64>}, {pipeline_mode = #tpu.pipeline_mode<synchronous>, transform_indices = @transform_4, window_bounds = array<i64: 64, 50>}, {transform_indices = @transform_5, window_bounds = array<i64: 1, 128>}]} {
    %c0_i32 = arith.constant 0 : i32
    %0 = arith.cmpi eq, %arg1, %c0_i32 : i32
    %1 = arith.extui %0 : i1 to i32
    %c0_i32_0 = arith.constant 0 : i32
    %2 = arith.cmpi ne, %1, %c0_i32_0 : i32
    scf.if %2 {
      %cst_95 = arith.constant 0.000000e+00 : f32
      %447 = vector.broadcast %cst_95 : f32 to vector<1x128xf32>
      %c0_96 = arith.constant 0 : index
      %c0_97 = arith.constant 0 : index
      %448 = vector.load %arg7[%c0_96, %c0_97] : memref<1x128xf32, #tpu.memory_space<vmem>>, vector<1x128xf32>
      tpu.vector_store %arg7[%c0_96, %c0_97], %447 {strides = array<i32>} : memref<1x128xf32, #tpu.memory_space<vmem>>, vector<1x128xf32>,
    } else {
    }
    %c0 = arith.constant 0 : index
    %c0_1 = arith.constant 0 : index
    %3 = vector.load %arg2[%c0, %c0_1] : memref<8x7xi32, #tpu.memory_space<vmem>>, vector<8x7xi32>
    %4 = tpu.iota {dimensions = array<i32: 1>} : vector<8x50xi32>
    %5 = vector.extract_strided_slice %3 {offsets = [0, 1], sizes = [8, 1], strides = [1, 1]} : vector<8x7xi32> to vector<8x1xi32>
    %6 = vector.broadcast %5 : vector<8x1xi32> to vector<8x50xi32>
    %7 = arith.cmpi eq, %4, %6 : vector<8x50xi32>
    %8 = arith.extui %7 : vector<8x50xi1> to vector<8x50xi32>
    %9 = arith.sitofp %8 : vector<8x50xi32> to vector<8x50xf32>
    %10 = vector.extract_strided_slice %3 {offsets = [0, 4], sizes = [8, 1], strides = [1, 1]} : vector<8x7xi32> to vector<8x1xi32>
    %11 = vector.broadcast %10 : vector<8x1xi32> to vector<8x50xi32>
    %12 = arith.cmpi eq, %4, %11 : vector<8x50xi32>
    %13 = arith.extui %12 : vector<8x50xi1> to vector<8x50xi32>
    %14 = arith.sitofp %13 : vector<8x50xi32> to vector<8x50xf32>
    %15 = arith.addf %9, %14 : vector<8x50xf32>
    %16 = vector.extract_strided_slice %3 {offsets = [0, 2], sizes = [8, 1], strides = [1, 1]} : vector<8x7xi32> to vector<8x1xi32>
    %17 = vector.broadcast %16 : vector<8x1xi32> to vector<8x50xi32>
    %18 = arith.cmpi eq, %4, %17 : vector<8x50xi32>
    %19 = arith.extui %18 : vector<8x50xi1> to vector<8x50xi32>
    %20 = arith.sitofp %19 : vector<8x50xi32> to vector<8x50xf32>
    %21 = vector.extract_strided_slice %3 {offsets = [0, 3], sizes = [8, 1], strides = [1, 1]} : vector<8x7xi32> to vector<8x1xi32>
    %22 = vector.broadcast %21 : vector<8x1xi32> to vector<8x50xi32>
    %23 = arith.cmpi eq, %4, %22 : vector<8x50xi32>
    %24 = arith.extui %23 : vector<8x50xi1> to vector<8x50xi32>
    %25 = arith.sitofp %24 : vector<8x50xi32> to vector<8x50xf32>
    %26 = arith.addf %20, %25 : vector<8x50xf32>
    %27 = vector.extract_strided_slice %3 {offsets = [0, 5], sizes = [8, 1], strides = [1, 1]} : vector<8x7xi32> to vector<8x1xi32>
    %28 = vector.broadcast %27 : vector<8x1xi32> to vector<8x50xi32>
    %29 = arith.cmpi eq, %4, %28 : vector<8x50xi32>
    %30 = arith.extui %29 : vector<8x50xi1> to vector<8x50xi32>
    %31 = arith.sitofp %30 : vector<8x50xi32> to vector<8x50xf32>
    %32 = arith.addf %26, %31 : vector<8x50xf32>
    %33 = vector.extract_strided_slice %3 {offsets = [0, 6], sizes = [8, 1], strides = [1, 1]} : vector<8x7xi32> to vector<8x1xi32>
    %34 = vector.broadcast %33 : vector<8x1xi32> to vector<8x50xi32>
    %35 = arith.cmpi eq, %4, %34 : vector<8x50xi32>
    %36 = arith.extui %35 : vector<8x50xi1> to vector<8x50xi32>
    %37 = arith.sitofp %36 : vector<8x50xi32> to vector<8x50xf32>
    %38 = arith.addf %32, %37 : vector<8x50xf32>
    %cst = arith.constant 5.000000e-01 : f32
    %39 = vector.broadcast %cst : f32 to vector<8x50xf32>
    %40 = arith.mulf %38, %39 : vector<8x50xf32>
    %c0_2 = arith.constant 0 : index
    %c0_3 = arith.constant 0 : index
    %41 = vector.load %arg4[%c0_2, %c0_3] : memref<50x32xf32, #tpu.memory_space<vmem>>, vector<50x32xf32>
    %cst_4 = arith.constant dense<0.000000e+00> : vector<8x32xf32>
    %42 = tpu.matmul %15, %41, %cst_4 {dimension_numbers = #tpu.dot_dimension_numbers<[1], [0], [0], [1], [0, 0, 1, 1], [], []>} : vector<8x50xf32>, vector<50x32xf32>, vector<8x32xf32> -> vector<8x32xf32>
    %c0_5 = arith.constant 0 : index
    %c0_6 = arith.constant 0 : index
    %43 = vector.load %arg4[%c0_5, %c0_6] : memref<50x32xf32, #tpu.memory_space<vmem>>, vector<50x32xf32>
    %cst_7 = arith.constant dense<0.000000e+00> : vector<8x32xf32>
    %44 = tpu.matmul %40, %43, %cst_7 {dimension_numbers = #tpu.dot_dimension_numbers<[1], [0], [0], [1], [0, 0, 1, 1], [], []>} : vector<8x50xf32>, vector<50x32xf32>, vector<8x32xf32> -> vector<8x32xf32>
    %45 = tpu.iota {dimensions = array<i32: 1>} : vector<8x10xi32>
    %46 = vector.extract_strided_slice %3 {offsets = [0, 0], sizes = [8, 1], strides = [1, 1]} : vector<8x7xi32> to vector<8x1xi32>
    %47 = vector.broadcast %46 : vector<8x1xi32> to vector<8x10xi32>
    %48 = arith.cmpi eq, %45, %47 : vector<8x10xi32>
    %49 = arith.extui %48 : vector<8x10xi1> to vector<8x10xi32>
    %50 = arith.sitofp %49 : vector<8x10xi32> to vector<8x10xf32>
    %c0_8 = arith.constant 0 : index
    %c0_9 = arith.constant 0 : index
    %51 = vector.load %arg5[%c0_8, %c0_9] : memref<10x64xf32, #tpu.memory_space<vmem>>, vector<10x64xf32>
    %cst_10 = arith.constant dense<0.000000e+00> : vector<8x64xf32>
    %52 = tpu.matmul %50, %51, %cst_10 {dimension_numbers = #tpu.dot_dimension_numbers<[1], [0], [0], [1], [0, 0, 1, 1], [], []>} : vector<8x10xf32>, vector<10x64xf32>, vector<8x64xf32> -> vector<8x64xf32>
    %53 = tpu.concatenate %42, %44 in 1 : vector<8x32xf32>, vector<8x32xf32> -> vector<8x64xf32>
    %54 = arith.addf %52, %53 : vector<8x64xf32>
    %cst_11 = arith.constant 0.333333343 : f32
    %55 = vector.broadcast %cst_11 : f32 to vector<8x64xf32>
    %56 = arith.mulf %54, %55 : vector<8x64xf32>
    %c0_12 = arith.constant 0 : index
    %c0_13 = arith.constant 0 : index
    %57 = vector.load %arg6[%c0_12, %c0_13] : memref<64x50xf32, #tpu.memory_space<vmem>>, vector<64x50xf32>
    %cst_14 = arith.constant dense<0.000000e+00> : vector<8x50xf32>
    %58 = tpu.matmul %56, %57, %cst_14 {dimension_numbers = #tpu.dot_dimension_numbers<[1], [0], [0], [1], [0, 0, 1, 1], [], []>} : vector<8x64xf32>, vector<64x50xf32>, vector<8x50xf32> -> vector<8x50xf32>
    %c0_15 = arith.constant 0 : index
    %c0_16 = arith.constant 0 : index
    %59 = vector.load %arg3[%c0_15, %c0_16] : memref<8x28xi32, #tpu.memory_space<vmem>>, vector<8x28xi32>
    %60 = tpu.iota {dimensions = array<i32: 1>} : vector<8x28xi32>
    %cst_17 = arith.constant 0.000000e+00 : f32
    %61 = vector.broadcast %cst_17 : f32 to vector<8x28xf32>
    %62 = vector.extract_strided_slice %59 {offsets = [0, 0], sizes = [8, 1], strides = [1, 1]} : vector<8x28xi32> to vector<8x1xi32>
    %63 = vector.broadcast %62 : vector<8x1xi32> to vector<8x50xi32>
    %64 = arith.cmpi eq, %4, %63 : vector<8x50xi32>
    %cst_18 = arith.constant 0.000000e+00 : f32
    %65 = vector.broadcast %cst_18 : f32 to vector<8x50xf32>
    %66 = arith.select %64, %58, %65 : vector<8x50xi1>, vector<8x50xf32>
    %cst_19 = arith.constant dense<0.000000e+00> : vector<8xf32>
    %67 = vector.multi_reduction <add>, %66, %cst_19 [1] : vector<8x50xf32> to vector<8xf32>
    %68 = vector.shape_cast %67 : vector<8xf32> to vector<8x1xf32>
    %c0_i32_20 = arith.constant 0 : i32
    %69 = vector.broadcast %c0_i32_20 : i32 to vector<8x28xi32>
    %70 = arith.cmpi eq, %60, %69 : vector<8x28xi32>
    %71 = vector.shape_cast %68 : vector<8x1xf32> to vector<8x1xf32>
    %72 = vector.broadcast %71 : vector<8x1xf32> to vector<8x28xf32>
    %73 = arith.select %70, %72, %61 : vector<8x28xi1>, vector<8x28xf32>
    %74 = vector.extract_strided_slice %59 {offsets = [0, 1], sizes = [8, 1], strides = [1, 1]} : vector<8x28xi32> to vector<8x1xi32>
    %75 = vector.broadcast %74 : vector<8x1xi32> to vector<8x50xi32>
    %76 = arith.cmpi eq, %4, %75 : vector<8x50xi32>
    %cst_21 = arith.constant 0.000000e+00 : f32
    %77 = vector.broadcast %cst_21 : f32 to vector<8x50xf32>
    %78 = arith.select %76, %58, %77 : vector<8x50xi1>, vector<8x50xf32>
    %cst_22 = arith.constant dense<0.000000e+00> : vector<8xf32>
    %79 = vector.multi_reduction <add>, %78, %cst_22 [1] : vector<8x50xf32> to vector<8xf32>
    %80 = vector.shape_cast %79 : vector<8xf32> to vector<8x1xf32>
    %c1_i32 = arith.constant 1 : i32
    %81 = vector.broadcast %c1_i32 : i32 to vector<8x28xi32>
    %82 = arith.cmpi eq, %60, %81 : vector<8x28xi32>
    %83 = vector.shape_cast %80 : vector<8x1xf32> to vector<8x1xf32>
    %84 = vector.broadcast %83 : vector<8x1xf32> to vector<8x28xf32>
    %85 = arith.select %82, %84, %73 : vector<8x28xi1>, vector<8x28xf32>
    %86 = vector.extract_strided_slice %59 {offsets = [0, 2], sizes = [8, 1], strides = [1, 1]} : vector<8x28xi32> to vector<8x1xi32>
    %87 = vector.broadcast %86 : vector<8x1xi32> to vector<8x50xi32>
    %88 = arith.cmpi eq, %4, %87 : vector<8x50xi32>
    %cst_23 = arith.constant 0.000000e+00 : f32
    %89 = vector.broadcast %cst_23 : f32 to vector<8x50xf32>
    %90 = arith.select %88, %58, %89 : vector<8x50xi1>, vector<8x50xf32>
    %cst_24 = arith.constant dense<0.000000e+00> : vector<8xf32>
    %91 = vector.multi_reduction <add>, %90, %cst_24 [1] : vector<8x50xf32> to vector<8xf32>
    %92 = vector.shape_cast %91 : vector<8xf32> to vector<8x1xf32>
    %c2_i32 = arith.constant 2 : i32
    %93 = vector.broadcast %c2_i32 : i32 to vector<8x28xi32>
    %94 = arith.cmpi eq, %60, %93 : vector<8x28xi32>
    %95 = vector.shape_cast %92 : vector<8x1xf32> to vector<8x1xf32>
    %96 = vector.broadcast %95 : vector<8x1xf32> to vector<8x28xf32>
    %97 = arith.select %94, %96, %85 : vector<8x28xi1>, vector<8x28xf32>
    %98 = vector.extract_strided_slice %59 {offsets = [0, 3], sizes = [8, 1], strides = [1, 1]} : vector<8x28xi32> to vector<8x1xi32>
    %99 = vector.broadcast %98 : vector<8x1xi32> to vector<8x50xi32>
    %100 = arith.cmpi eq, %4, %99 : vector<8x50xi32>
    %cst_25 = arith.constant 0.000000e+00 : f32
    %101 = vector.broadcast %cst_25 : f32 to vector<8x50xf32>
    %102 = arith.select %100, %58, %101 : vector<8x50xi1>, vector<8x50xf32>
    %cst_26 = arith.constant dense<0.000000e+00> : vector<8xf32>
    %103 = vector.multi_reduction <add>, %102, %cst_26 [1] : vector<8x50xf32> to vector<8xf32>
    %104 = vector.shape_cast %103 : vector<8xf32> to vector<8x1xf32>
    %c3_i32 = arith.constant 3 : i32
    %105 = vector.broadcast %c3_i32 : i32 to vector<8x28xi32>
    %106 = arith.cmpi eq, %60, %105 : vector<8x28xi32>
    %107 = vector.shape_cast %104 : vector<8x1xf32> to vector<8x1xf32>
    %108 = vector.broadcast %107 : vector<8x1xf32> to vector<8x28xf32>
    %109 = arith.select %106, %108, %97 : vector<8x28xi1>, vector<8x28xf32>
    %110 = vector.extract_strided_slice %59 {offsets = [0, 4], sizes = [8, 1], strides = [1, 1]} : vector<8x28xi32> to vector<8x1xi32>
    %111 = vector.broadcast %110 : vector<8x1xi32> to vector<8x50xi32>
    %112 = arith.cmpi eq, %4, %111 : vector<8x50xi32>
    %cst_27 = arith.constant 0.000000e+00 : f32
    %113 = vector.broadcast %cst_27 : f32 to vector<8x50xf32>
    %114 = arith.select %112, %58, %113 : vector<8x50xi1>, vector<8x50xf32>
    %cst_28 = arith.constant dense<0.000000e+00> : vector<8xf32>
    %115 = vector.multi_reduction <add>, %114, %cst_28 [1] : vector<8x50xf32> to vector<8xf32>
    %116 = vector.shape_cast %115 : vector<8xf32> to vector<8x1xf32>
    %c4_i32 = arith.constant 4 : i32
    %117 = vector.broadcast %c4_i32 : i32 to vector<8x28xi32>
    %118 = arith.cmpi eq, %60, %117 : vector<8x28xi32>
    %119 = vector.shape_cast %116 : vector<8x1xf32> to vector<8x1xf32>
    %120 = vector.broadcast %119 : vector<8x1xf32> to vector<8x28xf32>
    %121 = arith.select %118, %120, %109 : vector<8x28xi1>, vector<8x28xf32>
    %122 = vector.extract_strided_slice %59 {offsets = [0, 5], sizes = [8, 1], strides = [1, 1]} : vector<8x28xi32> to vector<8x1xi32>
    %123 = vector.broadcast %122 : vector<8x1xi32> to vector<8x50xi32>
    %124 = arith.cmpi eq, %4, %123 : vector<8x50xi32>
    %cst_29 = arith.constant 0.000000e+00 : f32
    %125 = vector.broadcast %cst_29 : f32 to vector<8x50xf32>
    %126 = arith.select %124, %58, %125 : vector<8x50xi1>, vector<8x50xf32>
    %cst_30 = arith.constant dense<0.000000e+00> : vector<8xf32>
    %127 = vector.multi_reduction <add>, %126, %cst_30 [1] : vector<8x50xf32> to vector<8xf32>
    %128 = vector.shape_cast %127 : vector<8xf32> to vector<8x1xf32>
    %c5_i32 = arith.constant 5 : i32
    %129 = vector.broadcast %c5_i32 : i32 to vector<8x28xi32>
    %130 = arith.cmpi eq, %60, %129 : vector<8x28xi32>
    %131 = vector.shape_cast %128 : vector<8x1xf32> to vector<8x1xf32>
    %132 = vector.broadcast %131 : vector<8x1xf32> to vector<8x28xf32>
    %133 = arith.select %130, %132, %121 : vector<8x28xi1>, vector<8x28xf32>
    %134 = vector.extract_strided_slice %59 {offsets = [0, 6], sizes = [8, 1], strides = [1, 1]} : vector<8x28xi32> to vector<8x1xi32>
    %135 = vector.broadcast %134 : vector<8x1xi32> to vector<8x50xi32>
    %136 = arith.cmpi eq, %4, %135 : vector<8x50xi32>
    %cst_31 = arith.constant 0.000000e+00 : f32
    %137 = vector.broadcast %cst_31 : f32 to vector<8x50xf32>
    %138 = arith.select %136, %58, %137 : vector<8x50xi1>, vector<8x50xf32>
    %cst_32 = arith.constant dense<0.000000e+00> : vector<8xf32>
    %139 = vector.multi_reduction <add>, %138, %cst_32 [1] : vector<8x50xf32> to vector<8xf32>
    %140 = vector.shape_cast %139 : vector<8xf32> to vector<8x1xf32>
    %c6_i32 = arith.constant 6 : i32
    %141 = vector.broadcast %c6_i32 : i32 to vector<8x28xi32>
    %142 = arith.cmpi eq, %60, %141 : vector<8x28xi32>
    %143 = vector.shape_cast %140 : vector<8x1xf32> to vector<8x1xf32>
    %144 = vector.broadcast %143 : vector<8x1xf32> to vector<8x28xf32>
    %145 = arith.select %142, %144, %133 : vector<8x28xi1>, vector<8x28xf32>
    %146 = vector.extract_strided_slice %59 {offsets = [0, 7], sizes = [8, 1], strides = [1, 1]} : vector<8x28xi32> to vector<8x1xi32>
    %147 = vector.broadcast %146 : vector<8x1xi32> to vector<8x50xi32>
    %148 = arith.cmpi eq, %4, %147 : vector<8x50xi32>
    %cst_33 = arith.constant 0.000000e+00 : f32
    %149 = vector.broadcast %cst_33 : f32 to vector<8x50xf32>
    %150 = arith.select %148, %58, %149 : vector<8x50xi1>, vector<8x50xf32>
    %cst_34 = arith.constant dense<0.000000e+00> : vector<8xf32>
    %151 = vector.multi_reduction <add>, %150, %cst_34 [1] : vector<8x50xf32> to vector<8xf32>
    %152 = vector.shape_cast %151 : vector<8xf32> to vector<8x1xf32>
    %c7_i32 = arith.constant 7 : i32
    %153 = vector.broadcast %c7_i32 : i32 to vector<8x28xi32>
    %154 = arith.cmpi eq, %60, %153 : vector<8x28xi32>
    %155 = vector.shape_cast %152 : vector<8x1xf32> to vector<8x1xf32>
    %156 = vector.broadcast %155 : vector<8x1xf32> to vector<8x28xf32>
    %157 = arith.select %154, %156, %145 : vector<8x28xi1>, vector<8x28xf32>
    %158 = vector.extract_strided_slice %59 {offsets = [0, 8], sizes = [8, 1], strides = [1, 1]} : vector<8x28xi32> to vector<8x1xi32>
    %159 = vector.broadcast %158 : vector<8x1xi32> to vector<8x50xi32>
    %160 = arith.cmpi eq, %4, %159 : vector<8x50xi32>
    %cst_35 = arith.constant 0.000000e+00 : f32
    %161 = vector.broadcast %cst_35 : f32 to vector<8x50xf32>
    %162 = arith.select %160, %58, %161 : vector<8x50xi1>, vector<8x50xf32>
    %cst_36 = arith.constant dense<0.000000e+00> : vector<8xf32>
    %163 = vector.multi_reduction <add>, %162, %cst_36 [1] : vector<8x50xf32> to vector<8xf32>
    %164 = vector.shape_cast %163 : vector<8xf32> to vector<8x1xf32>
    %c8_i32 = arith.constant 8 : i32
    %165 = vector.broadcast %c8_i32 : i32 to vector<8x28xi32>
    %166 = arith.cmpi eq, %60, %165 : vector<8x28xi32>
    %167 = vector.shape_cast %164 : vector<8x1xf32> to vector<8x1xf32>
    %168 = vector.broadcast %167 : vector<8x1xf32> to vector<8x28xf32>
    %169 = arith.select %166, %168, %157 : vector<8x28xi1>, vector<8x28xf32>
    %170 = vector.extract_strided_slice %59 {offsets = [0, 9], sizes = [8, 1], strides = [1, 1]} : vector<8x28xi32> to vector<8x1xi32>
    %171 = vector.broadcast %170 : vector<8x1xi32> to vector<8x50xi32>
    %172 = arith.cmpi eq, %4, %171 : vector<8x50xi32>
    %cst_37 = arith.constant 0.000000e+00 : f32
    %173 = vector.broadcast %cst_37 : f32 to vector<8x50xf32>
    %174 = arith.select %172, %58, %173 : vector<8x50xi1>, vector<8x50xf32>
    %cst_38 = arith.constant dense<0.000000e+00> : vector<8xf32>
    %175 = vector.multi_reduction <add>, %174, %cst_38 [1] : vector<8x50xf32> to vector<8xf32>
    %176 = vector.shape_cast %175 : vector<8xf32> to vector<8x1xf32>
    %c9_i32 = arith.constant 9 : i32
    %177 = vector.broadcast %c9_i32 : i32 to vector<8x28xi32>
    %178 = arith.cmpi eq, %60, %177 : vector<8x28xi32>
    %179 = vector.shape_cast %176 : vector<8x1xf32> to vector<8x1xf32>
    %180 = vector.broadcast %179 : vector<8x1xf32> to vector<8x28xf32>
    %181 = arith.select %178, %180, %169 : vector<8x28xi1>, vector<8x28xf32>
    %182 = vector.extract_strided_slice %59 {offsets = [0, 10], sizes = [8, 1], strides = [1, 1]} : vector<8x28xi32> to vector<8x1xi32>
    %183 = vector.broadcast %182 : vector<8x1xi32> to vector<8x50xi32>
    %184 = arith.cmpi eq, %4, %183 : vector<8x50xi32>
    %cst_39 = arith.constant 0.000000e+00 : f32
    %185 = vector.broadcast %cst_39 : f32 to vector<8x50xf32>
    %186 = arith.select %184, %58, %185 : vector<8x50xi1>, vector<8x50xf32>
    %cst_40 = arith.constant dense<0.000000e+00> : vector<8xf32>
    %187 = vector.multi_reduction <add>, %186, %cst_40 [1] : vector<8x50xf32> to vector<8xf32>
    %188 = vector.shape_cast %187 : vector<8xf32> to vector<8x1xf32>
    %c10_i32 = arith.constant 10 : i32
    %189 = vector.broadcast %c10_i32 : i32 to vector<8x28xi32>
    %190 = arith.cmpi eq, %60, %189 : vector<8x28xi32>
    %191 = vector.shape_cast %188 : vector<8x1xf32> to vector<8x1xf32>
    %192 = vector.broadcast %191 : vector<8x1xf32> to vector<8x28xf32>
    %193 = arith.select %190, %192, %181 : vector<8x28xi1>, vector<8x28xf32>
    %194 = vector.extract_strided_slice %59 {offsets = [0, 11], sizes = [8, 1], strides = [1, 1]} : vector<8x28xi32> to vector<8x1xi32>
    %195 = vector.broadcast %194 : vector<8x1xi32> to vector<8x50xi32>
    %196 = arith.cmpi eq, %4, %195 : vector<8x50xi32>
    %cst_41 = arith.constant 0.000000e+00 : f32
    %197 = vector.broadcast %cst_41 : f32 to vector<8x50xf32>
    %198 = arith.select %196, %58, %197 : vector<8x50xi1>, vector<8x50xf32>
    %cst_42 = arith.constant dense<0.000000e+00> : vector<8xf32>
    %199 = vector.multi_reduction <add>, %198, %cst_42 [1] : vector<8x50xf32> to vector<8xf32>
    %200 = vector.shape_cast %199 : vector<8xf32> to vector<8x1xf32>
    %c11_i32 = arith.constant 11 : i32
    %201 = vector.broadcast %c11_i32 : i32 to vector<8x28xi32>
    %202 = arith.cmpi eq, %60, %201 : vector<8x28xi32>
    %203 = vector.shape_cast %200 : vector<8x1xf32> to vector<8x1xf32>
    %204 = vector.broadcast %203 : vector<8x1xf32> to vector<8x28xf32>
    %205 = arith.select %202, %204, %193 : vector<8x28xi1>, vector<8x28xf32>
    %206 = vector.extract_strided_slice %59 {offsets = [0, 12], sizes = [8, 1], strides = [1, 1]} : vector<8x28xi32> to vector<8x1xi32>
    %207 = vector.broadcast %206 : vector<8x1xi32> to vector<8x50xi32>
    %208 = arith.cmpi eq, %4, %207 : vector<8x50xi32>
    %cst_43 = arith.constant 0.000000e+00 : f32
    %209 = vector.broadcast %cst_43 : f32 to vector<8x50xf32>
    %210 = arith.select %208, %58, %209 : vector<8x50xi1>, vector<8x50xf32>
    %cst_44 = arith.constant dense<0.000000e+00> : vector<8xf32>
    %211 = vector.multi_reduction <add>, %210, %cst_44 [1] : vector<8x50xf32> to vector<8xf32>
    %212 = vector.shape_cast %211 : vector<8xf32> to vector<8x1xf32>
    %c12_i32 = arith.constant 12 : i32
    %213 = vector.broadcast %c12_i32 : i32 to vector<8x28xi32>
    %214 = arith.cmpi eq, %60, %213 : vector<8x28xi32>
    %215 = vector.shape_cast %212 : vector<8x1xf32> to vector<8x1xf32>
    %216 = vector.broadcast %215 : vector<8x1xf32> to vector<8x28xf32>
    %217 = arith.select %214, %216, %205 : vector<8x28xi1>, vector<8x28xf32>
    %218 = vector.extract_strided_slice %59 {offsets = [0, 13], sizes = [8, 1], strides = [1, 1]} : vector<8x28xi32> to vector<8x1xi32>
    %219 = vector.broadcast %218 : vector<8x1xi32> to vector<8x50xi32>
    %220 = arith.cmpi eq, %4, %219 : vector<8x50xi32>
    %cst_45 = arith.constant 0.000000e+00 : f32
    %221 = vector.broadcast %cst_45 : f32 to vector<8x50xf32>
    %222 = arith.select %220, %58, %221 : vector<8x50xi1>, vector<8x50xf32>
    %cst_46 = arith.constant dense<0.000000e+00> : vector<8xf32>
    %223 = vector.multi_reduction <add>, %222, %cst_46 [1] : vector<8x50xf32> to vector<8xf32>
    %224 = vector.shape_cast %223 : vector<8xf32> to vector<8x1xf32>
    %c13_i32 = arith.constant 13 : i32
    %225 = vector.broadcast %c13_i32 : i32 to vector<8x28xi32>
    %226 = arith.cmpi eq, %60, %225 : vector<8x28xi32>
    %227 = vector.shape_cast %224 : vector<8x1xf32> to vector<8x1xf32>
    %228 = vector.broadcast %227 : vector<8x1xf32> to vector<8x28xf32>
    %229 = arith.select %226, %228, %217 : vector<8x28xi1>, vector<8x28xf32>
    %230 = vector.extract_strided_slice %59 {offsets = [0, 14], sizes = [8, 1], strides = [1, 1]} : vector<8x28xi32> to vector<8x1xi32>
    %231 = vector.broadcast %230 : vector<8x1xi32> to vector<8x50xi32>
    %232 = arith.cmpi eq, %4, %231 : vector<8x50xi32>
    %cst_47 = arith.constant 0.000000e+00 : f32
    %233 = vector.broadcast %cst_47 : f32 to vector<8x50xf32>
    %234 = arith.select %232, %58, %233 : vector<8x50xi1>, vector<8x50xf32>
    %cst_48 = arith.constant dense<0.000000e+00> : vector<8xf32>
    %235 = vector.multi_reduction <add>, %234, %cst_48 [1] : vector<8x50xf32> to vector<8xf32>
    %236 = vector.shape_cast %235 : vector<8xf32> to vector<8x1xf32>
    %c14_i32 = arith.constant 14 : i32
    %237 = vector.broadcast %c14_i32 : i32 to vector<8x28xi32>
    %238 = arith.cmpi eq, %60, %237 : vector<8x28xi32>
    %239 = vector.shape_cast %236 : vector<8x1xf32> to vector<8x1xf32>
    %240 = vector.broadcast %239 : vector<8x1xf32> to vector<8x28xf32>
    %241 = arith.select %238, %240, %229 : vector<8x28xi1>, vector<8x28xf32>
    %242 = vector.extract_strided_slice %59 {offsets = [0, 15], sizes = [8, 1], strides = [1, 1]} : vector<8x28xi32> to vector<8x1xi32>
    %243 = vector.broadcast %242 : vector<8x1xi32> to vector<8x50xi32>
    %244 = arith.cmpi eq, %4, %243 : vector<8x50xi32>
    %cst_49 = arith.constant 0.000000e+00 : f32
    %245 = vector.broadcast %cst_49 : f32 to vector<8x50xf32>
    %246 = arith.select %244, %58, %245 : vector<8x50xi1>, vector<8x50xf32>
    %cst_50 = arith.constant dense<0.000000e+00> : vector<8xf32>
    %247 = vector.multi_reduction <add>, %246, %cst_50 [1] : vector<8x50xf32> to vector<8xf32>
    %248 = vector.shape_cast %247 : vector<8xf32> to vector<8x1xf32>
    %c15_i32 = arith.constant 15 : i32
    %249 = vector.broadcast %c15_i32 : i32 to vector<8x28xi32>
    %250 = arith.cmpi eq, %60, %249 : vector<8x28xi32>
    %251 = vector.shape_cast %248 : vector<8x1xf32> to vector<8x1xf32>
    %252 = vector.broadcast %251 : vector<8x1xf32> to vector<8x28xf32>
    %253 = arith.select %250, %252, %241 : vector<8x28xi1>, vector<8x28xf32>
    %254 = vector.extract_strided_slice %59 {offsets = [0, 16], sizes = [8, 1], strides = [1, 1]} : vector<8x28xi32> to vector<8x1xi32>
    %255 = vector.broadcast %254 : vector<8x1xi32> to vector<8x50xi32>
    %256 = arith.cmpi eq, %4, %255 : vector<8x50xi32>
    %cst_51 = arith.constant 0.000000e+00 : f32
    %257 = vector.broadcast %cst_51 : f32 to vector<8x50xf32>
    %258 = arith.select %256, %58, %257 : vector<8x50xi1>, vector<8x50xf32>
    %cst_52 = arith.constant dense<0.000000e+00> : vector<8xf32>
    %259 = vector.multi_reduction <add>, %258, %cst_52 [1] : vector<8x50xf32> to vector<8xf32>
    %260 = vector.shape_cast %259 : vector<8xf32> to vector<8x1xf32>
    %c16_i32 = arith.constant 16 : i32
    %261 = vector.broadcast %c16_i32 : i32 to vector<8x28xi32>
    %262 = arith.cmpi eq, %60, %261 : vector<8x28xi32>
    %263 = vector.shape_cast %260 : vector<8x1xf32> to vector<8x1xf32>
    %264 = vector.broadcast %263 : vector<8x1xf32> to vector<8x28xf32>
    %265 = arith.select %262, %264, %253 : vector<8x28xi1>, vector<8x28xf32>
    %266 = vector.extract_strided_slice %59 {offsets = [0, 17], sizes = [8, 1], strides = [1, 1]} : vector<8x28xi32> to vector<8x1xi32>
    %267 = vector.broadcast %266 : vector<8x1xi32> to vector<8x50xi32>
    %268 = arith.cmpi eq, %4, %267 : vector<8x50xi32>
    %cst_53 = arith.constant 0.000000e+00 : f32
    %269 = vector.broadcast %cst_53 : f32 to vector<8x50xf32>
    %270 = arith.select %268, %58, %269 : vector<8x50xi1>, vector<8x50xf32>
    %cst_54 = arith.constant dense<0.000000e+00> : vector<8xf32>
    %271 = vector.multi_reduction <add>, %270, %cst_54 [1] : vector<8x50xf32> to vector<8xf32>
    %272 = vector.shape_cast %271 : vector<8xf32> to vector<8x1xf32>
    %c17_i32 = arith.constant 17 : i32
    %273 = vector.broadcast %c17_i32 : i32 to vector<8x28xi32>
    %274 = arith.cmpi eq, %60, %273 : vector<8x28xi32>
    %275 = vector.shape_cast %272 : vector<8x1xf32> to vector<8x1xf32>
    %276 = vector.broadcast %275 : vector<8x1xf32> to vector<8x28xf32>
    %277 = arith.select %274, %276, %265 : vector<8x28xi1>, vector<8x28xf32>
    %278 = vector.extract_strided_slice %59 {offsets = [0, 18], sizes = [8, 1], strides = [1, 1]} : vector<8x28xi32> to vector<8x1xi32>
    %279 = vector.broadcast %278 : vector<8x1xi32> to vector<8x50xi32>
    %280 = arith.cmpi eq, %4, %279 : vector<8x50xi32>
    %cst_55 = arith.constant 0.000000e+00 : f32
    %281 = vector.broadcast %cst_55 : f32 to vector<8x50xf32>
    %282 = arith.select %280, %58, %281 : vector<8x50xi1>, vector<8x50xf32>
    %cst_56 = arith.constant dense<0.000000e+00> : vector<8xf32>
    %283 = vector.multi_reduction <add>, %282, %cst_56 [1] : vector<8x50xf32> to vector<8xf32>
    %284 = vector.shape_cast %283 : vector<8xf32> to vector<8x1xf32>
    %c18_i32 = arith.constant 18 : i32
    %285 = vector.broadcast %c18_i32 : i32 to vector<8x28xi32>
    %286 = arith.cmpi eq, %60, %285 : vector<8x28xi32>
    %287 = vector.shape_cast %284 : vector<8x1xf32> to vector<8x1xf32>
    %288 = vector.broadcast %287 : vector<8x1xf32> to vector<8x28xf32>
    %289 = arith.select %286, %288, %277 : vector<8x28xi1>, vector<8x28xf32>
    %290 = vector.extract_strided_slice %59 {offsets = [0, 19], sizes = [8, 1], strides = [1, 1]} : vector<8x28xi32> to vector<8x1xi32>
    %291 = vector.broadcast %290 : vector<8x1xi32> to vector<8x50xi32>
    %292 = arith.cmpi eq, %4, %291 : vector<8x50xi32>
    %cst_57 = arith.constant 0.000000e+00 : f32
    %293 = vector.broadcast %cst_57 : f32 to vector<8x50xf32>
    %294 = arith.select %292, %58, %293 : vector<8x50xi1>, vector<8x50xf32>
    %cst_58 = arith.constant dense<0.000000e+00> : vector<8xf32>
    %295 = vector.multi_reduction <add>, %294, %cst_58 [1] : vector<8x50xf32> to vector<8xf32>
    %296 = vector.shape_cast %295 : vector<8xf32> to vector<8x1xf32>
    %c19_i32 = arith.constant 19 : i32
    %297 = vector.broadcast %c19_i32 : i32 to vector<8x28xi32>
    %298 = arith.cmpi eq, %60, %297 : vector<8x28xi32>
    %299 = vector.shape_cast %296 : vector<8x1xf32> to vector<8x1xf32>
    %300 = vector.broadcast %299 : vector<8x1xf32> to vector<8x28xf32>
    %301 = arith.select %298, %300, %289 : vector<8x28xi1>, vector<8x28xf32>
    %302 = vector.extract_strided_slice %59 {offsets = [0, 20], sizes = [8, 1], strides = [1, 1]} : vector<8x28xi32> to vector<8x1xi32>
    %303 = vector.broadcast %302 : vector<8x1xi32> to vector<8x50xi32>
    %304 = arith.cmpi eq, %4, %303 : vector<8x50xi32>
    %cst_59 = arith.constant 0.000000e+00 : f32
    %305 = vector.broadcast %cst_59 : f32 to vector<8x50xf32>
    %306 = arith.select %304, %58, %305 : vector<8x50xi1>, vector<8x50xf32>
    %cst_60 = arith.constant dense<0.000000e+00> : vector<8xf32>
    %307 = vector.multi_reduction <add>, %306, %cst_60 [1] : vector<8x50xf32> to vector<8xf32>
    %308 = vector.shape_cast %307 : vector<8xf32> to vector<8x1xf32>
    %c20_i32 = arith.constant 20 : i32
    %309 = vector.broadcast %c20_i32 : i32 to vector<8x28xi32>
    %310 = arith.cmpi eq, %60, %309 : vector<8x28xi32>
    %311 = vector.shape_cast %308 : vector<8x1xf32> to vector<8x1xf32>
    %312 = vector.broadcast %311 : vector<8x1xf32> to vector<8x28xf32>
    %313 = arith.select %310, %312, %301 : vector<8x28xi1>, vector<8x28xf32>
    %314 = vector.extract_strided_slice %59 {offsets = [0, 21], sizes = [8, 1], strides = [1, 1]} : vector<8x28xi32> to vector<8x1xi32>
    %315 = vector.broadcast %314 : vector<8x1xi32> to vector<8x50xi32>
    %316 = arith.cmpi eq, %4, %315 : vector<8x50xi32>
    %cst_61 = arith.constant 0.000000e+00 : f32
    %317 = vector.broadcast %cst_61 : f32 to vector<8x50xf32>
    %318 = arith.select %316, %58, %317 : vector<8x50xi1>, vector<8x50xf32>
    %cst_62 = arith.constant dense<0.000000e+00> : vector<8xf32>
    %319 = vector.multi_reduction <add>, %318, %cst_62 [1] : vector<8x50xf32> to vector<8xf32>
    %320 = vector.shape_cast %319 : vector<8xf32> to vector<8x1xf32>
    %c21_i32 = arith.constant 21 : i32
    %321 = vector.broadcast %c21_i32 : i32 to vector<8x28xi32>
    %322 = arith.cmpi eq, %60, %321 : vector<8x28xi32>
    %323 = vector.shape_cast %320 : vector<8x1xf32> to vector<8x1xf32>
    %324 = vector.broadcast %323 : vector<8x1xf32> to vector<8x28xf32>
    %325 = arith.select %322, %324, %313 : vector<8x28xi1>, vector<8x28xf32>
    %326 = vector.extract_strided_slice %59 {offsets = [0, 22], sizes = [8, 1], strides = [1, 1]} : vector<8x28xi32> to vector<8x1xi32>
    %327 = vector.broadcast %326 : vector<8x1xi32> to vector<8x50xi32>
    %328 = arith.cmpi eq, %4, %327 : vector<8x50xi32>
    %cst_63 = arith.constant 0.000000e+00 : f32
    %329 = vector.broadcast %cst_63 : f32 to vector<8x50xf32>
    %330 = arith.select %328, %58, %329 : vector<8x50xi1>, vector<8x50xf32>
    %cst_64 = arith.constant dense<0.000000e+00> : vector<8xf32>
    %331 = vector.multi_reduction <add>, %330, %cst_64 [1] : vector<8x50xf32> to vector<8xf32>
    %332 = vector.shape_cast %331 : vector<8xf32> to vector<8x1xf32>
    %c22_i32 = arith.constant 22 : i32
    %333 = vector.broadcast %c22_i32 : i32 to vector<8x28xi32>
    %334 = arith.cmpi eq, %60, %333 : vector<8x28xi32>
    %335 = vector.shape_cast %332 : vector<8x1xf32> to vector<8x1xf32>
    %336 = vector.broadcast %335 : vector<8x1xf32> to vector<8x28xf32>
    %337 = arith.select %334, %336, %325 : vector<8x28xi1>, vector<8x28xf32>
    %338 = vector.extract_strided_slice %59 {offsets = [0, 23], sizes = [8, 1], strides = [1, 1]} : vector<8x28xi32> to vector<8x1xi32>
    %339 = vector.broadcast %338 : vector<8x1xi32> to vector<8x50xi32>
    %340 = arith.cmpi eq, %4, %339 : vector<8x50xi32>
    %cst_65 = arith.constant 0.000000e+00 : f32
    %341 = vector.broadcast %cst_65 : f32 to vector<8x50xf32>
    %342 = arith.select %340, %58, %341 : vector<8x50xi1>, vector<8x50xf32>
    %cst_66 = arith.constant dense<0.000000e+00> : vector<8xf32>
    %343 = vector.multi_reduction <add>, %342, %cst_66 [1] : vector<8x50xf32> to vector<8xf32>
    %344 = vector.shape_cast %343 : vector<8xf32> to vector<8x1xf32>
    %c23_i32 = arith.constant 23 : i32
    %345 = vector.broadcast %c23_i32 : i32 to vector<8x28xi32>
    %346 = arith.cmpi eq, %60, %345 : vector<8x28xi32>
    %347 = vector.shape_cast %344 : vector<8x1xf32> to vector<8x1xf32>
    %348 = vector.broadcast %347 : vector<8x1xf32> to vector<8x28xf32>
    %349 = arith.select %346, %348, %337 : vector<8x28xi1>, vector<8x28xf32>
    %350 = vector.extract_strided_slice %59 {offsets = [0, 24], sizes = [8, 1], strides = [1, 1]} : vector<8x28xi32> to vector<8x1xi32>
    %351 = vector.broadcast %350 : vector<8x1xi32> to vector<8x50xi32>
    %352 = arith.cmpi eq, %4, %351 : vector<8x50xi32>
    %cst_67 = arith.constant 0.000000e+00 : f32
    %353 = vector.broadcast %cst_67 : f32 to vector<8x50xf32>
    %354 = arith.select %352, %58, %353 : vector<8x50xi1>, vector<8x50xf32>
    %cst_68 = arith.constant dense<0.000000e+00> : vector<8xf32>
    %355 = vector.multi_reduction <add>, %354, %cst_68 [1] : vector<8x50xf32> to vector<8xf32>
    %356 = vector.shape_cast %355 : vector<8xf32> to vector<8x1xf32>
    %c24_i32 = arith.constant 24 : i32
    %357 = vector.broadcast %c24_i32 : i32 to vector<8x28xi32>
    %358 = arith.cmpi eq, %60, %357 : vector<8x28xi32>
    %359 = vector.shape_cast %356 : vector<8x1xf32> to vector<8x1xf32>
    %360 = vector.broadcast %359 : vector<8x1xf32> to vector<8x28xf32>
    %361 = arith.select %358, %360, %349 : vector<8x28xi1>, vector<8x28xf32>
    %362 = vector.extract_strided_slice %59 {offsets = [0, 25], sizes = [8, 1], strides = [1, 1]} : vector<8x28xi32> to vector<8x1xi32>
    %363 = vector.broadcast %362 : vector<8x1xi32> to vector<8x50xi32>
    %364 = arith.cmpi eq, %4, %363 : vector<8x50xi32>
    %cst_69 = arith.constant 0.000000e+00 : f32
    %365 = vector.broadcast %cst_69 : f32 to vector<8x50xf32>
    %366 = arith.select %364, %58, %365 : vector<8x50xi1>, vector<8x50xf32>
    %cst_70 = arith.constant dense<0.000000e+00> : vector<8xf32>
    %367 = vector.multi_reduction <add>, %366, %cst_70 [1] : vector<8x50xf32> to vector<8xf32>
    %368 = vector.shape_cast %367 : vector<8xf32> to vector<8x1xf32>
    %c25_i32 = arith.constant 25 : i32
    %369 = vector.broadcast %c25_i32 : i32 to vector<8x28xi32>
    %370 = arith.cmpi eq, %60, %369 : vector<8x28xi32>
    %371 = vector.shape_cast %368 : vector<8x1xf32> to vector<8x1xf32>
    %372 = vector.broadcast %371 : vector<8x1xf32> to vector<8x28xf32>
    %373 = arith.select %370, %372, %361 : vector<8x28xi1>, vector<8x28xf32>
    %374 = vector.extract_strided_slice %59 {offsets = [0, 26], sizes = [8, 1], strides = [1, 1]} : vector<8x28xi32> to vector<8x1xi32>
    %375 = vector.broadcast %374 : vector<8x1xi32> to vector<8x50xi32>
    %376 = arith.cmpi eq, %4, %375 : vector<8x50xi32>
    %cst_71 = arith.constant 0.000000e+00 : f32
    %377 = vector.broadcast %cst_71 : f32 to vector<8x50xf32>
    %378 = arith.select %376, %58, %377 : vector<8x50xi1>, vector<8x50xf32>
    %cst_72 = arith.constant dense<0.000000e+00> : vector<8xf32>
    %379 = vector.multi_reduction <add>, %378, %cst_72 [1] : vector<8x50xf32> to vector<8xf32>
    %380 = vector.shape_cast %379 : vector<8xf32> to vector<8x1xf32>
    %c26_i32 = arith.constant 26 : i32
    %381 = vector.broadcast %c26_i32 : i32 to vector<8x28xi32>
    %382 = arith.cmpi eq, %60, %381 : vector<8x28xi32>
    %383 = vector.shape_cast %380 : vector<8x1xf32> to vector<8x1xf32>
    %384 = vector.broadcast %383 : vector<8x1xf32> to vector<8x28xf32>
    %385 = arith.select %382, %384, %373 : vector<8x28xi1>, vector<8x28xf32>
    %386 = vector.extract_strided_slice %59 {offsets = [0, 27], sizes = [8, 1], strides = [1, 1]} : vector<8x28xi32> to vector<8x1xi32>
    %387 = vector.broadcast %386 : vector<8x1xi32> to vector<8x50xi32>
    %388 = arith.cmpi eq, %4, %387 : vector<8x50xi32>
    %cst_73 = arith.constant 0.000000e+00 : f32
    %389 = vector.broadcast %cst_73 : f32 to vector<8x50xf32>
    %390 = arith.select %388, %58, %389 : vector<8x50xi1>, vector<8x50xf32>
    %cst_74 = arith.constant dense<0.000000e+00> : vector<8xf32>
    %391 = vector.multi_reduction <add>, %390, %cst_74 [1] : vector<8x50xf32> to vector<8xf32>
    %392 = vector.shape_cast %391 : vector<8xf32> to vector<8x1xf32>
    %c27_i32 = arith.constant 27 : i32
    %393 = vector.broadcast %c27_i32 : i32 to vector<8x28xi32>
    %394 = arith.cmpi eq, %60, %393 : vector<8x28xi32>
    %395 = vector.shape_cast %392 : vector<8x1xf32> to vector<8x1xf32>
    %396 = vector.broadcast %395 : vector<8x1xf32> to vector<8x28xf32>
    %397 = arith.select %394, %396, %385 : vector<8x28xi1>, vector<8x28xf32>
    %cst_75 = arith.constant 0.000000e+00 : f32
    %398 = vector.broadcast %cst_75 : f32 to vector<8x28xf32>
    %399 = arith.subf %398, %397 : vector<8x28xf32>
    %cst_76 = arith.constant 0.000000e+00 : f32
    %400 = vector.broadcast %cst_76 : f32 to vector<8x28xf32>
    %401 = arith.maximumf %399, %400 : vector<8x28xf32>
    %402 = math.absf %399 : vector<8x28xf32>
    %cst_77 = arith.constant 0.000000e+00 : f32
    %403 = vector.broadcast %cst_77 : f32 to vector<8x28xf32>
    %404 = arith.subf %403, %402 : vector<8x28xf32>
    %405 = math.exp %404 : vector<8x28xf32>
    %406 = math.log1p %405 : vector<8x28xf32>
    %407 = arith.addf %401, %406 : vector<8x28xf32>
    %cst_78 = arith.constant 0.000000e+00 : f32
    %408 = vector.broadcast %cst_78 : f32 to vector<8x28xf32>
    %409 = arith.subf %408, %407 : vector<8x28xf32>
    %cst_79 = arith.constant -1.000000e+02 : f32
    %410 = vector.broadcast %cst_79 : f32 to vector<8x28xf32>
    %411 = arith.maximumf %409, %410 : vector<8x28xf32>
    %cst_80 = arith.constant 0.000000e+00 : f32
    %412 = vector.broadcast %cst_80 : f32 to vector<8x28xf32>
    %413 = arith.maximumf %397, %412 : vector<8x28xf32>
    %414 = math.absf %397 : vector<8x28xf32>
    %cst_81 = arith.constant 0.000000e+00 : f32
    %415 = vector.broadcast %cst_81 : f32 to vector<8x28xf32>
    %416 = arith.subf %415, %414 : vector<8x28xf32>
    %417 = math.exp %416 : vector<8x28xf32>
    %418 = math.log1p %417 : vector<8x28xf32>
    %419 = arith.addf %413, %418 : vector<8x28xf32>
    %cst_82 = arith.constant 0.000000e+00 : f32
    %420 = vector.broadcast %cst_82 : f32 to vector<8x28xf32>
    %421 = arith.subf %420, %419 : vector<8x28xf32>
    %cst_83 = arith.constant -1.000000e+02 : f32
    %422 = vector.broadcast %cst_83 : f32 to vector<8x28xf32>
    %423 = arith.maximumf %421, %422 : vector<8x28xf32>
    %c3_i32_84 = arith.constant 3 : i32
    %424 = vector.broadcast %c3_i32_84 : i32 to vector<8x28xi32>
    %425 = arith.cmpi slt, %60, %424 : vector<8x28xi32>
    %426 = arith.select %425, %411, %423 : vector<8x28xi1>, vector<8x28xf32>
    %cst_85 = arith.constant 0.000000e+00 : f32
    %427 = vector.broadcast %cst_85 : f32 to vector<8x28xf32>
    %428 = arith.subf %427, %426 : vector<8x28xf32>
    %c1_i32_86 = arith.constant 1 : i32
    %429 = arith.muli %arg0, %c1_i32_86 : i32
    %430 = arith.addi %429, %arg1 : i32
    %c8_i32_87 = arith.constant 8 : i32
    %431 = arith.muli %430, %c8_i32_87 : i32
    %432 = tpu.iota {dimensions = array<i32: 0>} : vector<8x28xi32>
    %433 = vector.broadcast %431 : i32 to vector<8x28xi32>
    %434 = arith.addi %432, %433 : vector<8x28xi32>
    %c2_i32_88 = arith.constant 2 : i32
    %435 = vector.broadcast %c2_i32_88 : i32 to vector<8x28xi32>
    %436 = arith.cmpi slt, %434, %435 : vector<8x28xi32>
    %cst_89 = arith.constant 0.000000e+00 : f32
    %437 = vector.broadcast %cst_89 : f32 to vector<8x28xf32>
    %438 = arith.select %436, %428, %437 : vector<8x28xi1>, vector<8x28xf32>
    %439 = vector.shape_cast %438 : vector<8x28xf32> to vector<1x8x28xf32>
    %cst_90 = arith.constant dense<0.000000e+00> : vector<1xf32>
    %440 = vector.multi_reduction <add>, %439, %cst_90 [1, 2] : vector<1x8x28xf32> to vector<1xf32>
    %441 = vector.shape_cast %440 : vector<1xf32> to vector<1x1x1xf32>
    %442 = vector.extract %441[0, 0, 0] : f32 from vector<1x1x1xf32>
    %c0_91 = arith.constant 0 : index
    %c0_92 = arith.constant 0 : index
    %443 = vector.load %arg7[%c0_91, %c0_92] : memref<1x128xf32, #tpu.memory_space<vmem>>, vector<1x128xf32>
    %444 = vector.broadcast %442 : f32 to vector<1x128xf32>
    %445 = arith.addf %443, %444 : vector<1x128xf32>
    %c0_93 = arith.constant 0 : index
    %c0_94 = arith.constant 0 : index
    %446 = vector.load %arg7[%c0_93, %c0_94] : memref<1x128xf32, #tpu.memory_space<vmem>>, vector<1x128xf32>
    tpu.vector_store %arg7[%c0_93, %c0_94], %445 {strides = array<i32>} : memref<1x128xf32, #tpu.memory_space<vmem>>, vector<1x128xf32>,
    return
  }
  func.func @transform_0(%arg0: i32, %arg1: i32) -> (i32, i32) {
    %c1_i32 = arith.constant 1 : i32
    %0 = arith.muli %arg0, %c1_i32 : i32
    %1 = arith.addi %0, %arg1 : i32
    %c0_i32 = arith.constant 0 : i32
    %c0_i32_0 = arith.constant 0 : i32
    return %1, %c0_i32 : i32, i32
  }
  func.func @transform_1(%arg0: i32, %arg1: i32) -> (i32, i32) {
    %c1_i32 = arith.constant 1 : i32
    %0 = arith.muli %arg0, %c1_i32 : i32
    %1 = arith.addi %0, %arg1 : i32
    %c0_i32 = arith.constant 0 : i32
    %c0_i32_0 = arith.constant 0 : i32
    return %1, %c0_i32 : i32, i32
  }
  func.func @transform_2(%arg0: i32, %arg1: i32) -> (i32, i32) {
    %c0_i32 = arith.constant 0 : i32
    %c0_i32_0 = arith.constant 0 : i32
    %c0_i32_1 = arith.constant 0 : i32
    return %c0_i32, %c0_i32_0 : i32, i32
  }
  func.func @transform_3(%arg0: i32, %arg1: i32) -> (i32, i32) {
    %c0_i32 = arith.constant 0 : i32
    %c0_i32_0 = arith.constant 0 : i32
    %c0_i32_1 = arith.constant 0 : i32
    return %c0_i32, %c0_i32_0 : i32, i32
  }
  func.func @transform_4(%arg0: i32, %arg1: i32) -> (i32, i32) {
    %c0_i32 = arith.constant 0 : i32
    %c0_i32_0 = arith.constant 0 : i32
    %c0_i32_1 = arith.constant 0 : i32
    return %c0_i32, %c0_i32_0 : i32, i32
  }
  func.func @transform_5(%arg0: i32, %arg1: i32) -> (i32, i32) {
    %c0_i32 = arith.constant 0 : i32
    %c0_i32_0 = arith.constant 0 : i32
    return %c0_i32, %arg0 : i32, i32
  }
}

</mosaic_0001>

<bundles_post_ra>
// kernel: tpu_custom_call.1
= control target key start
LH: loop header
LB: loop body
LE: loop exit
PB: predicated region body
PF: predicated region fallthrough
CT: control target
= control target key end

     0   :  { %10 = vsyncpa [#allocation3], 0  ;;  %s1503_s0 = inlined_call_operand.vmem [shape: s32[16,7], index: 0, kind: input, shape index: {}]   ;;  %s1504_s1 = inlined_call_operand.vmem [shape: s32[16,28], index: 1, kind: input, shape index: {}]   ;;  %s1505_s2 = inlined_call_operand.vmem [shape: f32[50,32], index: 2, kind: input, shape index: {}]   ;;  %s1506_s3 = inlined_call_operand.vmem [shape: f32[10,64], index: 3, kind: input, shape index: {}]   ;;  %s1507_s4 = inlined_call_operand.vmem [shape: f32[64,50], index: 4, kind: input, shape index: {}]   ;;  %s1508_s5 = inlined_call_operand.hbm [shape: f32[1,256], index: 5, kind: output, shape index: {}]  }
   0x1   :  { %12 = vsyncpa [#allocation3 + $0x1], 0  ;;  %s1168_s18 = smov 0   ;;  %s1170_s19 = smov 0  }
   0x2   :  { %s1172_s20 = smov 0   ;;  %s1174_s21 = smov 0  }
   0x3   :  { %s1176_s22 = smov 0   ;;  %s1178_s23 = smov 0  }
   0x4 LB: > { %s873_s24 = sadd.s32 4294967295, %s1106_s23   ;;  %s874_s25 = sadd.s32 4294967294, %s1106_s23   ;;  %s1106_s23 = sphi %s1178_s23, %s18_s23   ;;  %s1102_s22 = sphi %s1176_s22, %s1515_s22   ;;  %s1098_s21 = sphi %s1174_s21, %s1514_s21   ;;  %s1094_s20 = sphi %s1172_s20, %s1513_s20   ;;  %s1090_s19 = sphi %s1170_s19, %s1512_s19   ;;  %s1086_s18 = sphi %s1168_s18, %s1511_s18  }
   0x5   : > { %s30_s26 = sadd.s32 1, %s1102_s22  ;;  %s156_s27 = sadd.s32 1, %s1094_s20 }
   0x6   : > { %p32_p0 = scmp.ge.s32.totalorder %s30_s26, 2  ;;  %p166_p1 = scmp.ne.s32.totalorder %s1094_s20, %s1090_s19 }
   0x7   : > { %p167_p2 = scmp.eq.s32.totalorder %s873_s24, 1  ;;  %p172_p3 = scmp.ne.s32.totalorder %s1090_s19, %s1086_s18 }
   0x8   : > { %s1517_s26 = smov (%p32_p0, %s30_s26), 0  ;;  %p173_p5 = scmp.eq.s32.totalorder %s874_s25, 1 }
   0x9   : > { %p1208_p4 = por %p167_p2, %p166_p1  ;;  %s153_s29 = ssub.s32 %s1102_s22, %s1517_s26 }
   0xa   : > { %p877_p6 = scmp.ge.s32.totalorder %s1106_s23, 1  ;;  %p154_p7 = scmp.eq.s32.totalorder %s153_s29, 0 }
   0xb   : > { %p1215_p8 = por %p173_p5, %p172_p3  ;;  %p218_p9 = scmp.lt.s32.totalorder %s1106_s23, 3 }
   0xc   : > { %s1221_s6 = scalar_select %p154_p7, %s1094_s20, %s156_s27  }
   0xd   : > { %p219_p10 = pnand %p877_p6, %p218_p9 }
   0xe   : > { %p251_p11 = scmp.lt.s32.totalorder (!%p219_p10), %s1098_s21, 1  ;;  %s1124_s13 = smov (!%p219_p10), 32  }
   0xf   : > { %222 = sbr.rel (%p219_p10) target bundleno = 943 (0x3af), region = 40  ;;  %s894_s27 = sshll.u32 (!%p219_p10), %s1098_s21, 3 }
  0x10   : > { %s248_s29 = sand.u32 (!%p219_p10), 1, %s1090_s19   ;;  %s794_s10 = scalar_lea.hbm (!%p219_p10), %s1508_s5, %s1098_s21 }
  0x11   : > { %s798_s12 = sshll.u32 (!%p219_p10), %s794_s10, 4  ;;  %s799_s12 = int_to_ptr.hbm [resolvable:$true] %s798_s12 }
  0x12   : > { %s1042_s15 = sshra.s32 (!%p219_p10), %s799_s12, 4  ;;  %s1043_s15 = int_to_ptr.hbm [resolvable:$true] %s1042_s15 }
  0x13   : > { %s1044_s16 = scalar_lea.hbm (!%p219_p10), %s1043_s15, 1  ;;  %p1049_p1 = scmp.lt.s32.totalorder (!%p219_p10), %s1043_s15, %s1508_s5 }
  0x14   : > { %v1108_v0 = vmov 2   ;;  %v1109_v1 = vmov 5   ;;  %s252_s7 = scalar_select %p251_p11, %s1098_s21, 1  ;;  %v1110_v2 = vmov 1   ;;  %v1111_v4 = vmov 3   ;;  %v316_v10 = vld [vmem:[%s1505_s2 + $0x28] sm:$0xff] }
  0x15   : > { %986 = vset.pattern.permute.xlu1 %v1108_v0  ;;  %988 = vset.pattern.permute.xlu2 %v1109_v1  ;;  %v1112_v5 = vmov 6   ;;  %v1113_v6 = vmov 4   ;;  %v1114_v8 = vmov 0   ;;  %v317_v9 = vld [vmem:[%s1505_s2 + $0x30] sm:$0x3]  ;;  %vm322_vm0 = vcmask 1041408   ;;  %p1045_p12 = scmp.ne.s32.totalorder %s1043_s15, %s1044_s16 }
  0x16   : > { %984 = vset.pattern.permute.xlu0 %v1110_v2  ;;  %s878_s8 = sshll.u32 %s252_s7, 3  ;;  %888 = vmatpush.msk.msra.mxu1 %vm322_vm0, %v317_v9  ;;  %v315_v11 = vld [vmem:[%s1505_s2 + $0x20] sm:$0xff]  ;;  %v314_v12 = vld [vmem:[%s1505_s2 + $0x18] sm:$0xff]  ;;  %v313_v13 = vld [vmem:[%s1505_s2 + $0x10] sm:$0xff]  ;;  %v268_v19 = vlaneseq  ;;  %v1115_v25 = vmov 0.0   ;;  %vm318_vm7 = vcmask 408576  }
  0x17   : > { %s254_s11 = scalar_lea.vmem %s1503_s0, %s878_s8  ;;  %s260_s14 = scalar_lea.vmem %s1504_s1, %s878_s8  ;;  %886 = vmatpush.msk.msra.mxu0 %vm322_vm0, %v317_v9  ;;  %v312_v14 = vld [vmem:[%s1505_s2 + $0x8] sm:$0xff]  ;;  %v311_v15 = vld [vmem:[%s1505_s2] sm:$0xff]  ;;  %vm383_vm8 = vcmask 80896   ;;  %v1116_v40 = vmov 9   ;;  %v1117_v41 = vmov 10   ;;  %v418_v42 = vld [vmem:[%s1507_s4 + $0x38] sm:$0xff] }
  0x18   : > { %v267_v3 = vld [vmem:[%s254_s11] sm:$0xff]  ;;  %359 = vmatpush.msra.mxu1 %v316_v10  ;;  %v376_v16 = vld [vmem:[%s1506_s3 + $0x8] sm:$0x3]  ;;  %v1270_v22 = vand.u32 127, %v268_v19  ;;  %431 = vmatpush.msra.mxu3 %v418_v42  ;;  %v1118_v43 = vmov 11   ;;  %v1119_v44 = vmov 12   ;;  %p1046_p13 = pnand %p1045_p12, %p1208_p4 }
  0x19   : > { %284 = vperm.xlu1 %986, %v267_v3   ;;  %297 = vperm.xlu2 %988, %v267_v3   ;;  %v1232_v7 = vld [vmem:[%s260_s14] sm:$0xff]  ;;  %v417_v45 = vld [vmem:[%s1507_s4 + $0x30] sm:$0xff]  ;;  %v416_v46 = vld [vmem:[%s1507_s4 + $0x28] sm:$0xff]  ;;  %v1120_v47 = vmov 13   ;;  %v1121_v48 = vmov 16   ;;  %v1122_v51 = vmov 17  }
  0x1a   : > { %271 = vperm.xlu0 %984, %v267_v3   ;;  %336 = vmatpush.msra.mxu0 %v316_v10  ;;  %v375_v17 = vld [vmem:[%s1506_s3] sm:$0xff]  ;;  %v414_v50 = vld [vmem:[%s1507_s4 + $0x18] sm:$0xff]  ;;  %v1123_v52 = vmov 21   ;;  %v1125_v54 = vmov 19   ;;  %v1126_v55 = vmov 7   ;;  %v413_v56 = vld [vmem:[%s1507_s4 + $0x10] sm:$0xff]  ;;  %p1047_p0 = pneg %p1046_p13 }
  0x1b   : > { %360 = vmatpush.msra.mxu1 %v315_v11  ;;  %891 = vmatpush.msk.msra.mxu2 %vm322_vm0, %v376_v16  ;;  %v415_v49 = vld [vmem:[%s1507_s4 + $0x20] sm:$0xff]  ;;  %v412_v57 = vld [vmem:[%s1507_s4 + $0x8] sm:$0xff]  ;;  %v1127_v58 = vmov 24   ;;  %v1128_v59 = vmov 20   ;;  %v1129_v61 = vmov 8   ;;  %v1130_v62 = vmov 26  }
  0x1c   : > { %337 = vmatpush.msra.mxu0 %v315_v11  ;;  %432 = vmatpush.msra.mxu3 %v417_v45  ;;  %v411_v60 = vld [vmem:[%s1507_s4] sm:$0xff]  ;;  %v1131_v63 = vmov 22   ;;  %vm381_vm10 = vcmask 261120   ;;  %v1136_v10 = vmov 18   ;;  %vm419_vm11 = vcmask 523264   ;;  %s249_s7 = scalar_lea.vmem [#allocation2], %s248_s29 }
  0x1d   : > { %361 = vmatpush.msra.mxu1 %v314_v12  ;;  %405 = vmatpush.msra.mxu2 %v375_v17  ;;  %266 = vst [vmem:[%s249_s7] sm:$0x1] %v1115_v25  ;;  %s796_s11 = sshll.u32 %s249_s7, 4  ;;  %s786_s14 = scalar_lea.sflag [#allocation3], %s248_s29  ;;  %s797_s11 = int_to_ptr.vmem [resolvable:$true] %s796_s11 }
  0x1e   : > { %338 = vmatpush.msra.mxu0 %v314_v12  ;;  %433 = vmatpush.msra.mxu3 %v416_v46  ;;  %v1137_v12 = vmov 23   ;;  %s1048_s21 = scalar_lea.hbm %s1508_s5, 2 }
  0x1f   : > { %362 = vmatpush.msra.mxu1 %v313_v13  ;;  %p1050_p2 = scmp.lt.s32.totalorder %s1048_s21, %s1044_s16 }
  0x20   : > { %339 = vmatpush.msra.mxu0 %v313_v13  ;;  %434 = vmatpush.msra.mxu3 %v415_v49 }
  0x21   : > { %987 = vset.pattern.permute.xlu1 %v1111_v4  ;;  %989 = vset.pattern.permute.xlu2 %v1112_v5  ;;  %p1051_p3 = por %p1050_p2, %p1049_p1 }
  0x22   : > { %290 = vperm.xlu1 %987, %v267_v3   ;;  %304 = vperm.xlu2 %989, %v267_v3  }
  0x23   : > { %985 = vset.pattern.permute.xlu0 %v1113_v6  ;;  %363 = vmatpush.msra.mxu1 %v312_v14  ;;  %p1052_p5 = pnand %p1051_p3, %p1047_p0 }
  0x24   : > { %277 = vperm.xlu0 %985, %v267_v3   ;;  %340 = vmatpush.msra.mxu0 %v312_v14 }
  0x25   : > { %364 = vmatpush.msra.mxu1 %v311_v15  ;;  %435 = vmatpush.msra.mxu3 %v414_v50 }
  0x26   : > { %341 = vmatpush.msra.mxu0 %v311_v15 }
  0x27   : > { %436 = vmatpush.msra.mxu3 %v413_v56 }
  0x29   : > { %437 = vmatpush.msra.mxu3 %v412_v57 }
  0x2a   : > { %990 = vset.pattern.permute.xlu1 %v1114_v8  ;;  %992 = vset.pattern.permute.xlu2 %v1110_v2  ;;  %v1134_v2 = vmov 25  }
  0x2b   : > { %370 = vperm.xlu1 %990, %v267_v3   ;;  %438 = vmatpush.msra.mxu3 %v411_v60  ;;  %v1135_v3 = vmov 15  }
  0x2c   : > { %991 = vset.pattern.permute.xlu0 %v1114_v8 }
  0x2d   : > { %445 = vperm.xlu0 %991, %v1232_v7  }
  0x33   : > { %994 = vset.pattern.permute.xlu1 %v1111_v4 }
  0x34   : > { %475 = vperm.xlu1 %994, %v1232_v7  }
  0x35   : > { %993 = vset.pattern.permute.xlu0 %v1108_v0  ;;  %v1132_v0 = vmov 14  }
  0x36   : > { %465 = vperm.xlu0 %993, %v1232_v7  }
  0x3c   : > { %997 = vset.pattern.permute.xlu1 %v1112_v5 }
  0x3d   : > { %505 = vperm.xlu1 %997, %v1232_v7  }
  0x3e   : > { %996 = vset.pattern.permute.xlu0 %v1109_v1  ;;  %v1133_v1 = vmov 27  }
  0x3f   : > { %495 = vperm.xlu0 %996, %v1232_v7  }
  0x45   : > { %1001 = vset.pattern.permute.xlu1 %v1117_v41 }
  0x46   : > { %545 = vperm.xlu1 %1001, %v1232_v7  }
  0x47   : > { %1000 = vset.pattern.permute.xlu0 %v1116_v40 }
  0x48   : > { %535 = vperm.xlu0 %1000, %v1232_v7  }
  0x4e   : > { %1003 = vset.pattern.permute.xlu1 %v1119_v44 }
  0x4f   : > { %565 = vperm.xlu1 %1003, %v1232_v7  }
  0x50   : > { %1002 = vset.pattern.permute.xlu0 %v1118_v43 }
  0x51   : > { %555 = vperm.xlu0 %1002, %v1232_v7  }
  0x57   : > { %1007 = vset.pattern.permute.xlu1 %v1121_v48 }
  0x58   : > { %605 = vperm.xlu1 %1007, %v1232_v7  }
  0x59   : > { %1004 = vset.pattern.permute.xlu0 %v1120_v47 }
  0x5a   : > { %575 = vperm.xlu0 %1004, %v1232_v7  }
  0x60   : > { %1012 = vset.pattern.permute.xlu1 %v1123_v52 }
  0x61   : > { %655 = vperm.xlu1 %1012, %v1232_v7  }
  0x62   : > { %1008 = vset.pattern.permute.xlu0 %v1122_v51 }
  0x63   : > { %615 = vperm.xlu0 %1008, %v1232_v7  }
  0x69   : > { %1015 = vset.pattern.permute.xlu1 %v1127_v58 }
  0x6a   : > { %685 = vperm.xlu1 %1015, %v1232_v7  }
  0x6b   : > { %1010 = vset.pattern.permute.xlu0 %v1125_v54 }
  0x6c   : > { %635 = vperm.xlu0 %1010, %v1232_v7  }
  0x72   : > { %1017 = vset.pattern.permute.xlu1 %v1130_v62 }
  0x73   : > { %v298_v18 = vpop.permute.xlu2 %297  ;;  %705 = vperm.xlu1 %1017, %v1232_v7  }
  0x74   : > { %vm299_vm3 = vcmp.eq.s32.totalorder %v1270_v22, %v298_v18  ;;  %1011 = vset.pattern.permute.xlu0 %v1128_v59 }
  0x75   : > { %v884_v31 = vsel %vm299_vm3, 1.0, %v1115_v25  ;;  %645 = vperm.xlu0 %1011, %v1232_v7  }
  0x7b   : > { %1018 = vset.pattern.permute.xlu1 %v1133_v1 }
  0x7c   : > { %v305_v23 = vpop.permute.xlu2 %304  ;;  %715 = vperm.xlu1 %1018, %v1232_v7  }
  0x7d   : > { %vm306_vm5 = vcmp.eq.s32.totalorder %v1270_v22, %v305_v23  ;;  %1013 = vset.pattern.permute.xlu0 %v1131_v63 }
  0x7e   : > { %v885_v32 = vsel %vm306_vm5, 1.0, %v1115_v25  ;;  %665 = vperm.xlu0 %1013, %v1232_v7  }
  0x86   : > { %1016 = vset.pattern.permute.xlu0 %v1134_v2 }
  0x87   : > { %695 = vperm.xlu0 %1016, %v1232_v7  }
  0x8b   : > { %v285_v20 = vpop.permute.xlu1 %284 }
  0x8c   : > { %v272_v21 = vpop.permute.xlu0 %271  ;;  %vm286_vm1 = vcmp.eq.s32.totalorder %v1270_v22, %v285_v20 }
  0x8d   : > { %vm273_vm2 = vcmp.eq.s32.totalorder %v1270_v22, %v272_v21  ;;  %v882_v26 = vsel %vm286_vm1, 1.0, %v1115_v25 }
  0x8e   : > { %v880_v28 = vsel %vm273_vm2, 1.0, %v1115_v25 }
  0x8f   : > { %1019 = vset.pattern.permute.xlu0 %v1133_v1 }
  0x94   : > { %v291_v24 = vpop.permute.xlu1 %290 }
  0x95   : > { %vm292_vm4 = vcmp.eq.s32.totalorder %v1270_v22, %v291_v24 }
  0x96   : > { %v883_v27 = vsel %vm292_vm4, 1.0, %v1115_v25  ;;  %v278_v29 = vpop.permute.xlu0 %277 }
  0x97   : > { %v295_v30 = vadd.f32 %v883_v27, %v882_v26  ;;  %vm279_vm6 = vcmp.eq.s32.totalorder %v1270_v22, %v278_v29 }
  0x98   : > { %v881_v33 = vsel %vm279_vm6, 1.0, %v1115_v25 }
  0x99   : > { %v302_v34 = vadd.f32 %v884_v31, %v295_v30  ;;  %v282_v35 = vadd.f32 %v881_v33, %v880_v28 }
  0x9b   : > { %v309_v36 = vadd.f32 %v885_v32, %v302_v34  ;;  %887 = vmatmul.msk.f32.vlgmr.msra.gmra.mxu0 %vm318_vm7, %v282_v35 }
  0x9d   : > { %v310_v37 = vmul.f32 0.5, %v309_v36  ;;  %v371_v38 = vpop.permute.xlu1 %370 }
  0x9e   : > { %vm372_vm9 = vcmp.eq.s32.totalorder %v1270_v22, %v371_v38 }
  0x9f   : > { %889 = vmatmul.msk.f32.vlgmr.msra.gmra.mxu1 %vm318_vm7, %v310_v37  ;;  %v890_v39 = vsel %vm372_vm9, 1.0, %v1115_v25  ;;  %v446_v13 = vpop.permute.xlu0 %445 }
  0xa0   : > { %892 = vmatmul.msk.f32.vlgmr.msra.gmra.mxu2 %vm383_vm8, %v890_v39  ;;  %vm447_vm13 = vcmp.eq.s32.totalorder %v1270_v22, %v446_v13 }
  0xa6   : > { %v476_v14 = vpop.permute.xlu1 %475 }
  0xa7   : > { %vm477_vm15 = vcmp.eq.s32.totalorder %v1270_v22, %v476_v14 }
  0xa8   : > { %v466_v15 = vpop.permute.xlu0 %465 }
  0xa9   : > { %vm467_vm12 = vcmp.eq.s32.totalorder %v1270_v22, %v466_v15 }
  0xaf   : > { %v506_v17 = vpop.permute.xlu1 %505 }
  0xb0   : > { %vm507_vm1 = vcmp.eq.s32.totalorder %v1270_v22, %v506_v17 }
  0xb1   : > { %v496_v18 = vpop.permute.xlu0 %495 }
  0xb2   : > { %vm497_vm2 = vcmp.eq.s32.totalorder %v1270_v22, %v496_v18 }
  0xb8   : > { %v1336_v21 = vpop.permute.xlu1 %545 }
  0xb9   : > { %vm547_vm9 = vcmp.eq.s32.totalorder %v1270_v22, %v1336_v21 }
  0xba   : > { %v536_v23 = vpop.permute.xlu0 %535 }
  0xbb   : > { %vm537_vm5 = vcmp.eq.s32.totalorder %v1270_v22, %v536_v23 }
  0xc1   : > { %v1338_v26 = vpop.permute.xlu1 %565 }
  0xc3   : > { %v1340_v27 = vpop.permute.xlu0 %555 }
  0xca   : > { %v606_v32 = vpop.permute.xlu1 %605 }
  0xcb   : > { %vm607_vm8 = vcmp.eq.s32.totalorder %v1270_v22, %v606_v32 }
  0xcc   : > { %v576_v36 = vpop.permute.xlu0 %575 }
  0xd3   : > { %v656_v44 = vpop.permute.xlu1 %655 }
  0xd5   : > { %v616_v48 = vpop.permute.xlu0 %615 }
  0xdc   : > { %v686_v52 = vpop.permute.xlu1 %685 }
  0xde   : > { %v636_v58 = vpop.permute.xlu0 %635 }
  0xe5   : > { %v1386_v62 = vpop.permute.xlu1 %705 }
 0x118   : > { %v343_v5 = vpop.f32.mrf.mxu0 }
 0x11c   : > { %v366_v53 = vpop.f32.mrf.mxu1 }
 0x11d   : > { %378 = vrot.lane.b32.xlu2 %v366_v53, %s1124_s13 }
 0x123   : > { %v407_v4 = vpop.f32.mrf.mxu2 }
 0x125   : > { %455 = vperm.xlu2 %992, %v1232_v7  }
 0x12d   : > { %995 = vset.pattern.permute.xlu2 %v1113_v6 }
 0x12e   : > { %485 = vperm.xlu2 %995, %v1232_v7  }
 0x136   : > { %998 = vset.pattern.permute.xlu2 %v1126_v55 }
 0x137   : > { %515 = vperm.xlu2 %998, %v1232_v7  }
 0x13f   : > { %999 = vset.pattern.permute.xlu2 %v1129_v61 }
 0x140   : > { %525 = vperm.xlu2 %999, %v1232_v7  }
 0x148   : > { %1005 = vset.pattern.permute.xlu2 %v1132_v0 }
 0x149   : > { %585 = vperm.xlu2 %1005, %v1232_v7  }
 0x151   : > { %1006 = vset.pattern.permute.xlu2 %v1135_v3  ;;  %v646_v3 = vpop.permute.xlu0 %645 }
 0x152   : > { %595 = vperm.xlu2 %1006, %v1232_v7  }
 0x15a   : > { %1009 = vset.pattern.permute.xlu2 %v1136_v10 }
 0x15b   : > { %625 = vperm.xlu2 %1009, %v1232_v7  }
 0x163   : > { %1014 = vset.pattern.permute.xlu2 %v1137_v12  ;;  %v666_v12 = vpop.permute.xlu0 %665 }
 0x164   : > { %675 = vperm.xlu2 %1014, %v1232_v7  }
 0x177   : > { %v379_v6 = vpop.permute.xlu2 %378 }
 0x178   : > { %v382_v8 = vsel %vm381_vm10, %v343_v5, %v379_v6  ;;  %vm577_vm10 = vcmp.eq.s32.totalorder %v1270_v22, %v576_v36 }
 0x179   : > { %v408_v9 = vadd.f32 %v407_v4, %v382_v8  ;;  %v716_v8 = vpop.permute.xlu1 %715 }
 0x17b   : > { %v410_v11 = vmul.f32 0.33333334, %v408_v9 }
 0x17d   : > { %893 = vmatmul.msk.f32.vlgmr.msra.gmra.mxu3 %vm419_vm11, %v410_v11  ;;  %vm657_vm11 = vcmp.eq.s32.totalorder %v1270_v22, %v656_v44 }
 0x17f   : > { %v456_v16 = vpop.permute.xlu2 %455 }
 0x180   : > { %vm457_vm14 = vcmp.eq.s32.totalorder %v1270_v22, %v456_v16 }
 0x188   : > { %v486_v20 = vpop.permute.xlu2 %485 }
 0x189   : > { %vm487_vm0 = vcmp.eq.s32.totalorder %v1270_v22, %v486_v20 }
 0x191   : > { %v516_v24 = vpop.permute.xlu2 %515 }
 0x192   : > { %vm517_vm3 = vcmp.eq.s32.totalorder %v1270_v22, %v516_v24  ;;  %v696_v24 = vpop.permute.xlu0 %695 }
 0x19a   : > { %v526_v31 = vpop.permute.xlu2 %525 }
 0x19b   : > { %vm527_vm6 = vcmp.eq.s32.totalorder %v1270_v22, %v526_v31 }
 0x1a3   : > { %v586_v43 = vpop.permute.xlu2 %585 }
 0x1a4   : > { %vm587_vm4 = vcmp.eq.s32.totalorder %v1270_v22, %v586_v43 }
 0x1ac   : > { %v596_v16 = vpop.permute.xlu2 %595 }
 0x200   : > { %v1345_v7 = vpop.f32.mrf.mxu3 }
 0x201   : > { %v458_v28 = vsel %vm457_vm14, %v1345_v7, 0.0  ;;  %v448_v29 = vsel %vm447_vm13, %v1345_v7, 0.0  ;;  %v468_v30 = vsel %vm467_vm12, %v1345_v7, 0.0  ;;  %v478_v37 = vsel %vm477_vm15, %v1345_v7, 0.0 }
 0x202   : > { %v459_v33 = vsel %vm318_vm7, %v458_v28, 0.0  ;;  %v449_v34 = vsel %vm318_vm7, %v448_v29, 0.0  ;;  %v469_v35 = vsel %vm318_vm7, %v468_v30, 0.0  ;;  %v488_v38 = vsel %vm487_vm0, %v1345_v7, 0.0  ;;  %v626_v28 = vpop.permute.xlu2 %625 }
 0x203   : > { %460 = vadd.xlane.f32.xlu2 %v459_v33  ;;  %450 = vadd.xlane.f32.xlu1 %v449_v34  ;;  %v508_v39 = vsel %vm507_vm1, %v1345_v7, 0.0  ;;  %v479_v40 = vsel %vm318_vm7, %v478_v37, 0.0  ;;  %v489_v41 = vsel %vm318_vm7, %v488_v38, 0.0  ;;  %v518_v45 = vsel %vm517_vm3, %v1345_v7, 0.0 }
 0x204   : > { %470 = vadd.xlane.f32.xlu0 %v469_v35  ;;  %v509_v42 = vsel %vm318_vm7, %v508_v39, 0.0  ;;  %v498_v46 = vsel %vm497_vm2, %v1345_v7, 0.0  ;;  %v588_v47 = vsel %vm587_vm4, %v1345_v7, 0.0  ;;  %v519_v49 = vsel %vm318_vm7, %v518_v45, 0.0 }
 0x205   : > { %v499_v50 = vsel %vm318_vm7, %v498_v46, 0.0  ;;  %v589_v51 = vsel %vm318_vm7, %v588_v47, 0.0  ;;  %v528_v53 = vsel %vm527_vm6, %v1345_v7, 0.0  ;;  %v538_v54 = vsel %vm537_vm5, %v1345_v7, 0.0 }
 0x206   : > { %v608_v55 = vsel %vm607_vm8, %v1345_v7, 0.0  ;;  %v529_v56 = vsel %vm318_vm7, %v528_v53, 0.0  ;;  %v539_v57 = vsel %vm318_vm7, %v538_v54, 0.0  ;;  %v548_v60 = vsel %vm547_vm9, %v1345_v7, 0.0 }
 0x207   : > { %v609_v59 = vsel %vm318_vm7, %v608_v55, 0.0  ;;  %v578_v61 = vsel %vm577_vm10, %v1345_v7, 0.0  ;;  %v658_v63 = vsel %vm657_vm11, %v1345_v7, 0.0  ;;  %v549_v0 = vsel %vm318_vm7, %v548_v60, 0.0 }
 0x208   : > { %v579_v1 = vsel %vm318_vm7, %v578_v61, 0.0  ;;  %v659_v2 = vsel %vm318_vm7, %v658_v63, 0.0  ;;  %vm557_vm12 = vcmp.eq.s32.totalorder %v1270_v22, %v1340_v27  ;;  %vm617_vm13 = vcmp.eq.s32.totalorder %v1270_v22, %v616_v48 }
 0x209   : > { %vm687_vm14 = vcmp.eq.s32.totalorder %v1270_v22, %v686_v52  ;;  %v558_v4 = vsel %vm557_vm12, %v1345_v7, 0.0  ;;  %v618_v5 = vsel %vm617_vm13, %v1345_v7, 0.0  ;;  %vm567_vm15 = vcmp.eq.s32.totalorder %v1270_v22, %v1338_v26 }
 0x20a   : > { %v688_v6 = vsel %vm687_vm14, %v1345_v7, 0.0  ;;  %v559_v9 = vsel %vm318_vm7, %v558_v4, 0.0  ;;  %v619_v10 = vsel %vm318_vm7, %v618_v5, 0.0  ;;  %vm637_vm0 = vcmp.eq.s32.totalorder %v1270_v22, %v636_v58  ;;  %v676_v34 = vpop.permute.xlu2 %675 }
 0x20b   : > { %480 = vadd.xlane.f32.xlu2 %v479_v40  ;;  %490 = vadd.xlane.f32.xlu1 %v489_v41  ;;  %v689_v11 = vsel %vm318_vm7, %v688_v6, 0.0  ;;  %vm717_vm1 = vcmp.eq.s32.totalorder %v1270_v22, %v716_v8  ;;  %v568_v13 = vsel %vm567_vm15, %v1345_v7, 0.0  ;;  %v638_v14 = vsel %vm637_vm0, %v1345_v7, 0.0 }
 0x20c   : > { %510 = vadd.xlane.f32.xlu0 %v509_v42  ;;  %v718_v15 = vsel %vm717_vm1, %v1345_v7, 0.0  ;;  %v569_v17 = vsel %vm318_vm7, %v568_v13, 0.0  ;;  %v639_v18 = vsel %vm318_vm7, %v638_v14, 0.0  ;;  %vm597_vm2 = vcmp.eq.s32.totalorder %v1270_v22, %v596_v16 }
 0x20d   : > { %v719_v20 = vsel %vm318_vm7, %v718_v15, 0.0  ;;  %vm667_vm3 = vcmp.eq.s32.totalorder %v1270_v22, %v666_v12  ;;  %v598_v21 = vsel %vm597_vm2, %v1345_v7, 0.0  ;;  %vm627_vm4 = vcmp.eq.s32.totalorder %v1270_v22, %v626_v28 }
 0x20e   : > { %v668_v23 = vsel %vm667_vm3, %v1345_v7, 0.0  ;;  %v599_v26 = vsel %vm318_vm7, %v598_v21, 0.0  ;;  %vm697_vm5 = vcmp.eq.s32.totalorder %v1270_v22, %v696_v24  ;;  %v628_v29 = vsel %vm627_vm4, %v1345_v7, 0.0 }
 0x20f   : > { %v669_v27 = vsel %vm318_vm7, %v668_v23, 0.0  ;;  %v698_v30 = vsel %vm697_vm5, %v1345_v7, 0.0  ;;  %v629_v31 = vsel %vm318_vm7, %v628_v29, 0.0  ;;  %vm647_vm6 = vcmp.eq.s32.totalorder %v1270_v22, %v646_v3 }
 0x210   : > { %v699_v32 = vsel %vm318_vm7, %v698_v30, 0.0  ;;  %v648_v33 = vsel %vm647_vm6, %v1345_v7, 0.0  ;;  %vm677_vm8 = vcmp.eq.s32.totalorder %v1270_v22, %v676_v34  ;;  %vm707_vm9 = vcmp.eq.s32.totalorder %v1270_v22, %v1386_v62 }
 0x211   : > { %v649_v35 = vsel %vm318_vm7, %v648_v33, 0.0  ;;  %v678_v36 = vsel %vm677_vm8, %v1345_v7, 0.0  ;;  %v708_v38 = vsel %vm707_vm9, %v1345_v7, 0.0  ;;  %vm452_vm10 = vcmp.eq.s32.totalorder %v1270_v22, 0 }
 0x212   : > { %v679_v37 = vsel %vm318_vm7, %v678_v36, 0.0  ;;  %v709_v39 = vsel %vm318_vm7, %v708_v38, 0.0  ;;  %vm462_vm11 = vcmp.eq.s32.totalorder %v1270_v22, 1  ;;  %vm472_vm12 = vcmp.eq.s32.totalorder %v1270_v22, 2 }
 0x213   : > { %520 = vadd.xlane.f32.xlu1 %v519_v49  ;;  %500 = vadd.xlane.f32.xlu2 %v499_v50  ;;  %vm482_vm7 = vcmp.eq.s32.totalorder %v1270_v22, 3  ;;  %vm492_vm13 = vcmp.eq.s32.totalorder %v1270_v22, 4  ;;  %vm502_vm14 = vcmp.eq.s32.totalorder %v1270_v22, 5  ;;  %vm512_vm15 = vcmp.eq.s32.totalorder %v1270_v22, 6 }
 0x214   : > { %590 = vadd.xlane.f32.xlu0 %v589_v51  ;;  %vm522_vm0 = vcmp.eq.s32.totalorder %v1270_v22, 7  ;;  %vm532_vm1 = vcmp.eq.s32.totalorder %v1270_v22, 8  ;;  %vm542_vm2 = vcmp.eq.s32.totalorder %v1270_v22, 9  ;;  %vm552_vm3 = vcmp.eq.s32.totalorder %v1270_v22, 10 }
 0x215   : > { %vm562_vm4 = vcmp.eq.s32.totalorder %v1270_v22, 11  ;;  %vm572_vm5 = vcmp.eq.s32.totalorder %v1270_v22, 12  ;;  %vm582_vm6 = vcmp.eq.s32.totalorder %v1270_v22, 13  ;;  %vm592_vm8 = vcmp.eq.s32.totalorder %v1270_v22, 14 }
 0x216   : > { %vm602_vm9 = vcmp.eq.s32.totalorder %v1270_v22, 15 }
 0x21b   : > { %530 = vadd.xlane.f32.xlu2 %v529_v56  ;;  %540 = vadd.xlane.f32.xlu1 %v539_v57 }
 0x21c   : > { %610 = vadd.xlane.f32.xlu0 %v609_v59 }
 0x223   : > { %550 = vadd.xlane.f32.xlu2 %v549_v0  ;;  %580 = vadd.xlane.f32.xlu1 %v579_v1 }
 0x224   : > { %660 = vadd.xlane.f32.xlu0 %v659_v2 }
 0x22b   : > { %560 = vadd.xlane.f32.xlu2 %v559_v9  ;;  %620 = vadd.xlane.f32.xlu1 %v619_v10 }
 0x22c   : > { %690 = vadd.xlane.f32.xlu0 %v689_v11 }
 0x233   : > { %570 = vadd.xlane.f32.xlu2 %v569_v17  ;;  %640 = vadd.xlane.f32.xlu1 %v639_v18 }
 0x234   : > { %720 = vadd.xlane.f32.xlu0 %v719_v20 }
 0x23b   : > { %600 = vadd.xlane.f32.xlu2 %v599_v26  ;;  %670 = vadd.xlane.f32.xlu1 %v669_v27 }
 0x243   : > { %630 = vadd.xlane.f32.xlu2 %v629_v31  ;;  %700 = vadd.xlane.f32.xlu1 %v699_v32 }
 0x24b   : > { %650 = vadd.xlane.f32.xlu2 %v649_v35 }
 0x253   : > { %680 = vadd.xlane.f32.xlu2 %v679_v37 }
 0x25b   : > { %710 = vadd.xlane.f32.xlu2 %v709_v39 }
 0x276   : > { %v461_v40 = vpop.xlane.xlu2 %460  ;;  %v451_v41 = vpop.xlane.xlu1 %450 }
 0x277   : > { %v471_v47 = vpop.xlane.xlu0 %470  ;;  %v453_v49 = vsel %vm452_vm10, %v451_v41, 0.0  ;;  %vm612_vm10 = vcmp.eq.s32.totalorder %v1270_v22, 16 }
 0x278   : > { %v463_v50 = vsel %vm462_vm11, %v461_v40, %v453_v49  ;;  %vm622_vm11 = vcmp.eq.s32.totalorder %v1270_v22, 17 }
 0x279   : > { %v473_v51 = vsel %vm472_vm12, %v471_v47, %v463_v50  ;;  %vm632_vm12 = vcmp.eq.s32.totalorder %v1270_v22, 18 }
 0x27e   : > { %v481_v42 = vpop.xlane.xlu2 %480  ;;  %v491_v44 = vpop.xlane.xlu1 %490 }
 0x27f   : > { %v511_v52 = vpop.xlane.xlu0 %510  ;;  %v483_v53 = vsel %vm482_vm7, %v481_v42, %v473_v51  ;;  %vm642_vm7 = vcmp.eq.s32.totalorder %v1270_v22, 19 }
 0x280   : > { %v493_v55 = vsel %vm492_vm13, %v491_v44, %v483_v53  ;;  %vm652_vm13 = vcmp.eq.s32.totalorder %v1270_v22, 20 }
 0x286   : > { %v501_v43 = vpop.xlane.xlu2 %500  ;;  %v521_v46 = vpop.xlane.xlu1 %520 }
 0x287   : > { %v503_v56 = vsel %vm502_vm14, %v501_v43, %v493_v55  ;;  %v591_v60 = vpop.xlane.xlu0 %590  ;;  %vm662_vm14 = vcmp.eq.s32.totalorder %v1270_v22, 21 }
 0x288   : > { %v513_v57 = vsel %vm512_vm15, %v511_v52, %v503_v56  ;;  %vm672_vm15 = vcmp.eq.s32.totalorder %v1270_v22, 22 }
 0x289   : > { %v523_v61 = vsel %vm522_vm0, %v521_v46, %v513_v57  ;;  %vm682_vm0 = vcmp.eq.s32.totalorder %v1270_v22, 23 }
 0x28e   : > { %v531_v45 = vpop.xlane.xlu2 %530  ;;  %v541_v7 = vpop.xlane.xlu1 %540 }
 0x28f   : > { %v533_v62 = vsel %vm532_vm1, %v531_v45, %v523_v61  ;;  %v611_v5 = vpop.xlane.xlu0 %610  ;;  %vm692_vm1 = vcmp.eq.s32.totalorder %v1270_v22, 24  ;;  %v765_v61 = vshrl.u32 %v268_v19, 7 }
 0x290   : > { %v543_v63 = vsel %vm542_vm2, %v541_v7, %v533_v62  ;;  %vm702_vm2 = vcmp.eq.s32.totalorder %v1270_v22, 25 }
 0x296   : > { %v551_v48 = vpop.xlane.xlu2 %550  ;;  %v581_v58 = vpop.xlane.xlu1 %580 }
 0x297   : > { %v553_v0 = vsel %vm552_vm3, %v551_v48, %v543_v63  ;;  %v661_v13 = vpop.xlane.xlu0 %660  ;;  %vm712_vm3 = vcmp.eq.s32.totalorder %v1270_v22, 26  ;;  %v766_v63 = vstv %s894_s27 }
 0x29e   : > { %v561_v54 = vpop.xlane.xlu2 %560  ;;  %v621_v3 = vpop.xlane.xlu1 %620 }
 0x29f   : > { %v563_v1 = vsel %vm562_vm4, %v561_v54, %v553_v0  ;;  %v691_v23 = vpop.xlane.xlu0 %690  ;;  %vm722_vm4 = vcmp.eq.s32.totalorder %v1270_v22, 27 }
 0x2a6   : > { %v571_v59 = vpop.xlane.xlu2 %570  ;;  %v641_v11 = vpop.xlane.xlu1 %640 }
 0x2a7   : > { %v573_v4 = vsel %vm572_vm5, %v571_v59, %v563_v1  ;;  %v721_v32 = vpop.xlane.xlu0 %720 }
 0x2a8   : > { %v583_v6 = vsel %vm582_vm6, %v581_v58, %v573_v4 }
 0x2a9   : > { %v593_v8 = vsel %vm592_vm8, %v591_v60, %v583_v6  ;;  %vm759_vm8 = vcmp.lt.s32.totalorder %v1270_v22, 3 }
 0x2ae   : > { %v601_v2 = vpop.xlane.xlu2 %600  ;;  %v671_v20 = vpop.xlane.xlu1 %670 }
 0x2af   : > { %v603_v9 = vsel %vm602_vm9, %v601_v2, %v593_v8 }
 0x2b0   : > { %v613_v12 = vsel %vm612_vm10, %v611_v5, %v603_v9  ;;  %vm770_vm10 = vcmask 228352  }
 0x2b1   : > { %v623_v14 = vsel %vm622_vm11, %v621_v3, %v613_v12  ;;  %v767_v3 = vadd.s32 %v766_v63, %v765_v61 }
 0x2b3   : > { %vm768_vm9 = vcmp.lt.s32.totalorder %v767_v3, 2 }
 0x2b6   : > { %v631_v10 = vpop.xlane.xlu2 %630  ;;  %v701_v29 = vpop.xlane.xlu1 %700 }
 0x2b7   : > { %v633_v15 = vsel %vm632_vm12, %v631_v10, %v623_v14 }
 0x2b8   : > { %v643_v17 = vsel %vm642_vm7, %v641_v11, %v633_v15 }
 0x2be   : > { %v651_v16 = vpop.xlane.xlu2 %650 }
 0x2bf   : > { %v653_v18 = vsel %vm652_vm13, %v651_v16, %v643_v17  ;;  %v781_v16 = vld [vmem:[%s249_s7] sm:$0x1] }
 0x2c0   : > { %v663_v21 = vsel %vm662_vm14, %v661_v13, %v653_v18 }
 0x2c1   : > { %v673_v26 = vsel %vm672_vm15, %v671_v20, %v663_v21 }
 0x2c6   : > { %v681_v24 = vpop.xlane.xlu2 %680 }
 0x2c7   : > { %v683_v27 = vsel %vm682_vm0, %v681_v24, %v673_v26 }
 0x2c8   : > { %v693_v28 = vsel %vm692_vm1, %v691_v23, %v683_v27 }
 0x2c9   : > { %v703_v31 = vsel %vm702_vm2, %v701_v29, %v693_v28 }
 0x2ce   : > { %v711_v30 = vpop.xlane.xlu2 %710 }
 0x2cf   : > { %v713_v33 = vsel %vm712_vm3, %v711_v30, %v703_v31 }
 0x2d0   : > { %v723_v34 = vsel %vm722_vm4, %v721_v32, %v713_v33 }
 0x2d1   : > { %v724_v35 = vsub.f32 0.0, %v723_v34  ;;  %v743_v36 = vand.u32 2147483647, %v723_v34  ;;  %v742_v55 = vmax.f32 %v723_v34, 0.0 }
 0x2d3   : > { %v726_v37 = vand.u32 2147483647, %v724_v35  ;;  %v744_v38 = vsub.f32 0.0, %v743_v36  ;;  %v725_v59 = vmax.f32 %v724_v35, 0.0 }
 0x2d5   : > { %v727_v39 = vsub.f32 0.0, %v726_v37  ;;  %v745_v40 = vmul.f32 1.442695, %v744_v38 }
 0x2d7   : > { %v728_v41 = vmul.f32 1.442695, %v727_v39  ;;  %1020 = vpow2.f32 %v745_v40 }
 0x2d9   : > { %1022 = vpow2.f32 %v728_v41 }
 0x2dd   : > { %v1021_v42 = vpop.eup %1020 }
 0x2de   : > { %v747_v43 = vadd.f32 1.0, %v1021_v42  ;;  %v750_v45 = vmul.f32 -0.5, %v1021_v42  ;;  %v753_v49 = vand.u32 2147483647, %v1021_v42 }
 0x2df   : > { %v1023_v44 = vpop.eup %1022 }
 0x2e0   : > { %1024 = vlog2.f32 %v747_v43  ;;  %v730_v46 = vadd.f32 1.0, %v1023_v44  ;;  %v733_v47 = vmul.f32 -0.5, %v1023_v44  ;;  %v751_v48 = vadd.f32 1.0, %v750_v45 }
 0x2e1   : > { %v736_v51 = vand.u32 2147483647, %v1023_v44  ;;  %vm754_vm5 = vcmp.lt.f32.partialorder %v753_v49, 0.0004427343 }
 0x2e2   : > { %1026 = vlog2.f32 %v730_v46  ;;  %v734_v50 = vadd.f32 1.0, %v733_v47  ;;  %v752_v53 = vmul.f32 %v1021_v42, %v751_v48 }
 0x2e3   : > { %vm737_vm6 = vcmp.lt.f32.partialorder %v736_v51, 0.0004427343 }
 0x2e4   : > { %v735_v58 = vmul.f32 %v1023_v44, %v734_v50 }
 0x2e6   : > { %v1025_v7 = vpop.eup %1024 }
 0x2e7   : > { %v749_v52 = vmul.f32 0.6931472, %v1025_v7 }
 0x2e8   : > { %v1027_v54 = vpop.eup %1026 }
 0x2e9   : > { %v755_v56 = vsel %vm754_vm5, %v752_v53, %v749_v52  ;;  %v732_v57 = vmul.f32 0.6931472, %v1027_v54 }
 0x2ea   : > { %v756_v60 = vadd.f32 %v755_v56, %v742_v55 }
 0x2eb   : > { %v738_v62 = vsel %vm737_vm6, %v735_v58, %v732_v57 }
 0x2ec   : > { %v739_v0 = vadd.f32 %v738_v62, %v725_v59  ;;  %v757_v1 = vsub.f32 0.0, %v756_v60 }
 0x2ee   : > { %v740_v2 = vsub.f32 0.0, %v739_v0  ;;  %v758_v5 = vmax.f32 %v757_v1, -100.0 }
 0x2f0   : > { %v741_v4 = vmax.f32 %v740_v2, -100.0 }
 0x2f2   : > { %v760_v6 = vsel %vm759_vm8, %v741_v4, %v758_v5 }
 0x2f3   : > { %v761_v8 = vsub.f32 0.0, %v760_v6 }
 0x2f5   : > { %v769_v9 = vsel %vm768_vm9, %v761_v8, 0.0 }
 0x2f6   : > { %v771_v10 = vsel %vm770_vm10, %v769_v9, 0.0 }
 0x2f7   : > { %772 = vadd.xlane.f32.xlu1 %v771_v10 }
 0x36a   : > { %v773_v19 = vpop.xlane.xlu1 %772 }
 0x36b   : > { %v774_v11 = vrot.slane %v773_v19, 4 }
 0x36d   : > { %v775_v12 = vadd.f32 %v774_v11, %v773_v19 }
 0x36f   : > { %v776_v13 = vrot.slane %v775_v12, 2 }
 0x371   : > { %v777_v14 = vadd.f32 %v776_v13, %v775_v12 }
 0x373   : > { %v778_v22 = vrot.slane %v777_v14, 1 }
 0x375   : > { %v779_v15 = vadd.f32 %v778_v22, %v777_v14 }
 0x377   : > { %897 = vpush %v779_v15 }
 0x3a8   : > { %s898_s13 = spop %897 }
 0x3a9   : > { %v782_v17 = vstv %s898_s13 }
 0x3aa   : > { %v783_v18 = vadd.f32 %v782_v17, %v781_v16 }
 0x3ac   : > { %784 = vst [vmem:[%s249_s7] sm:$0x1] %v783_v18 }
 0x3ad   : > { %1055 = shalt.err (!%p1052_p5)
}
 0x3ae   : > { %899 = dma.vmem_to_hbm [thread:$0]  (%p1208_p4), %s797_s11, 16, %s799_s12, %s786_s14  }
 0x3af PF: > { %p905_p6 = scmp.ge.s32.totalorder %s1106_s23, 2  ;;  %s810_s29 = sand.u32 1, %s1086_s18  }
 0x3b0   : > { %s811_s7 = scalar_lea.sflag [#allocation3], %s810_s29 }
 0x3b1   : > { %p902_p7 = pnand %p905_p6, %p1215_p8 }
 0x3b3   : > { %p903_p9 = pneg %p902_p7 }
 0x3b5   : > { %1081 = dma.done.wait (%p903_p9), %s811_s7, 16  }
 0x3b6   : > { %1083 = vsyncadd (%p903_p9), %s811_s7, 4294967280  ;;  %s18_s23 = sadd.s32 1, %s1106_s23   ;;  %s1511_s18 = smov %s1090_s19 }
 0x3b7   : > { %p15_p10 = scmp.ge.s32.totalorder %s18_s23, 4   ;;  %s1512_s19 = smov %s1094_s20 }
 0x3b8   : > { %s1513_s20 = smov %s1221_s6  ;;  %s1514_s21 = smov %s1102_s22 }
 0x3b9   : > { %s1515_s22 = smov %s1517_s26  ;;  %17 = sbr.rel (!%p15_p10) target bundleno = 4 (0x4), region = 82 }
 0x3be   :  { %816 = vsyncpa [#allocation3], 1 }
 0x3bf   :  { %818 = vsyncpa [#allocation3 + $0x1], 1 }

// kernel: tpu_custom_call.1
= control target key start
LH: loop header
LB: loop body
LE: loop exit
PB: predicated region body
PF: predicated region fallthrough
CT: control target
= control target key end

     0   :  { %10 = vsyncpa [#allocation3], 0  ;;  %s1503_s0 = inlined_call_operand.vmem [shape: s32[16,7], index: 0, kind: input, shape index: {}]   ;;  %s1504_s1 = inlined_call_operand.vmem [shape: s32[16,28], index: 1, kind: input, shape index: {}]   ;;  %s1505_s2 = inlined_call_operand.vmem [shape: f32[50,32], index: 2, kind: input, shape index: {}]   ;;  %s1506_s3 = inlined_call_operand.vmem [shape: f32[10,64], index: 3, kind: input, shape index: {}]   ;;  %s1507_s4 = inlined_call_operand.vmem [shape: f32[64,50], index: 4, kind: input, shape index: {}]   ;;  %s1508_s5 = inlined_call_operand.hbm [shape: f32[1,256], index: 5, kind: output, shape index: {}]  }
   0x1   :  { %12 = vsyncpa [#allocation3 + $0x1], 0  ;;  %s1168_s18 = smov 0   ;;  %s1170_s19 = smov 0  }
   0x2   :  { %s1172_s20 = smov 0   ;;  %s1174_s21 = smov 0  }
   0x3   :  { %s1176_s22 = smov 0   ;;  %s1178_s23 = smov 0  }
   0x4 LB: > { %s873_s24 = sadd.s32 4294967295, %s1106_s23   ;;  %s874_s25 = sadd.s32 4294967294, %s1106_s23   ;;  %s1106_s23 = sphi %s1178_s23, %s18_s23   ;;  %s1102_s22 = sphi %s1176_s22, %s1515_s22   ;;  %s1098_s21 = sphi %s1174_s21, %s1514_s21   ;;  %s1094_s20 = sphi %s1172_s20, %s1513_s20   ;;  %s1090_s19 = sphi %s1170_s19, %s1512_s19   ;;  %s1086_s18 = sphi %s1168_s18, %s1511_s18  }
   0x5   : > { %s30_s26 = sadd.s32 1, %s1102_s22  ;;  %s156_s27 = sadd.s32 1, %s1094_s20 }
   0x6   : > { %p32_p0 = scmp.ge.s32.totalorder %s30_s26, 2  ;;  %p166_p1 = scmp.ne.s32.totalorder %s1094_s20, %s1090_s19 }
   0x7   : > { %p167_p2 = scmp.eq.s32.totalorder %s873_s24, 1  ;;  %p172_p3 = scmp.ne.s32.totalorder %s1090_s19, %s1086_s18 }
   0x8   : > { %s1517_s26 = smov (%p32_p0, %s30_s26), 0  ;;  %p173_p5 = scmp.eq.s32.totalorder %s874_s25, 1 }
   0x9   : > { %p1208_p4 = por %p167_p2, %p166_p1  ;;  %s153_s29 = ssub.s32 %s1102_s22, %s1517_s26 }
   0xa   : > { %p877_p6 = scmp.ge.s32.totalorder %s1106_s23, 1  ;;  %p154_p7 = scmp.eq.s32.totalorder %s153_s29, 0 }
   0xb   : > { %p1215_p8 = por %p173_p5, %p172_p3  ;;  %p218_p9 = scmp.lt.s32.totalorder %s1106_s23, 3 }
   0xc   : > { %s1221_s6 = scalar_select %p154_p7, %s1094_s20, %s156_s27  }
   0xd   : > { %p219_p10 = pnand %p877_p6, %p218_p9 }
   0xe   : > { %p251_p11 = scmp.lt.s32.totalorder (!%p219_p10), %s1098_s21, 1  ;;  %s1124_s13 = smov (!%p219_p10), 32  }
   0xf   : > { %222 = sbr.rel (%p219_p10) target bundleno = 943 (0x3af), region = 40  ;;  %s894_s27 = sshll.u32 (!%p219_p10), %s1098_s21, 3 }
  0x10   : > { %s248_s29 = sand.u32 (!%p219_p10), 1, %s1090_s19   ;;  %s794_s10 = scalar_lea.hbm (!%p219_p10), %s1508_s5, %s1098_s21 }
  0x11   : > { %s798_s12 = sshll.u32 (!%p219_p10), %s794_s10, 4  ;;  %s799_s12 = int_to_ptr.hbm [resolvable:$true] %s798_s12 }
  0x12   : > { %s1042_s15 = sshra.s32 (!%p219_p10), %s799_s12, 4  ;;  %s1043_s15 = int_to_ptr.hbm [resolvable:$true] %s1042_s15 }
  0x13   : > { %s1044_s16 = scalar_lea.hbm (!%p219_p10), %s1043_s15, 1  ;;  %p1049_p1 = scmp.lt.s32.totalorder (!%p219_p10), %s1043_s15, %s1508_s5 }
  0x14   : > { %v1108_v0 = vmov 2   ;;  %v1109_v1 = vmov 5   ;;  %s252_s7 = scalar_select %p251_p11, %s1098_s21, 1  ;;  %v1110_v2 = vmov 1   ;;  %v1111_v4 = vmov 3   ;;  %v316_v10 = vld [vmem:[%s1505_s2 + $0x28] sm:$0xff] }
  0x15   : > { %986 = vset.pattern.permute.xlu1 %v1108_v0  ;;  %988 = vset.pattern.permute.xlu2 %v1109_v1  ;;  %v1112_v5 = vmov 6   ;;  %v1113_v6 = vmov 4   ;;  %v1114_v8 = vmov 0   ;;  %v317_v9 = vld [vmem:[%s1505_s2 + $0x30] sm:$0x3]  ;;  %vm322_vm0 = vcmask 1041408   ;;  %p1045_p12 = scmp.ne.s32.totalorder %s1043_s15, %s1044_s16 }
  0x16   : > { %984 = vset.pattern.permute.xlu0 %v1110_v2  ;;  %s878_s8 = sshll.u32 %s252_s7, 3  ;;  %888 = vmatpush.msk.msra.mxu1 %vm322_vm0, %v317_v9  ;;  %v315_v11 = vld [vmem:[%s1505_s2 + $0x20] sm:$0xff]  ;;  %v314_v12 = vld [vmem:[%s1505_s2 + $0x18] sm:$0xff]  ;;  %v313_v13 = vld [vmem:[%s1505_s2 + $0x10] sm:$0xff]  ;;  %v268_v19 = vlaneseq  ;;  %v1115_v25 = vmov 0.0   ;;  %vm318_vm7 = vcmask 408576  }
  0x17   : > { %s254_s11 = scalar_lea.vmem %s1503_s0, %s878_s8  ;;  %s260_s14 = scalar_lea.vmem %s1504_s1, %s878_s8  ;;  %886 = vmatpush.msk.msra.mxu0 %vm322_vm0, %v317_v9  ;;  %v312_v14 = vld [vmem:[%s1505_s2 + $0x8] sm:$0xff]  ;;  %v311_v15 = vld [vmem:[%s1505_s2] sm:$0xff]  ;;  %vm383_vm8 = vcmask 80896   ;;  %v1116_v40 = vmov 9   ;;  %v1117_v41 = vmov 10   ;;  %v418_v42 = vld [vmem:[%s1507_s4 + $0x38] sm:$0xff] }
  0x18   : > { %v267_v3 = vld [vmem:[%s254_s11] sm:$0xff]  ;;  %359 = vmatpush.msra.mxu1 %v316_v10  ;;  %v376_v16 = vld [vmem:[%s1506_s3 + $0x8] sm:$0x3]  ;;  %v1270_v22 = vand.u32 127, %v268_v19  ;;  %431 = vmatpush.msra.mxu3 %v418_v42  ;;  %v1118_v43 = vmov 11   ;;  %v1119_v44 = vmov 12   ;;  %p1046_p13 = pnand %p1045_p12, %p1208_p4 }
  0x19   : > { %284 = vperm.xlu1 %986, %v267_v3   ;;  %297 = vperm.xlu2 %988, %v267_v3   ;;  %v1232_v7 = vld [vmem:[%s260_s14] sm:$0xff]  ;;  %v417_v45 = vld [vmem:[%s1507_s4 + $0x30] sm:$0xff]  ;;  %v416_v46 = vld [vmem:[%s1507_s4 + $0x28] sm:$0xff]  ;;  %v1120_v47 = vmov 13   ;;  %v1121_v48 = vmov 16   ;;  %v1122_v51 = vmov 17  }
  0x1a   : > { %271 = vperm.xlu0 %984, %v267_v3   ;;  %336 = vmatpush.msra.mxu0 %v316_v10  ;;  %v375_v17 = vld [vmem:[%s1506_s3] sm:$0xff]  ;;  %v414_v50 = vld [vmem:[%s1507_s4 + $0x18] sm:$0xff]  ;;  %v1123_v52 = vmov 21   ;;  %v1125_v54 = vmov 19   ;;  %v1126_v55 = vmov 7   ;;  %v413_v56 = vld [vmem:[%s1507_s4 + $0x10] sm:$0xff]  ;;  %p1047_p0 = pneg %p1046_p13 }
  0x1b   : > { %360 = vmatpush.msra.mxu1 %v315_v11  ;;  %891 = vmatpush.msk.msra.mxu2 %vm322_vm0, %v376_v16  ;;  %v415_v49 = vld [vmem:[%s1507_s4 + $0x20] sm:$0xff]  ;;  %v412_v57 = vld [vmem:[%s1507_s4 + $0x8] sm:$0xff]  ;;  %v1127_v58 = vmov 24   ;;  %v1128_v59 = vmov 20   ;;  %v1129_v61 = vmov 8   ;;  %v1130_v62 = vmov 26  }
  0x1c   : > { %337 = vmatpush.msra.mxu0 %v315_v11  ;;  %432 = vmatpush.msra.mxu3 %v417_v45  ;;  %v411_v60 = vld [vmem:[%s1507_s4] sm:$0xff]  ;;  %v1131_v63 = vmov 22   ;;  %vm381_vm10 = vcmask 261120   ;;  %v1136_v10 = vmov 18   ;;  %vm419_vm11 = vcmask 523264   ;;  %s249_s7 = scalar_lea.vmem [#allocation2], %s248_s29 }
  0x1d   : > { %361 = vmatpush.msra.mxu1 %v314_v12  ;;  %405 = vmatpush.msra.mxu2 %v375_v17  ;;  %266 = vst [vmem:[%s249_s7] sm:$0x1] %v1115_v25  ;;  %s796_s11 = sshll.u32 %s249_s7, 4  ;;  %s786_s14 = scalar_lea.sflag [#allocation3], %s248_s29  ;;  %s797_s11 = int_to_ptr.vmem [resolvable:$true] %s796_s11 }
  0x1e   : > { %338 = vmatpush.msra.mxu0 %v314_v12  ;;  %433 = vmatpush.msra.mxu3 %v416_v46  ;;  %v1137_v12 = vmov 23   ;;  %s1048_s21 = scalar_lea.hbm %s1508_s5, 2 }
  0x1f   : > { %362 = vmatpush.msra.mxu1 %v313_v13  ;;  %p1050_p2 = scmp.lt.s32.totalorder %s1048_s21, %s1044_s16 }
  0x20   : > { %339 = vmatpush.msra.mxu0 %v313_v13  ;;  %434 = vmatpush.msra.mxu3 %v415_v49 }
  0x21   : > { %987 = vset.pattern.permute.xlu1 %v1111_v4  ;;  %989 = vset.pattern.permute.xlu2 %v1112_v5  ;;  %p1051_p3 = por %p1050_p2, %p1049_p1 }
  0x22   : > { %290 = vperm.xlu1 %987, %v267_v3   ;;  %304 = vperm.xlu2 %989, %v267_v3  }
  0x23   : > { %985 = vset.pattern.permute.xlu0 %v1113_v6  ;;  %363 = vmatpush.msra.mxu1 %v312_v14  ;;  %p1052_p5 = pnand %p1051_p3, %p1047_p0 }
  0x24   : > { %277 = vperm.xlu0 %985, %v267_v3   ;;  %340 = vmatpush.msra.mxu0 %v312_v14 }
  0x25   : > { %364 = vmatpush.msra.mxu1 %v311_v15  ;;  %435 = vmatpush.msra.mxu3 %v414_v50 }
  0x26   : > { %341 = vmatpush.msra.mxu0 %v311_v15 }
  0x27   : > { %436 = vmatpush.msra.mxu3 %v413_v56 }
  0x29   : > { %437 = vmatpush.msra.mxu3 %v412_v57 }
  0x2a   : > { %990 = vset.pattern.permute.xlu1 %v1114_v8  ;;  %992 = vset.pattern.permute.xlu2 %v1110_v2  ;;  %v1134_v2 = vmov 25  }
  0x2b   : > { %370 = vperm.xlu1 %990, %v267_v3   ;;  %438 = vmatpush.msra.mxu3 %v411_v60  ;;  %v1135_v3 = vmov 15  }
  0x2c   : > { %991 = vset.pattern.permute.xlu0 %v1114_v8 }
  0x2d   : > { %445 = vperm.xlu0 %991, %v1232_v7  }
  0x33   : > { %994 = vset.pattern.permute.xlu1 %v1111_v4 }
  0x34   : > { %475 = vperm.xlu1 %994, %v1232_v7  }
  0x35   : > { %993 = vset.pattern.permute.xlu0 %v1108_v0  ;;  %v1132_v0 = vmov 14  }
  0x36   : > { %465 = vperm.xlu0 %993, %v1232_v7  }
  0x3c   : > { %997 = vset.pattern.permute.xlu1 %v1112_v5 }
  0x3d   : > { %505 = vperm.xlu1 %997, %v1232_v7  }
  0x3e   : > { %996 = vset.pattern.permute.xlu0 %v1109_v1  ;;  %v1133_v1 = vmov 27  }
  0x3f   : > { %495 = vperm.xlu0 %996, %v1232_v7  }
  0x45   : > { %1001 = vset.pattern.permute.xlu1 %v1117_v41 }
  0x46   : > { %545 = vperm.xlu1 %1001, %v1232_v7  }
  0x47   : > { %1000 = vset.pattern.permute.xlu0 %v1116_v40 }
  0x48   : > { %535 = vperm.xlu0 %1000, %v1232_v7  }
  0x4e   : > { %1003 = vset.pattern.permute.xlu1 %v1119_v44 }
  0x4f   : > { %565 = vperm.xlu1 %1003, %v1232_v7  }
  0x50   : > { %1002 = vset.pattern.permute.xlu0 %v1118_v43 }
  0x51   : > { %555 = vperm.xlu0 %1002, %v1232_v7  }
  0x57   : > { %1007 = vset.pattern.permute.xlu1 %v1121_v48 }
  0x58   : > { %605 = vperm.xlu1 %1007, %v1232_v7  }
  0x59   : > { %1004 = vset.pattern.permute.xlu0 %v1120_v47 }
  0x5a   : > { %575 = vperm.xlu0 %1004, %v1232_v7  }
  0x60   : > { %1012 = vset.pattern.permute.xlu1 %v1123_v52 }
  0x61   : > { %655 = vperm.xlu1 %1012, %v1232_v7  }
  0x62   : > { %1008 = vset.pattern.permute.xlu0 %v1122_v51 }
  0x63   : > { %615 = vperm.xlu0 %1008, %v1232_v7  }
  0x69   : > { %1015 = vset.pattern.permute.xlu1 %v1127_v58 }
  0x6a   : > { %685 = vperm.xlu1 %1015, %v1232_v7  }
  0x6b   : > { %1010 = vset.pattern.permute.xlu0 %v1125_v54 }
  0x6c   : > { %635 = vperm.xlu0 %1010, %v1232_v7  }
  0x72   : > { %1017 = vset.pattern.permute.xlu1 %v1130_v62 }
  0x73   : > { %v298_v18 = vpop.permute.xlu2 %297  ;;  %705 = vperm.xlu1 %1017, %v1232_v7  }
  0x74   : > { %vm299_vm3 = vcmp.eq.s32.totalorder %v1270_v22, %v298_v18  ;;  %1011 = vset.pattern.permute.xlu0 %v1128_v59 }
  0x75   : > { %v884_v31 = vsel %vm299_vm3, 1.0, %v1115_v25  ;;  %645 = vperm.xlu0 %1011, %v1232_v7  }
  0x7b   : > { %1018 = vset.pattern.permute.xlu1 %v1133_v1 }
  0x7c   : > { %v305_v23 = vpop.permute.xlu2 %304  ;;  %715 = vperm.xlu1 %1018, %v1232_v7  }
  0x7d   : > { %vm306_vm5 = vcmp.eq.s32.totalorder %v1270_v22, %v305_v23  ;;  %1013 = vset.pattern.permute.xlu0 %v1131_v63 }
  0x7e   : > { %v885_v32 = vsel %vm306_vm5, 1.0, %v1115_v25  ;;  %665 = vperm.xlu0 %1013, %v1232_v7  }
  0x86   : > { %1016 = vset.pattern.permute.xlu0 %v1134_v2 }
  0x87   : > { %695 = vperm.xlu0 %1016, %v1232_v7  }
  0x8b   : > { %v285_v20 = vpop.permute.xlu1 %284 }
  0x8c   : > { %v272_v21 = vpop.permute.xlu0 %271  ;;  %vm286_vm1 = vcmp.eq.s32.totalorder %v1270_v22, %v285_v20 }
  0x8d   : > { %vm273_vm2 = vcmp.eq.s32.totalorder %v1270_v22, %v272_v21  ;;  %v882_v26 = vsel %vm286_vm1, 1.0, %v1115_v25 }
  0x8e   : > { %v880_v28 = vsel %vm273_vm2, 1.0, %v1115_v25 }
  0x8f   : > { %1019 = vset.pattern.permute.xlu0 %v1133_v1 }
  0x94   : > { %v291_v24 = vpop.permute.xlu1 %290 }
  0x95   : > { %vm292_vm4 = vcmp.eq.s32.totalorder %v1270_v22, %v291_v24 }
  0x96   : > { %v883_v27 = vsel %vm292_vm4, 1.0, %v1115_v25  ;;  %v278_v29 = vpop.permute.xlu0 %277 }
  0x97   : > { %v295_v30 = vadd.f32 %v883_v27, %v882_v26  ;;  %vm279_vm6 = vcmp.eq.s32.totalorder %v1270_v22, %v278_v29 }
  0x98   : > { %v881_v33 = vsel %vm279_vm6, 1.0, %v1115_v25 }
  0x99   : > { %v302_v34 = vadd.f32 %v884_v31, %v295_v30  ;;  %v282_v35 = vadd.f32 %v881_v33, %v880_v28 }
  0x9b   : > { %v309_v36 = vadd.f32 %v885_v32, %v302_v34  ;;  %887 = vmatmul.msk.f32.vlgmr.msra.gmra.mxu0 %vm318_vm7, %v282_v35 }
  0x9d   : > { %v310_v37 = vmul.f32 0.5, %v309_v36  ;;  %v371_v38 = vpop.permute.xlu1 %370 }
  0x9e   : > { %vm372_vm9 = vcmp.eq.s32.totalorder %v1270_v22, %v371_v38 }
  0x9f   : > { %889 = vmatmul.msk.f32.vlgmr.msra.gmra.mxu1 %vm318_vm7, %v310_v37  ;;  %v890_v39 = vsel %vm372_vm9, 1.0, %v1115_v25  ;;  %v446_v13 = vpop.permute.xlu0 %445 }
  0xa0   : > { %892 = vmatmul.msk.f32.vlgmr.msra.gmra.mxu2 %vm383_vm8, %v890_v39  ;;  %vm447_vm13 = vcmp.eq.s32.totalorder %v1270_v22, %v446_v13 }
  0xa6   : > { %v476_v14 = vpop.permute.xlu1 %475 }
  0xa7   : > { %vm477_vm15 = vcmp.eq.s32.totalorder %v1270_v22, %v476_v14 }
  0xa8   : > { %v466_v15 = vpop.permute.xlu0 %465 }
  0xa9   : > { %vm467_vm12 = vcmp.eq.s32.totalorder %v1270_v22, %v466_v15 }
  0xaf   : > { %v506_v17 = vpop.permute.xlu1 %505 }
  0xb0   : > { %vm507_vm1 = vcmp.eq.s32.totalorder %v1270_v22, %v506_v17 }
  0xb1   : > { %v496_v18 = vpop.permute.xlu0 %495 }
  0xb2   : > { %vm497_vm2 = vcmp.eq.s32.totalorder %v1270_v22, %v496_v18 }
  0xb8   : > { %v1336_v21 = vpop.permute.xlu1 %545 }
  0xb9   : > { %vm547_vm9 = vcmp.eq.s32.totalorder %v1270_v22, %v1336_v21 }
  0xba   : > { %v536_v23 = vpop.permute.xlu0 %535 }
  0xbb   : > { %vm537_vm5 = vcmp.eq.s32.totalorder %v1270_v22, %v536_v23 }
  0xc1   : > { %v1338_v26 = vpop.permute.xlu1 %565 }
  0xc3   : > { %v1340_v27 = vpop.permute.xlu0 %555 }
  0xca   : > { %v606_v32 = vpop.permute.xlu1 %605 }
  0xcb   : > { %vm607_vm8 = vcmp.eq.s32.totalorder %v1270_v22, %v606_v32 }
  0xcc   : > { %v576_v36 = vpop.permute.xlu0 %575 }
  0xd3   : > { %v656_v44 = vpop.permute.xlu1 %655 }
  0xd5   : > { %v616_v48 = vpop.permute.xlu0 %615 }
  0xdc   : > { %v686_v52 = vpop.permute.xlu1 %685 }
  0xde   : > { %v636_v58 = vpop.permute.xlu0 %635 }
  0xe5   : > { %v1386_v62 = vpop.permute.xlu1 %705 }
 0x118   : > { %v343_v5 = vpop.f32.mrf.mxu0 }
 0x11c   : > { %v366_v53 = vpop.f32.mrf.mxu1 }
 0x11d   : > { %378 = vrot.lane.b32.xlu2 %v366_v53, %s1124_s13 }
 0x123   : > { %v407_v4 = vpop.f32.mrf.mxu2 }
 0x125   : > { %455 = vperm.xlu2 %992, %v1232_v7  }
 0x12d   : > { %995 = vset.pattern.permute.xlu2 %v1113_v6 }
 0x12e   : > { %485 = vperm.xlu2 %995, %v1232_v7  }
 0x136   : > { %998 = vset.pattern.permute.xlu2 %v1126_v55 }
 0x137   : > { %515 = vperm.xlu2 %998, %v1232_v7  }
 0x13f   : > { %999 = vset.pattern.permute.xlu2 %v1129_v61 }
 0x140   : > { %525 = vperm.xlu2 %999, %v1232_v7  }
 0x148   : > { %1005 = vset.pattern.permute.xlu2 %v1132_v0 }
 0x149   : > { %585 = vperm.xlu2 %1005, %v1232_v7  }
 0x151   : > { %1006 = vset.pattern.permute.xlu2 %v1135_v3  ;;  %v646_v3 = vpop.permute.xlu0 %645 }
 0x152   : > { %595 = vperm.xlu2 %1006, %v1232_v7  }
 0x15a   : > { %1009 = vset.pattern.permute.xlu2 %v1136_v10 }
 0x15b   : > { %625 = vperm.xlu2 %1009, %v1232_v7  }
 0x163   : > { %1014 = vset.pattern.permute.xlu2 %v1137_v12  ;;  %v666_v12 = vpop.permute.xlu0 %665 }
 0x164   : > { %675 = vperm.xlu2 %1014, %v1232_v7  }
 0x177   : > { %v379_v6 = vpop.permute.xlu2 %378 }
 0x178   : > { %v382_v8 = vsel %vm381_vm10, %v343_v5, %v379_v6  ;;  %vm577_vm10 = vcmp.eq.s32.totalorder %v1270_v22, %v576_v36 }
 0x179   : > { %v408_v9 = vadd.f32 %v407_v4, %v382_v8  ;;  %v716_v8 = vpop.permute.xlu1 %715 }
 0x17b   : > { %v410_v11 = vmul.f32 0.33333334, %v408_v9 }
 0x17d   : > { %893 = vmatmul.msk.f32.vlgmr.msra.gmra.mxu3 %vm419_vm11, %v410_v11  ;;  %vm657_vm11 = vcmp.eq.s32.totalorder %v1270_v22, %v656_v44 }
 0x17f   : > { %v456_v16 = vpop.permute.xlu2 %455 }
 0x180   : > { %vm457_vm14 = vcmp.eq.s32.totalorder %v1270_v22, %v456_v16 }
 0x188   : > { %v486_v20 = vpop.permute.xlu2 %485 }
 0x189   : > { %vm487_vm0 = vcmp.eq.s32.totalorder %v1270_v22, %v486_v20 }
 0x191   : > { %v516_v24 = vpop.permute.xlu2 %515 }
 0x192   : > { %vm517_vm3 = vcmp.eq.s32.totalorder %v1270_v22, %v516_v24  ;;  %v696_v24 = vpop.permute.xlu0 %695 }
 0x19a   : > { %v526_v31 = vpop.permute.xlu2 %525 }
 0x19b   : > { %vm527_vm6 = vcmp.eq.s32.totalorder %v1270_v22, %v526_v31 }
 0x1a3   : > { %v586_v43 = vpop.permute.xlu2 %585 }
 0x1a4   : > { %vm587_vm4 = vcmp.eq.s32.totalorder %v1270_v22, %v586_v43 }
 0x1ac   : > { %v596_v16 = vpop.permute.xlu2 %595 }
 0x200   : > { %v1345_v7 = vpop.f32.mrf.mxu3 }
 0x201   : > { %v458_v28 = vsel %vm457_vm14, %v1345_v7, 0.0  ;;  %v448_v29 = vsel %vm447_vm13, %v1345_v7, 0.0  ;;  %v468_v30 = vsel %vm467_vm12, %v1345_v7, 0.0  ;;  %v478_v37 = vsel %vm477_vm15, %v1345_v7, 0.0 }
 0x202   : > { %v459_v33 = vsel %vm318_vm7, %v458_v28, 0.0  ;;  %v449_v34 = vsel %vm318_vm7, %v448_v29, 0.0  ;;  %v469_v35 = vsel %vm318_vm7, %v468_v30, 0.0  ;;  %v488_v38 = vsel %vm487_vm0, %v1345_v7, 0.0  ;;  %v626_v28 = vpop.permute.xlu2 %625 }
 0x203   : > { %460 = vadd.xlane.f32.xlu2 %v459_v33  ;;  %450 = vadd.xlane.f32.xlu1 %v449_v34  ;;  %v508_v39 = vsel %vm507_vm1, %v1345_v7, 0.0  ;;  %v479_v40 = vsel %vm318_vm7, %v478_v37, 0.0  ;;  %v489_v41 = vsel %vm318_vm7, %v488_v38, 0.0  ;;  %v518_v45 = vsel %vm517_vm3, %v1345_v7, 0.0 }
 0x204   : > { %470 = vadd.xlane.f32.xlu0 %v469_v35  ;;  %v509_v42 = vsel %vm318_vm7, %v508_v39, 0.0  ;;  %v498_v46 = vsel %vm497_vm2, %v1345_v7, 0.0  ;;  %v588_v47 = vsel %vm587_vm4, %v1345_v7, 0.0  ;;  %v519_v49 = vsel %vm318_vm7, %v518_v45, 0.0 }
 0x205   : > { %v499_v50 = vsel %vm318_vm7, %v498_v46, 0.0  ;;  %v589_v51 = vsel %vm318_vm7, %v588_v47, 0.0  ;;  %v528_v53 = vsel %vm527_vm6, %v1345_v7, 0.0  ;;  %v538_v54 = vsel %vm537_vm5, %v1345_v7, 0.0 }
 0x206   : > { %v608_v55 = vsel %vm607_vm8, %v1345_v7, 0.0  ;;  %v529_v56 = vsel %vm318_vm7, %v528_v53, 0.0  ;;  %v539_v57 = vsel %vm318_vm7, %v538_v54, 0.0  ;;  %v548_v60 = vsel %vm547_vm9, %v1345_v7, 0.0 }
 0x207   : > { %v609_v59 = vsel %vm318_vm7, %v608_v55, 0.0  ;;  %v578_v61 = vsel %vm577_vm10, %v1345_v7, 0.0  ;;  %v658_v63 = vsel %vm657_vm11, %v1345_v7, 0.0  ;;  %v549_v0 = vsel %vm318_vm7, %v548_v60, 0.0 }
 0x208   : > { %v579_v1 = vsel %vm318_vm7, %v578_v61, 0.0  ;;  %v659_v2 = vsel %vm318_vm7, %v658_v63, 0.0  ;;  %vm557_vm12 = vcmp.eq.s32.totalorder %v1270_v22, %v1340_v27  ;;  %vm617_vm13 = vcmp.eq.s32.totalorder %v1270_v22, %v616_v48 }
 0x209   : > { %vm687_vm14 = vcmp.eq.s32.totalorder %v1270_v22, %v686_v52  ;;  %v558_v4 = vsel %vm557_vm12, %v1345_v7, 0.0  ;;  %v618_v5 = vsel %vm617_vm13, %v1345_v7, 0.0  ;;  %vm567_vm15 = vcmp.eq.s32.totalorder %v1270_v22, %v1338_v26 }
 0x20a   : > { %v688_v6 = vsel %vm687_vm14, %v1345_v7, 0.0  ;;  %v559_v9 = vsel %vm318_vm7, %v558_v4, 0.0  ;;  %v619_v10 = vsel %vm318_vm7, %v618_v5, 0.0  ;;  %vm637_vm0 = vcmp.eq.s32.totalorder %v1270_v22, %v636_v58  ;;  %v676_v34 = vpop.permute.xlu2 %675 }
 0x20b   : > { %480 = vadd.xlane.f32.xlu2 %v479_v40  ;;  %490 = vadd.xlane.f32.xlu1 %v489_v41  ;;  %v689_v11 = vsel %vm318_vm7, %v688_v6, 0.0  ;;  %vm717_vm1 = vcmp.eq.s32.totalorder %v1270_v22, %v716_v8  ;;  %v568_v13 = vsel %vm567_vm15, %v1345_v7, 0.0  ;;  %v638_v14 = vsel %vm637_vm0, %v1345_v7, 0.0 }
 0x20c   : > { %510 = vadd.xlane.f32.xlu0 %v509_v42  ;;  %v718_v15 = vsel %vm717_vm1, %v1345_v7, 0.0  ;;  %v569_v17 = vsel %vm318_vm7, %v568_v13, 0.0  ;;  %v639_v18 = vsel %vm318_vm7, %v638_v14, 0.0  ;;  %vm597_vm2 = vcmp.eq.s32.totalorder %v1270_v22, %v596_v16 }
 0x20d   : > { %v719_v20 = vsel %vm318_vm7, %v718_v15, 0.0  ;;  %vm667_vm3 = vcmp.eq.s32.totalorder %v1270_v22, %v666_v12  ;;  %v598_v21 = vsel %vm597_vm2, %v1345_v7, 0.0  ;;  %vm627_vm4 = vcmp.eq.s32.totalorder %v1270_v22, %v626_v28 }
 0x20e   : > { %v668_v23 = vsel %vm667_vm3, %v1345_v7, 0.0  ;;  %v599_v26 = vsel %vm318_vm7, %v598_v21, 0.0  ;;  %vm697_vm5 = vcmp.eq.s32.totalorder %v1270_v22, %v696_v24  ;;  %v628_v29 = vsel %vm627_vm4, %v1345_v7, 0.0 }
 0x20f   : > { %v669_v27 = vsel %vm318_vm7, %v668_v23, 0.0  ;;  %v698_v30 = vsel %vm697_vm5, %v1345_v7, 0.0  ;;  %v629_v31 = vsel %vm318_vm7, %v628_v29, 0.0  ;;  %vm647_vm6 = vcmp.eq.s32.totalorder %v1270_v22, %v646_v3 }
 0x210   : > { %v699_v32 = vsel %vm318_vm7, %v698_v30, 0.0  ;;  %v648_v33 = vsel %vm647_vm6, %v1345_v7, 0.0  ;;  %vm677_vm8 = vcmp.eq.s32.totalorder %v1270_v22, %v676_v34  ;;  %vm707_vm9 = vcmp.eq.s32.totalorder %v1270_v22, %v1386_v62 }
 0x211   : > { %v649_v35 = vsel %vm318_vm7, %v648_v33, 0.0  ;;  %v678_v36 = vsel %vm677_vm8, %v1345_v7, 0.0  ;;  %v708_v38 = vsel %vm707_vm9, %v1345_v7, 0.0  ;;  %vm452_vm10 = vcmp.eq.s32.totalorder %v1270_v22, 0 }
 0x212   : > { %v679_v37 = vsel %vm318_vm7, %v678_v36, 0.0  ;;  %v709_v39 = vsel %vm318_vm7, %v708_v38, 0.0  ;;  %vm462_vm11 = vcmp.eq.s32.totalorder %v1270_v22, 1  ;;  %vm472_vm12 = vcmp.eq.s32.totalorder %v1270_v22, 2 }
 0x213   : > { %520 = vadd.xlane.f32.xlu1 %v519_v49  ;;  %500 = vadd.xlane.f32.xlu2 %v499_v50  ;;  %vm482_vm7 = vcmp.eq.s32.totalorder %v1270_v22, 3  ;;  %vm492_vm13 = vcmp.eq.s32.totalorder %v1270_v22, 4  ;;  %vm502_vm14 = vcmp.eq.s32.totalorder %v1270_v22, 5  ;;  %vm512_vm15 = vcmp.eq.s32.totalorder %v1270_v22, 6 }
 0x214   : > { %590 = vadd.xlane.f32.xlu0 %v589_v51  ;;  %vm522_vm0 = vcmp.eq.s32.totalorder %v1270_v22, 7  ;;  %vm532_vm1 = vcmp.eq.s32.totalorder %v1270_v22, 8  ;;  %vm542_vm2 = vcmp.eq.s32.totalorder %v1270_v22, 9  ;;  %vm552_vm3 = vcmp.eq.s32.totalorder %v1270_v22, 10 }
 0x215   : > { %vm562_vm4 = vcmp.eq.s32.totalorder %v1270_v22, 11  ;;  %vm572_vm5 = vcmp.eq.s32.totalorder %v1270_v22, 12  ;;  %vm582_vm6 = vcmp.eq.s32.totalorder %v1270_v22, 13  ;;  %vm592_vm8 = vcmp.eq.s32.totalorder %v1270_v22, 14 }
 0x216   : > { %vm602_vm9 = vcmp.eq.s32.totalorder %v1270_v22, 15 }
 0x21b   : > { %530 = vadd.xlane.f32.xlu2 %v529_v56  ;;  %540 = vadd.xlane.f32.xlu1 %v539_v57 }
 0x21c   : > { %610 = vadd.xlane.f32.xlu0 %v609_v59 }
 0x223   : > { %550 = vadd.xlane.f32.xlu2 %v549_v0  ;;  %580 = vadd.xlane.f32.xlu1 %v579_v1 }
 0x224   : > { %660 = vadd.xlane.f32.xlu0 %v659_v2 }
 0x22b   : > { %560 = vadd.xlane.f32.xlu2 %v559_v9  ;;  %620 = vadd.xlane.f32.xlu1 %v619_v10 }
 0x22c   : > { %690 = vadd.xlane.f32.xlu0 %v689_v11 }
 0x233   : > { %570 = vadd.xlane.f32.xlu2 %v569_v17  ;;  %640 = vadd.xlane.f32.xlu1 %v639_v18 }
 0x234   : > { %720 = vadd.xlane.f32.xlu0 %v719_v20 }
 0x23b   : > { %600 = vadd.xlane.f32.xlu2 %v599_v26  ;;  %670 = vadd.xlane.f32.xlu1 %v669_v27 }
 0x243   : > { %630 = vadd.xlane.f32.xlu2 %v629_v31  ;;  %700 = vadd.xlane.f32.xlu1 %v699_v32 }
 0x24b   : > { %650 = vadd.xlane.f32.xlu2 %v649_v35 }
 0x253   : > { %680 = vadd.xlane.f32.xlu2 %v679_v37 }
 0x25b   : > { %710 = vadd.xlane.f32.xlu2 %v709_v39 }
 0x276   : > { %v461_v40 = vpop.xlane.xlu2 %460  ;;  %v451_v41 = vpop.xlane.xlu1 %450 }
 0x277   : > { %v471_v47 = vpop.xlane.xlu0 %470  ;;  %v453_v49 = vsel %vm452_vm10, %v451_v41, 0.0  ;;  %vm612_vm10 = vcmp.eq.s32.totalorder %v1270_v22, 16 }
 0x278   : > { %v463_v50 = vsel %vm462_vm11, %v461_v40, %v453_v49  ;;  %vm622_vm11 = vcmp.eq.s32.totalorder %v1270_v22, 17 }
 0x279   : > { %v473_v51 = vsel %vm472_vm12, %v471_v47, %v463_v50  ;;  %vm632_vm12 = vcmp.eq.s32.totalorder %v1270_v22, 18 }
 0x27e   : > { %v481_v42 = vpop.xlane.xlu2 %480  ;;  %v491_v44 = vpop.xlane.xlu1 %490 }
 0x27f   : > { %v511_v52 = vpop.xlane.xlu0 %510  ;;  %v483_v53 = vsel %vm482_vm7, %v481_v42, %v473_v51  ;;  %vm642_vm7 = vcmp.eq.s32.totalorder %v1270_v22, 19 }
 0x280   : > { %v493_v55 = vsel %vm492_vm13, %v491_v44, %v483_v53  ;;  %vm652_vm13 = vcmp.eq.s32.totalorder %v1270_v22, 20 }
 0x286   : > { %v501_v43 = vpop.xlane.xlu2 %500  ;;  %v521_v46 = vpop.xlane.xlu1 %520 }
 0x287   : > { %v503_v56 = vsel %vm502_vm14, %v501_v43, %v493_v55  ;;  %v591_v60 = vpop.xlane.xlu0 %590  ;;  %vm662_vm14 = vcmp.eq.s32.totalorder %v1270_v22, 21 }
 0x288   : > { %v513_v57 = vsel %vm512_vm15, %v511_v52, %v503_v56  ;;  %vm672_vm15 = vcmp.eq.s32.totalorder %v1270_v22, 22 }
 0x289   : > { %v523_v61 = vsel %vm522_vm0, %v521_v46, %v513_v57  ;;  %vm682_vm0 = vcmp.eq.s32.totalorder %v1270_v22, 23 }
 0x28e   : > { %v531_v45 = vpop.xlane.xlu2 %530  ;;  %v541_v7 = vpop.xlane.xlu1 %540 }
 0x28f   : > { %v533_v62 = vsel %vm532_vm1, %v531_v45, %v523_v61  ;;  %v611_v5 = vpop.xlane.xlu0 %610  ;;  %vm692_vm1 = vcmp.eq.s32.totalorder %v1270_v22, 24  ;;  %v765_v61 = vshrl.u32 %v268_v19, 7 }
 0x290   : > { %v543_v63 = vsel %vm542_vm2, %v541_v7, %v533_v62  ;;  %vm702_vm2 = vcmp.eq.s32.totalorder %v1270_v22, 25 }
 0x296   : > { %v551_v48 = vpop.xlane.xlu2 %550  ;;  %v581_v58 = vpop.xlane.xlu1 %580 }
 0x297   : > { %v553_v0 = vsel %vm552_vm3, %v551_v48, %v543_v63  ;;  %v661_v13 = vpop.xlane.xlu0 %660  ;;  %vm712_vm3 = vcmp.eq.s32.totalorder %v1270_v22, 26  ;;  %v766_v63 = vstv %s894_s27 }
 0x29e   : > { %v561_v54 = vpop.xlane.xlu2 %560  ;;  %v621_v3 = vpop.xlane.xlu1 %620 }
 0x29f   : > { %v563_v1 = vsel %vm562_vm4, %v561_v54, %v553_v0  ;;  %v691_v23 = vpop.xlane.xlu0 %690  ;;  %vm722_vm4 = vcmp.eq.s32.totalorder %v1270_v22, 27 }
 0x2a6   : > { %v571_v59 = vpop.xlane.xlu2 %570  ;;  %v641_v11 = vpop.xlane.xlu1 %640 }
 0x2a7   : > { %v573_v4 = vsel %vm572_vm5, %v571_v59, %v563_v1  ;;  %v721_v32 = vpop.xlane.xlu0 %720 }
 0x2a8   : > { %v583_v6 = vsel %vm582_vm6, %v581_v58, %v573_v4 }
 0x2a9   : > { %v593_v8 = vsel %vm592_vm8, %v591_v60, %v583_v6  ;;  %vm759_vm8 = vcmp.lt.s32.totalorder %v1270_v22, 3 }
 0x2ae   : > { %v601_v2 = vpop.xlane.xlu2 %600  ;;  %v671_v20 = vpop.xlane.xlu1 %670 }
 0x2af   : > { %v603_v9 = vsel %vm602_vm9, %v601_v2, %v593_v8 }
 0x2b0   : > { %v613_v12 = vsel %vm612_vm10, %v611_v5, %v603_v9  ;;  %vm770_vm10 = vcmask 228352  }
 0x2b1   : > { %v623_v14 = vsel %vm622_vm11, %v621_v3, %v613_v12  ;;  %v767_v3 = vadd.s32 %v766_v63, %v765_v61 }
 0x2b3   : > { %vm768_vm9 = vcmp.lt.s32.totalorder %v767_v3, 2 }
 0x2b6   : > { %v631_v10 = vpop.xlane.xlu2 %630  ;;  %v701_v29 = vpop.xlane.xlu1 %700 }
 0x2b7   : > { %v633_v15 = vsel %vm632_vm12, %v631_v10, %v623_v14 }
 0x2b8   : > { %v643_v17 = vsel %vm642_vm7, %v641_v11, %v633_v15 }
 0x2be   : > { %v651_v16 = vpop.xlane.xlu2 %650 }
 0x2bf   : > { %v653_v18 = vsel %vm652_vm13, %v651_v16, %v643_v17  ;;  %v781_v16 = vld [vmem:[%s249_s7] sm:$0x1] }
 0x2c0   : > { %v663_v21 = vsel %vm662_vm14, %v661_v13, %v653_v18 }
 0x2c1   : > { %v673_v26 = vsel %vm672_vm15, %v671_v20, %v663_v21 }
 0x2c6   : > { %v681_v24 = vpop.xlane.xlu2 %680 }
 0x2c7   : > { %v683_v27 = vsel %vm682_vm0, %v681_v24, %v673_v26 }
 0x2c8   : > { %v693_v28 = vsel %vm692_vm1, %v691_v23, %v683_v27 }
 0x2c9   : > { %v703_v31 = vsel %vm702_vm2, %v701_v29, %v693_v28 }
 0x2ce   : > { %v711_v30 = vpop.xlane.xlu2 %710 }
 0x2cf   : > { %v713_v33 = vsel %vm712_vm3, %v711_v30, %v703_v31 }
 0x2d0   : > { %v723_v34 = vsel %vm722_vm4, %v721_v32, %v713_v33 }
 0x2d1   : > { %v724_v35 = vsub.f32 0.0, %v723_v34  ;;  %v743_v36 = vand.u32 2147483647, %v723_v34  ;;  %v742_v55 = vmax.f32 %v723_v34, 0.0 }
 0x2d3   : > { %v726_v37 = vand.u32 2147483647, %v724_v35  ;;  %v744_v38 = vsub.f32 0.0, %v743_v36  ;;  %v725_v59 = vmax.f32 %v724_v35, 0.0 }
 0x2d5   : > { %v727_v39 = vsub.f32 0.0, %v726_v37  ;;  %v745_v40 = vmul.f32 1.442695, %v744_v38 }
 0x2d7   : > { %v728_v41 = vmul.f32 1.442695, %v727_v39  ;;  %1020 = vpow2.f32 %v745_v40 }
 0x2d9   : > { %1022 = vpow2.f32 %v728_v41 }
 0x2dd   : > { %v1021_v42 = vpop.eup %1020 }
 0x2de   : > { %v747_v43 = vadd.f32 1.0, %v1021_v42  ;;  %v750_v45 = vmul.f32 -0.5, %v1021_v42  ;;  %v753_v49 = vand.u32 2147483647, %v1021_v42 }
 0x2df   : > { %v1023_v44 = vpop.eup %1022 }
 0x2e0   : > { %1024 = vlog2.f32 %v747_v43  ;;  %v730_v46 = vadd.f32 1.0, %v1023_v44  ;;  %v733_v47 = vmul.f32 -0.5, %v1023_v44  ;;  %v751_v48 = vadd.f32 1.0, %v750_v45 }
 0x2e1   : > { %v736_v51 = vand.u32 2147483647, %v1023_v44  ;;  %vm754_vm5 = vcmp.lt.f32.partialorder %v753_v49, 0.0004427343 }
 0x2e2   : > { %1026 = vlog2.f32 %v730_v46  ;;  %v734_v50 = vadd.f32 1.0, %v733_v47  ;;  %v752_v53 = vmul.f32 %v1021_v42, %v751_v48 }
 0x2e3   : > { %vm737_vm6 = vcmp.lt.f32.partialorder %v736_v51, 0.0004427343 }
 0x2e4   : > { %v735_v58 = vmul.f32 %v1023_v44, %v734_v50 }
 0x2e6   : > { %v1025_v7 = vpop.eup %1024 }
 0x2e7   : > { %v749_v52 = vmul.f32 0.6931472, %v1025_v7 }
 0x2e8   : > { %v1027_v54 = vpop.eup %1026 }
 0x2e9   : > { %v755_v56 = vsel %vm754_vm5, %v752_v53, %v749_v52  ;;  %v732_v57 = vmul.f32 0.6931472, %v1027_v54 }
 0x2ea   : > { %v756_v60 = vadd.f32 %v755_v56, %v742_v55 }
 0x2eb   : > { %v738_v62 = vsel %vm737_vm6, %v735_v58, %v732_v57 }
 0x2ec   : > { %v739_v0 = vadd.f32 %v738_v62, %v725_v59  ;;  %v757_v1 = vsub.f32 0.0, %v756_v60 }
 0x2ee   : > { %v740_v2 = vsub.f32 0.0, %v739_v0  ;;  %v758_v5 = vmax.f32 %v757_v1, -100.0 }
 0x2f0   : > { %v741_v4 = vmax.f32 %v740_v2, -100.0 }
 0x2f2   : > { %v760_v6 = vsel %vm759_vm8, %v741_v4, %v758_v5 }
 0x2f3   : > { %v761_v8 = vsub.f32 0.0, %v760_v6 }
 0x2f5   : > { %v769_v9 = vsel %vm768_vm9, %v761_v8, 0.0 }
 0x2f6   : > { %v771_v10 = vsel %vm770_vm10, %v769_v9, 0.0 }
 0x2f7   : > { %772 = vadd.xlane.f32.xlu1 %v771_v10 }
 0x36a   : > { %v773_v19 = vpop.xlane.xlu1 %772 }
 0x36b   : > { %v774_v11 = vrot.slane %v773_v19, 4 }
 0x36d   : > { %v775_v12 = vadd.f32 %v774_v11, %v773_v19 }
 0x36f   : > { %v776_v13 = vrot.slane %v775_v12, 2 }
 0x371   : > { %v777_v14 = vadd.f32 %v776_v13, %v775_v12 }
 0x373   : > { %v778_v22 = vrot.slane %v777_v14, 1 }
 0x375   : > { %v779_v15 = vadd.f32 %v778_v22, %v777_v14 }
 0x377   : > { %897 = vpush %v779_v15 }
 0x3a8   : > { %s898_s13 = spop %897 }
 0x3a9   : > { %v782_v17 = vstv %s898_s13 }
 0x3aa   : > { %v783_v18 = vadd.f32 %v782_v17, %v781_v16 }
 0x3ac   : > { %784 = vst [vmem:[%s249_s7] sm:$0x1] %v783_v18 }
 0x3ad   : > { %1055 = shalt.err (!%p1052_p5)
}
 0x3ae   : > { %899 = dma.vmem_to_hbm [thread:$0]  (%p1208_p4), %s797_s11, 16, %s799_s12, %s786_s14  }
 0x3af PF: > { %p905_p6 = scmp.ge.s32.totalorder %s1106_s23, 2  ;;  %s810_s29 = sand.u32 1, %s1086_s18  }
 0x3b0   : > { %s811_s7 = scalar_lea.sflag [#allocation3], %s810_s29 }
 0x3b1   : > { %p902_p7 = pnand %p905_p6, %p1215_p8 }
 0x3b3   : > { %p903_p9 = pneg %p902_p7 }
 0x3b5   : > { %1081 = dma.done.wait (%p903_p9), %s811_s7, 16  }
 0x3b6   : > { %1083 = vsyncadd (%p903_p9), %s811_s7, 4294967280  ;;  %s18_s23 = sadd.s32 1, %s1106_s23   ;;  %s1511_s18 = smov %s1090_s19 }
 0x3b7   : > { %p15_p10 = scmp.ge.s32.totalorder %s18_s23, 4   ;;  %s1512_s19 = smov %s1094_s20 }
 0x3b8   : > { %s1513_s20 = smov %s1221_s6  ;;  %s1514_s21 = smov %s1102_s22 }
 0x3b9   : > { %s1515_s22 = smov %s1517_s26  ;;  %17 = sbr.rel (!%p15_p10) target bundleno = 4 (0x4), region = 82 }
 0x3be   :  { %816 = vsyncpa [#allocation3], 1 }
 0x3bf   :  { %818 = vsyncpa [#allocation3 + $0x1], 1 }

</bundles_post_ra>
